<compile_context>
chip_gen: v6e
topology: v6e:2x2x1
jax: 0.10.0
libtpu: 0.0.40
codegen_flags: <defaults>
</compile_context>

<pallas_src>
import functools

import jax
import jax.numpy as jnp
from jax import lax
from jax.experimental import pallas as pl
from jax.experimental.pallas import tpu as pltpu


def _round_up(x, m):
    return (x + m - 1) // m * m


# ---------------------------------------------------------------------------
# Pallas kernel: one (batch, row-tile) grid step of conv(kxk, s=1) + BN + SiLU
# ---------------------------------------------------------------------------
def _conv_bn_silu_kernel(x_ref, w_ref, b_ref, o_ref, acc_ref, *,
                         k, tile_h, wp, w_out, slack):
    # x_ref  : (1, flat_len, Cin) bf16 -- whole padded image, rows flattened
    #          row-major over (Hp, wp) with wp % 16 == 0.
    # w_ref  : (k*k, Cin, Cout) bf16  -- BN scale already folded in.
    # b_ref  : (1, Cout) f32          -- folded BN bias (beta - mean * scale).
    # o_ref  : (1, tile_h, w_out, Cout) bf16.
    # acc_ref: (tile_h*wp, Cout) f32 VMEM scratch accumulator.
    n_rows = tile_h * wp
    cout = acc_ref.shape[-1]
    r = pl.program_id(1)
    base = r * n_rows                      # flattened start row of this tile

    for kh in range(k):
        # One 16-aligned dynamic read per stencil row; the kw windows are then
        # *static* (cheap shift) slices of that value.  Because the spatial
        # dims share the padded width wp, tap (kh, kw) is just a contiguous
        # row window of the flattened image -- implicit im2col, never
        # materialized.  "Wrapped" contributions only land in padded columns
        # (>= w_out), which are never stored.
        start = pl.multiple_of(base + kh * wp, 16)
        xh = x_ref[0, pl.ds(start, n_rows + slack), :]     # (n_rows+slack, Cin)
        part = None
        for kw in range(k):
            xs = xh[kw:kw + n_rows, :]                     # (n_rows, Cin) bf16
            y = jnp.dot(xs, w_ref[kh * k + kw],
                        preferred_element_type=jnp.float32)
            part = y if part is None else part + y
        # One accumulator RMW per kh (not per tap).
        if kh == 0:
            acc_ref[...] = part
        else:
            acc_ref[...] += part

    # Epilogue: un-flatten rows (free: wp % 8 == 0), drop padded columns, add
    # folded BN bias, SiLU via tanh (single EUP push, no exp overflow path).
    y = acc_ref[...].reshape(tile_h, wp, cout)[:, :w_out, :] + b_ref[...]
    y = y * (0.5 * (1.0 + jnp.tanh(0.5 * y)))              # y * sigmoid(y)
    o_ref[0] = y.astype(o_ref.dtype)


# ---------------------------------------------------------------------------
# Wrapper: layout plumbing + pallas_call
# ---------------------------------------------------------------------------
def conv_bn_silu(x_nchw, w_hwio, bn_scale, bn_bias, *, stride=1, groups=1,
                 tile_h=None):
    """Conv2d(kxk, s=1, p=k//2, bias=False) + BatchNorm2d(eval) + SiLU.

    x_nchw  : (N, C1, H, W) f32, PyTorch layout.
    w_hwio  : (k, k, C1, C2) conv weight (HWIO).
    bn_scale: (C2,)  gamma / sqrt(running_var + eps)
    bn_bias : (C2,)  beta - running_mean * bn_scale
    """
    if stride != 1 or groups != 1:
        # TODO(synk): strided / grouped Conv2d variants are not implemented.
        raise NotImplementedError("only stride=1, groups=1 is implemented")

    k = int(w_hwio.shape[0])
    assert int(w_hwio.shape[1]) == k and k % 2 == 1, "square odd kernel expected"
    p = k // 2  # autopad

    N, C1, H, W = map(int, x_nchw.shape)
    C2 = int(w_hwio.shape[-1])
    assert int(w_hwio.shape[2]) == C1

    # Padded width: multiple of 16 so bf16 sublane tiles stay aligned (free
    # reshapes, aligned dynamic slices in the kernel).
    wp = _round_up(W + 2 * p, 16)

    # Row-tile height: make the per-tap matmul M = tile_h*wp big enough to
    # cover MXU fill/drain and amortize grid-step overhead, capped by the f32
    # accumulator footprint and by H.
    if tile_h is None:
        tile_h = pl.cdiv(1024, wp)
        acc_cap = max(1, (4 << 20) // (wp * max(C2, 1) * 4))
        tile_h = min(tile_h, acc_cap)
    tile_h = int(max(1, min(tile_h, H)))
    n_tiles = int(pl.cdiv(H, tile_h))
    h_pad = n_tiles * tile_h

    slack = 16 if k > 1 else 0            # over-read so kw slices stay static & in-bounds
    Hp = h_pad + 2 * p + (1 if k > 1 else 0)
    flat_len = Hp * wp

    # NCHW -> NHWC bf16, zero-pad rows/cols once (no halo duplication, no
    # channel padding), flatten the spatial dims so every conv tap is a
    # contiguous row window inside the kernel.
    x = jnp.transpose(x_nchw, (0, 2, 3, 1)).astype(jnp.bfloat16)
    x = jnp.pad(x, ((0, 0), (p, Hp - H - p), (p, wp - W - p), (0, 0)))
    x = x.reshape(N, flat_len, C1)

    # Fold BN scale into the conv weights; bias added in-kernel.
    wf = (w_hwio.astype(jnp.float32)
          * bn_scale.astype(jnp.float32)[None, None, None, :])
    wf = wf.reshape(k * k, C1, C2).astype(jnp.bfloat16)
    bf = bn_bias.astype(jnp.float32).reshape(1, C2)

    kern = functools.partial(_conv_bn_silu_kernel, k=k, tile_h=tile_h, wp=wp,
                             w_out=W, slack=slack)

    # Derive the VMEM budget from the per-step footprint (lane/sublane padded),
    # with headroom, and keep it under a v7x-friendly cap when possible.
    def _lane(c):
        return _round_up(max(c, 1), 128)

    def _sub(r):
        return _round_up(max(r, 1), 8)

    x_bytes = flat_len * _lane(C1) * 2
    w_bytes = k * k * _sub(C1) * _lane(C2) * 2
    o_bytes = tile_h * _sub(W) * _lane(C2) * 2
    acc_bytes = tile_h * wp * _lane(C2) * 4
    est = 2 * (x_bytes + w_bytes + o_bytes) + acc_bytes + (2 << 20)
    vmem_limit = int(min(max(2 * est, 24 << 20), 48 << 20))
    if est > vmem_limit - (4 << 20):
        vmem_limit = int(est + (8 << 20))   # huge layers: exceed v7x-friendly cap rather than fail

    out = pl.pallas_call(
        kern,
        out_shape=jax.ShapeDtypeStruct((N, h_pad, W, C2), jnp.bfloat16),
        grid_spec=pltpu.PrefetchScalarGridSpec(
            num_scalar_prefetch=0,
            grid=(N, n_tiles),
            in_specs=[
                # Whole flattened image; block index depends only on the batch
                # axis, so it is fetched once per image and reused across all
                # row tiles (no halo-duplicated HBM copy).
                pl.BlockSpec((1, flat_len, C1), lambda n, r: (n, 0, 0)),
                pl.BlockSpec((k * k, C1, C2), lambda n, r: (0, 0, 0)),
                pl.BlockSpec((1, C2), lambda n, r: (0, 0)),
            ],
            out_specs=pl.BlockSpec((1, tile_h, W, C2), lambda n, r: (n, r, 0, 0)),
            scratch_shapes=[pltpu.VMEM((tile_h * wp, C2), jnp.float32)],
        ),
        compiler_params=pltpu.CompilerParams(
            dimension_semantics=("parallel", "arbitrary"),
            vmem_limit_bytes=vmem_limit,
        ),
    )(x, wf, bf)

    # Back to the module's NCHW / f32 contract.  (When chaining Conv blocks,
    # keep the NHWC bf16 slab instead and skip this.)
    out = out[:, :H].astype(jnp.float32)
    return jnp.transpose(out, (0, 3, 1, 2))


# ---------------------------------------------------------------------------
# Pure-JAX reference (same bf16 quantization as the kernel) and synthetic init
# ---------------------------------------------------------------------------
def conv_bn_silu_reference(x_nchw, w_hwio, bn_scale, bn_bias):
    k = w_hwio.shape[0]
    p = k // 2
    x = jnp.transpose(x_nchw, (0, 2, 3, 1)).astype(jnp.bfloat16).astype(jnp.float32)
    wf = (w_hwio.astype(jnp.float32)
          * bn_scale.astype(jnp.float32)[None, None, None, :])
    wf = wf.astype(jnp.bfloat16).astype(jnp.float32)
    y = lax.conv_general_dilated(
        x, wf, window_strides=(1, 1), padding=((p, p), (p, p)),
        dimension_numbers=("NHWC", "HWIO", "NHWC"))
    y = y + bn_bias.astype(jnp.float32)[None, None, None, :]
    y = y * jax.nn.sigmoid(y)
    return jnp.transpose(y, (0, 3, 1, 2))


def make_params(key, c1, c2, k):
    """Synthetic Conv + BatchNorm2d (eval) parameters, folded to scale/bias."""
    # TODO(synk): training-mode BatchNorm (batch statistics) is not implemented;
    # eval-mode running stats are folded into the conv weights/bias.
    ks = jax.random.split(key, 5)
    eps = 1e-3  # BatchNorm2d(eps=0.001) in the module
    w = 0.1 * jax.random.normal(ks[0], (k, k, c1, c2), jnp.float32)
    gamma = 1.0 + 0.1 * jax.random.normal(ks[1], (c2,), jnp.float32)
    beta = 0.1 * jax.random.normal(ks[2], (c2,), jnp.float32)
    running_mean = 0.1 * jax.random.normal(ks[3], (c2,), jnp.float32)
    running_var = 1.0 + 0.1 * jax.random.uniform(ks[4], (c2,), jnp.float32)
    scale = gamma / jnp.sqrt(running_var + eps)
    bias = beta - running_mean * scale
    return w, scale, bias


if __name__ == "__main__":
    key = jax.random.PRNGKey(0)
    kx, kp1, kp2 = jax.random.split(key, 3)

    # Conv(c1=4, c2=8, k=3, s=1):  x -> (2, 4, 16, 16)
    N, C1, H, W = 2, 4, 16, 16
    C2 = 8
    x = jax.random.normal(kx, (N, C1, H, W), jnp.float32)

    w3, s3, b3 = make_params(kp1, C1, C2, 3)
    ref3 = jax.block_until_ready(conv_bn_silu_reference(x, w3, s3, b3))
    for th in (None, 4):   # auto tile (single row tile) and multi-row-tile grid
        out3 = jax.block_until_ready(conv_bn_silu(x, w3, s3, b3, tile_h=th))
        assert out3.shape == (N, C2, H, W)
        assert bool(jnp.all(jnp.isfinite(out3)))
        err3 = float(jnp.max(jnp.abs(out3 - ref3)))
        assert err3 < 5e-2, f"k=3 tile_h={th} max abs error {err3}"

    # Module-default Conv(c1, c2) uses k=1 (pointwise conv) -- exercise it too.
    w1, s1, b1 = make_params(kp2, C1, C2, 1)
    out1 = jax.block_until_ready(conv_bn_silu(x, w1, s1, b1))
    ref1 = jax.block_until_ready(conv_bn_silu_reference(x, w1, s1, b1))
    assert out1.shape == (N, C2, H, W)
    err1 = float(jnp.max(jnp.abs(out1 - ref1)))
    assert err1 < 5e-2, f"k=1 max abs error {err1}"

    print("KERNEL_OK")
</pallas_src>

<mosaic_0001>
module attributes {stable_mosaic.version = 11 : i64} {
  func.func @_conv_bn_silu_kernel(%arg0: i32, %arg1: i32, %arg2: memref<1x608x4xbf16, #tpu.memory_space<vmem>>, %arg3: memref<9x4x8xbf16, #tpu.memory_space<vmem>>, %arg4: memref<1x8xf32, #tpu.memory_space<vmem>>, %arg5: memref<1x16x16x8xbf16, #tpu.memory_space<vmem>>, %arg6: memref<512x8xf32, #tpu.memory_space<vmem>>) attributes {dimension_semantics = [#tpu.dimension_semantics<parallel>, #tpu.dimension_semantics<arbitrary>], iteration_bounds = array<i64: 2, 1>, scalar_prefetch = 0 : i64, scratch_operands = 1 : i64, tpu.core_type = #tpu.core_type<tc>, window_params = [{transform_indices = @transform_0, window_bounds = array<i64: 1, 608, 4>}, {pipeline_mode = #tpu.pipeline_mode<synchronous>, transform_indices = @transform_1, window_bounds = array<i64: 9, 4, 8>}, {pipeline_mode = #tpu.pipeline_mode<synchronous>, transform_indices = @transform_2, window_bounds = array<i64: 1, 8>}, {transform_indices = @transform_3, window_bounds = array<i64: 1, 16, 16, 8>}]} {
    %c512_i32 = arith.constant 512 : i32
    %0 = arith.muli %arg1, %c512_i32 : i32
    %c0_i32 = arith.constant 0 : i32
    %1 = arith.addi %0, %c0_i32 : i32
    %2 = tpu.assume_multiple %1, 16 : i32
    %c0 = arith.constant 0 : index
    %3 = arith.index_cast %2 : i32 to index
    %c0_0 = arith.constant 0 : index
    %4 = vector.load %arg2[%c0, %3, %c0_0] : memref<1x608x4xbf16, #tpu.memory_space<vmem>>, vector<1x528x4xbf16>
    %5 = vector.shape_cast %4 : vector<1x528x4xbf16> to vector<528x4xbf16>
    %6 = vector.extract_strided_slice %5 {offsets = [0, 0], sizes = [512, 4], strides = [1, 1]} : vector<528x4xbf16> to vector<512x4xbf16>
    %c0_1 = arith.constant 0 : index
    %c0_2 = arith.constant 0 : index
    %c0_3 = arith.constant 0 : index
    %7 = vector.load %arg3[%c0_1, %c0_2, %c0_3] : memref<9x4x8xbf16, #tpu.memory_space<vmem>>, vector<1x4x8xbf16>
    %8 = vector.shape_cast %7 : vector<1x4x8xbf16> to vector<4x8xbf16>
    %cst = arith.constant dense<0.000000e+00> : vector<512x8xf32>
    %9 = tpu.matmul %6, %8, %cst {dimension_numbers = #tpu.dot_dimension_numbers<[1], [0], [0], [1], [0, 0, 1, 1], [], []>} : vector<512x4xbf16>, vector<4x8xbf16>, vector<512x8xf32> -> vector<512x8xf32>
    %10 = vector.extract_strided_slice %5 {offsets = [1, 0], sizes = [512, 4], strides = [1, 1]} : vector<528x4xbf16> to vector<512x4xbf16>
    %c1 = arith.constant 1 : index
    %c0_4 = arith.constant 0 : index
    %c0_5 = arith.constant 0 : index
    %11 = vector.load %arg3[%c1, %c0_4, %c0_5] : memref<9x4x8xbf16, #tpu.memory_space<vmem>>, vector<1x4x8xbf16>
    %12 = vector.shape_cast %11 : vector<1x4x8xbf16> to vector<4x8xbf16>
    %cst_6 = arith.constant dense<0.000000e+00> : vector<512x8xf32>
    %13 = tpu.matmul %10, %12, %cst_6 {dimension_numbers = #tpu.dot_dimension_numbers<[1], [0], [0], [1], [0, 0, 1, 1], [], []>} : vector<512x4xbf16>, vector<4x8xbf16>, vector<512x8xf32> -> vector<512x8xf32>
    %14 = arith.addf %9, %13 : vector<512x8xf32>
    %15 = vector.extract_strided_slice %5 {offsets = [2, 0], sizes = [512, 4], strides = [1, 1]} : vector<528x4xbf16> to vector<512x4xbf16>
    %c2 = arith.constant 2 : index
    %c0_7 = arith.constant 0 : index
    %c0_8 = arith.constant 0 : index
    %16 = vector.load %arg3[%c2, %c0_7, %c0_8] : memref<9x4x8xbf16, #tpu.memory_space<vmem>>, vector<1x4x8xbf16>
    %17 = vector.shape_cast %16 : vector<1x4x8xbf16> to vector<4x8xbf16>
    %cst_9 = arith.constant dense<0.000000e+00> : vector<512x8xf32>
    %18 = tpu.matmul %15, %17, %cst_9 {dimension_numbers = #tpu.dot_dimension_numbers<[1], [0], [0], [1], [0, 0, 1, 1], [], []>} : vector<512x4xbf16>, vector<4x8xbf16>, vector<512x8xf32> -> vector<512x8xf32>
    %19 = arith.addf %14, %18 : vector<512x8xf32>
    %c0_10 = arith.constant 0 : index
    %c0_11 = arith.constant 0 : index
    %20 = vector.load %arg6[%c0_10, %c0_11] : memref<512x8xf32, #tpu.memory_space<vmem>>, vector<512x8xf32>
    tpu.vector_store %arg6[%c0_10, %c0_11], %19 {strides = array<i32>} : memref<512x8xf32, #tpu.memory_space<vmem>>, vector<512x8xf32>,
    %c32_i32 = arith.constant 32 : i32
    %21 = arith.addi %0, %c32_i32 : i32
    %22 = tpu.assume_multiple %21, 16 : i32
    %c0_12 = arith.constant 0 : index
    %23 = arith.index_cast %22 : i32 to index
    %c0_13 = arith.constant 0 : index
    %24 = vector.load %arg2[%c0_12, %23, %c0_13] : memref<1x608x4xbf16, #tpu.memory_space<vmem>>, vector<1x528x4xbf16>
    %25 = vector.shape_cast %24 : vector<1x528x4xbf16> to vector<528x4xbf16>
    %26 = vector.extract_strided_slice %25 {offsets = [0, 0], sizes = [512, 4], strides = [1, 1]} : vector<528x4xbf16> to vector<512x4xbf16>
    %c3 = arith.constant 3 : index
    %c0_14 = arith.constant 0 : index
    %c0_15 = arith.constant 0 : index
    %27 = vector.load %arg3[%c3, %c0_14, %c0_15] : memref<9x4x8xbf16, #tpu.memory_space<vmem>>, vector<1x4x8xbf16>
    %28 = vector.shape_cast %27 : vector<1x4x8xbf16> to vector<4x8xbf16>
    %cst_16 = arith.constant dense<0.000000e+00> : vector<512x8xf32>
    %29 = tpu.matmul %26, %28, %cst_16 {dimension_numbers = #tpu.dot_dimension_numbers<[1], [0], [0], [1], [0, 0, 1, 1], [], []>} : vector<512x4xbf16>, vector<4x8xbf16>, vector<512x8xf32> -> vector<512x8xf32>
    %30 = vector.extract_strided_slice %25 {offsets = [1, 0], sizes = [512, 4], strides = [1, 1]} : vector<528x4xbf16> to vector<512x4xbf16>
    %c4 = arith.constant 4 : index
    %c0_17 = arith.constant 0 : index
    %c0_18 = arith.constant 0 : index
    %31 = vector.load %arg3[%c4, %c0_17, %c0_18] : memref<9x4x8xbf16, #tpu.memory_space<vmem>>, vector<1x4x8xbf16>
    %32 = vector.shape_cast %31 : vector<1x4x8xbf16> to vector<4x8xbf16>
    %cst_19 = arith.constant dense<0.000000e+00> : vector<512x8xf32>
    %33 = tpu.matmul %30, %32, %cst_19 {dimension_numbers = #tpu.dot_dimension_numbers<[1], [0], [0], [1], [0, 0, 1, 1], [], []>} : vector<512x4xbf16>, vector<4x8xbf16>, vector<512x8xf32> -> vector<512x8xf32>
    %34 = arith.addf %29, %33 : vector<512x8xf32>
    %35 = vector.extract_strided_slice %25 {offsets = [2, 0], sizes = [512, 4], strides = [1, 1]} : vector<528x4xbf16> to vector<512x4xbf16>
    %c5 = arith.constant 5 : index
    %c0_20 = arith.constant 0 : index
    %c0_21 = arith.constant 0 : index
    %36 = vector.load %arg3[%c5, %c0_20, %c0_21] : memref<9x4x8xbf16, #tpu.memory_space<vmem>>, vector<1x4x8xbf16>
    %37 = vector.shape_cast %36 : vector<1x4x8xbf16> to vector<4x8xbf16>
    %cst_22 = arith.constant dense<0.000000e+00> : vector<512x8xf32>
    %38 = tpu.matmul %35, %37, %cst_22 {dimension_numbers = #tpu.dot_dimension_numbers<[1], [0], [0], [1], [0, 0, 1, 1], [], []>} : vector<512x4xbf16>, vector<4x8xbf16>, vector<512x8xf32> -> vector<512x8xf32>
    %39 = arith.addf %34, %38 : vector<512x8xf32>
    %c0_23 = arith.constant 0 : index
    %c0_24 = arith.constant 0 : index
    %40 = vector.load %arg6[%c0_23, %c0_24] : memref<512x8xf32, #tpu.memory_space<vmem>>, vector<512x8xf32>
    %41 = arith.addf %40, %39 : vector<512x8xf32>
    %c0_25 = arith.constant 0 : index
    %c0_26 = arith.constant 0 : index
    %42 = vector.load %arg6[%c0_25, %c0_26] : memref<512x8xf32, #tpu.memory_space<vmem>>, vector<512x8xf32>
    tpu.vector_store %arg6[%c0_25, %c0_26], %41 {strides = array<i32>} : memref<512x8xf32, #tpu.memory_space<vmem>>, vector<512x8xf32>,
    %c64_i32 = arith.constant 64 : i32
    %43 = arith.addi %0, %c64_i32 : i32
    %44 = tpu.assume_multiple %43, 16 : i32
    %c0_27 = arith.constant 0 : index
    %45 = arith.index_cast %44 : i32 to index
    %c0_28 = arith.constant 0 : index
    %46 = vector.load %arg2[%c0_27, %45, %c0_28] : memref<1x608x4xbf16, #tpu.memory_space<vmem>>, vector<1x528x4xbf16>
    %47 = vector.shape_cast %46 : vector<1x528x4xbf16> to vector<528x4xbf16>
    %48 = vector.extract_strided_slice %47 {offsets = [0, 0], sizes = [512, 4], strides = [1, 1]} : vector<528x4xbf16> to vector<512x4xbf16>
    %c6 = arith.constant 6 : index
    %c0_29 = arith.constant 0 : index
    %c0_30 = arith.constant 0 : index
    %49 = vector.load %arg3[%c6, %c0_29, %c0_30] : memref<9x4x8xbf16, #tpu.memory_space<vmem>>, vector<1x4x8xbf16>
    %50 = vector.shape_cast %49 : vector<1x4x8xbf16> to vector<4x8xbf16>
    %cst_31 = arith.constant dense<0.000000e+00> : vector<512x8xf32>
    %51 = tpu.matmul %48, %50, %cst_31 {dimension_numbers = #tpu.dot_dimension_numbers<[1], [0], [0], [1], [0, 0, 1, 1], [], []>} : vector<512x4xbf16>, vector<4x8xbf16>, vector<512x8xf32> -> vector<512x8xf32>
    %52 = vector.extract_strided_slice %47 {offsets = [1, 0], sizes = [512, 4], strides = [1, 1]} : vector<528x4xbf16> to vector<512x4xbf16>
    %c7 = arith.constant 7 : index
    %c0_32 = arith.constant 0 : index
    %c0_33 = arith.constant 0 : index
    %53 = vector.load %arg3[%c7, %c0_32, %c0_33] : memref<9x4x8xbf16, #tpu.memory_space<vmem>>, vector<1x4x8xbf16>
    %54 = vector.shape_cast %53 : vector<1x4x8xbf16> to vector<4x8xbf16>
    %cst_34 = arith.constant dense<0.000000e+00> : vector<512x8xf32>
    %55 = tpu.matmul %52, %54, %cst_34 {dimension_numbers = #tpu.dot_dimension_numbers<[1], [0], [0], [1], [0, 0, 1, 1], [], []>} : vector<512x4xbf16>, vector<4x8xbf16>, vector<512x8xf32> -> vector<512x8xf32>
    %56 = arith.addf %51, %55 : vector<512x8xf32>
    %57 = vector.extract_strided_slice %47 {offsets = [2, 0], sizes = [512, 4], strides = [1, 1]} : vector<528x4xbf16> to vector<512x4xbf16>
    %c8 = arith.constant 8 : index
    %c0_35 = arith.constant 0 : index
    %c0_36 = arith.constant 0 : index
    %58 = vector.load %arg3[%c8, %c0_35, %c0_36] : memref<9x4x8xbf16, #tpu.memory_space<vmem>>, vector<1x4x8xbf16>
    %59 = vector.shape_cast %58 : vector<1x4x8xbf16> to vector<4x8xbf16>
    %cst_37 = arith.constant dense<0.000000e+00> : vector<512x8xf32>
    %60 = tpu.matmul %57, %59, %cst_37 {dimension_numbers = #tpu.dot_dimension_numbers<[1], [0], [0], [1], [0, 0, 1, 1], [], []>} : vector<512x4xbf16>, vector<4x8xbf16>, vector<512x8xf32> -> vector<512x8xf32>
    %61 = arith.addf %56, %60 : vector<512x8xf32>
    %c0_38 = arith.constant 0 : index
    %c0_39 = arith.constant 0 : index
    %62 = vector.load %arg6[%c0_38, %c0_39] : memref<512x8xf32, #tpu.memory_space<vmem>>, vector<512x8xf32>
    %63 = arith.addf %62, %61 : vector<512x8xf32>
    %c0_40 = arith.constant 0 : index
    %c0_41 = arith.constant 0 : index
    %64 = vector.load %arg6[%c0_40, %c0_41] : memref<512x8xf32, #tpu.memory_space<vmem>>, vector<512x8xf32>
    tpu.vector_store %arg6[%c0_40, %c0_41], %63 {strides = array<i32>} : memref<512x8xf32, #tpu.memory_space<vmem>>, vector<512x8xf32>,
    %c0_42 = arith.constant 0 : index
    %c0_43 = arith.constant 0 : index
    %65 = vector.load %arg6[%c0_42, %c0_43] : memref<512x8xf32, #tpu.memory_space<vmem>>, vector<512x8xf32>
    %66 = vector.shape_cast %65 : vector<512x8xf32> to vector<16x32x8xf32>
    %67 = vector.extract_strided_slice %66 {offsets = [0, 0, 0], sizes = [16, 16, 8], strides = [1, 1, 1]} : vector<16x32x8xf32> to vector<16x16x8xf32>
    %c0_44 = arith.constant 0 : index
    %c0_45 = arith.constant 0 : index
    %68 = vector.load %arg4[%c0_44, %c0_45] : memref<1x8xf32, #tpu.memory_space<vmem>>, vector<1x8xf32>
    %69 = vector.shape_cast %68 : vector<1x8xf32> to vector<1x1x8xf32>
    %70 = vector.broadcast %69 : vector<1x1x8xf32> to vector<16x16x8xf32>
    %71 = arith.addf %67, %70 : vector<16x16x8xf32>
    %cst_46 = arith.constant 5.000000e-01 : f32
    %72 = vector.broadcast %cst_46 : f32 to vector<16x16x8xf32>
    %73 = arith.mulf %72, %71 : vector<16x16x8xf32>
    %74 = math.tanh %73 : vector<16x16x8xf32>
    %cst_47 = arith.constant 1.000000e+00 : f32
    %75 = vector.broadcast %cst_47 : f32 to vector<16x16x8xf32>
    %76 = arith.addf %75, %74 : vector<16x16x8xf32>
    %cst_48 = arith.constant 5.000000e-01 : f32
    %77 = vector.broadcast %cst_48 : f32 to vector<16x16x8xf32>
    %78 = arith.mulf %77, %76 : vector<16x16x8xf32>
    %79 = arith.mulf %71, %78 : vector<16x16x8xf32>
    %80 = arith.truncf %79 : vector<16x16x8xf32> to vector<16x16x8xbf16>
    %c0_49 = arith.constant 0 : index
    %c0_50 = arith.constant 0 : index
    %c0_51 = arith.constant 0 : index
    %c0_52 = arith.constant 0 : index
    %81 = vector.load %arg5[%c0_49, %c0_50, %c0_51, %c0_52] : memref<1x16x16x8xbf16, #tpu.memory_space<vmem>>, vector<1x16x16x8xbf16>
    %82 = vector.shape_cast %81 : vector<1x16x16x8xbf16> to vector<16x16x8xbf16>
    %83 = vector.shape_cast %80 : vector<16x16x8xbf16> to vector<1x16x16x8xbf16>
    tpu.vector_store %arg5[%c0_49, %c0_50, %c0_51, %c0_52], %83 {strides = array<i32>} : memref<1x16x16x8xbf16, #tpu.memory_space<vmem>>, vector<1x16x16x8xbf16>,
    return
  }
  func.func @transform_0(%arg0: i32, %arg1: i32) -> (i32, i32, i32) {
    %c0_i32 = arith.constant 0 : i32
    %c0_i32_0 = arith.constant 0 : i32
    %c0_i32_1 = arith.constant 0 : i32
    return %arg0, %c0_i32, %c0_i32_0 : i32, i32, i32
  }
  func.func @transform_1(%arg0: i32, %arg1: i32) -> (i32, i32, i32) {
    %c0_i32 = arith.constant 0 : i32
    %c0_i32_0 = arith.constant 0 : i32
    %c0_i32_1 = arith.constant 0 : i32
    %c0_i32_2 = arith.constant 0 : i32
    return %c0_i32, %c0_i32_0, %c0_i32_1 : i32, i32, i32
  }
  func.func @transform_2(%arg0: i32, %arg1: i32) -> (i32, i32) {
    %c0_i32 = arith.constant 0 : i32
    %c0_i32_0 = arith.constant 0 : i32
    %c0_i32_1 = arith.constant 0 : i32
    return %c0_i32, %c0_i32_0 : i32, i32
  }
  func.func @transform_3(%arg0: i32, %arg1: i32) -> (i32, i32, i32, i32) {
    %c0_i32 = arith.constant 0 : i32
    %c0_i32_0 = arith.constant 0 : i32
    %c0_i32_1 = arith.constant 0 : i32
    return %arg0, %arg1, %c0_i32, %c0_i32_0 : i32, i32, i32, i32
  }
}

</mosaic_0001>

<bundles_post_ra>
// kernel: tpu_custom_call.1
= control target key start
LH: loop header
LB: loop body
LE: loop exit
PB: predicated region body
PF: predicated region fallthrough
CT: control target
= control target key end

     0   :  { %s8196_s12 = smov 0   ;;  %s8198_s13 = smov 0   ;;  %s10339_s0 = inlined_call_operand.vmem [shape: bf16[2,608,4], index: 0, kind: input, shape index: {}]   ;;  %s10340_s1 = inlined_call_operand.vmem [shape: bf16[9,4,8], index: 1, kind: input, shape index: {}]   ;;  %s10341_s2 = inlined_call_operand.vmem [shape: f32[1,8], index: 2, kind: input, shape index: {}]   ;;  %s10342_s3 = inlined_call_operand.vmem [shape: bf16[2,16,16,8], index: 3, kind: output, shape index: {}]  }
   0x1   :  { %s8200_s14 = smov 0  }
   0x2 LB: > { %s25_s15 = sadd.s32 1, %s8170_s13  ;;  %p6418_p0 = scmp.ge.s32.totalorder %s8174_s14, 1  ;;  %s8174_s14 = sphi %s8200_s14, %s13_s14   ;;  %s8170_s13 = sphi %s8198_s13, %s10515_s13   ;;  %s8166_s12 = sphi %s8196_s12, %s10514_s12  }
   0x3   : > { %p27_p1 = scmp.ge.s32.totalorder %s25_s15, 2  ;;  %p151_p2 = scmp.lt.s32.totalorder %s8174_s14, 3 }
   0x5   : > { %s10517_s15 = smov (%p27_p1, %s25_s15), 0  ;;  %p152_p3 = pnand %p6418_p0, %p151_p2 }
   0x7   : > { %155 = sbr.rel (%p152_p3) target bundleno = 838 (0x346), region = 32 }
   0xc   : > { %v6422_v0 = vld [vmem:[%s10340_s1 + $0x2] sm:$0x3]  ;;  %vm791_vm0 = vcmask 1041408   ;;  %p180_p4 = scmp.lt.s32.totalorder %s8166_s12, 1  ;;  %v267_v2 = vld [vmem:[%s10340_s1] sm:$0x3] }
   0xd   : > { %7909 = vmatprep.subr.msk.bf16.mxu1 %vm791_vm0, %v6422_v0  ;;  %7908 = vmatprep.subr.msk.bf16.mxu0 %vm791_vm0, %v6422_v0  ;;  %v793_v1 = vsel %vm791_vm0, %v6422_v0, 0  ;;  %v6520_v3 = vld [vmem:[%s10340_s1 + $0x4] sm:$0x3]  ;;  %vm433_vm1 = vsmask.f32 7424  ;;  %vm694_vm2 = vcmask 31744  }
   0xe   : > { %7907 = vmatpush3.bf16.msra.mxu1 %v793_v1  ;;  %7313 = vmatpush3.bf16.msra.mxu0 %v793_v1  ;;  %s10519_s12 = smov (!%p180_p4, %s8166_s12), 1  ;;  %v1149_v12 = vsel %vm791_vm0, %v267_v2, 0  ;;  %v1605_v13 = vsel %vm791_vm0, %v6520_v3, 0  ;;  %v8276_v33 = vld [vmem:[%s10340_s1 + $0x6] sm:$0x3]  ;;  %vm1442_vm3 = vcmask 1046528  }
   0xf   : > { %7910 = vmatprep.subr.msk.bf16.mxu1 %vm791_vm0, %v267_v2  ;;  %7911 = vmatprep.subr.msk.bf16.mxu0 %vm791_vm0, %v6520_v3  ;;  %s7918_s22 = smul.u32 304, %s10519_s12  ;;  %v8296_v44 = vld [vmem:[%s10340_s1 + $0x8] sm:$0x3]  ;;  %vm1960_vm4 = vcmask 64512   ;;  %s6982_s17 = sshll.u32 %s10519_s12, 7  ;;  %vm6288_vm5 = vcmask 60416  }
  0x10   : > { %s10049_s19 = scalar_lea.vmem %s10342_s3, %s6982_s17 }
  0x11   : > { %s8234_s25 = scalar_lea.vmem %s10339_s0, %s7918_s22 }
  0x12   : > { %v8237_v4 = vld [vmem:[%s8234_s25] sm:$0xff]   ;;  %v8240_v5 = vld [vmem:[%s8234_s25 + $0x8] sm:$0xff]   ;;  %v8255_v16 = vld [vmem:[%s8234_s25 + $0x10] sm:$0xff]  }
  0x13   : > { %v435_v6 = vshrl.u32 %v8237_v4, 16  ;;  %v437_v7 = vshll.u32 %v8237_v4, 16  ;;  %v442_v8 = vshll.u32 %v8240_v5, 16  ;;  %v446_v9 = vshrl.u32 %v8240_v5, 16  ;;  %v8247_v10 = vld [vmem:[%s8234_s25 + $0x80] sm:$0xff]   ;;  %v8250_v11 = vld [vmem:[%s8234_s25 + $0x88] sm:$0xff]  }
  0x14   : > { %v8258_v17 = vld [vmem:[%s8234_s25 + $0x90] sm:$0xff]   ;;  %v562_v18 = vshll.u32 %v8247_v10, 16  ;;  %v566_v19 = vshrl.u32 %v8247_v10, 16  ;;  %v570_v20 = vshll.u32 %v8250_v11, 16  ;;  %v574_v21 = vshrl.u32 %v8250_v11, 16  ;;  %v8269_v28 = vld [vmem:[%s8234_s25 + $0x18] sm:$0xff]  }
  0x15   : > { %v439_v14 = vrot.slane %v437_v7, 1  ;;  %v444_v15 = vrot.slane %v442_v8, 1  ;;  %v450_v24 = vshll.u32 %v8255_v16, 16  ;;  %v578_v25 = vshll.u32 %v8258_v17, 16  ;;  %v8282_v37 = vld [vmem:[%s8234_s25 + $0x98] sm:$0xff]   ;;  %v8286_v39 = vld [vmem:[%s8234_s25 + $0x20] sm:$0xff]  }
  0x16   : > { %v8266_v26 = vrot.slane %v562_v18, 1  ;;  %v572_v27 = vrot.slane %v570_v20, 1  ;;  %v454_v29 = vshrl.u32 %v8255_v16, 16  ;;  %v458_v36 = vshll.u32 %v8269_v28, 16  ;;  %v8291_v43 = vld [vmem:[%s8234_s25 + $0xa0] sm:$0xff]   ;;  %v8302_v49 = vld [vmem:[%s8234_s25 + $0x28] sm:$0xff]  }
  0x17   : > { %v440_v22 = vor.u32 %v439_v14, %v435_v6  ;;  %v448_v23 = vor.u32 %v446_v9, %v444_v15  ;;  %v452_v31 = vrot.slane %v450_v24, 1  ;;  %v580_v32 = vrot.slane %v578_v25, 1  ;;  %v8317_v61 = vld [vmem:[%s8234_s25 + $0xa8] sm:$0xff]   ;;  %v8321_v63 = vld [vmem:[%s8234_s25 + $0x30] sm:$0xff]   ;;  %v8339_v20 = vld [vmem:[%s8234_s25 + $0x38] sm:$0xff]  }
  0x18   : > { %v568_v34 = vor.u32 %v566_v19, %v8266_v26  ;;  %v576_v35 = vor.u32 %v574_v21, %v572_v27  ;;  %v582_v38 = vshrl.u32 %v8258_v17, 16  ;;  %v462_v42 = vshrl.u32 %v8269_v28, 16  ;;  %v8329_v8 = vld [vmem:[%s8234_s25 + $0xb0] sm:$0xff]   ;;  %v8342_v21 = vld [vmem:[%s8234_s25 + $0xb8] sm:$0xff]  }
  0x19   : > { %v445_v30 = vsel %vm433_vm1, %v440_v22, %v444_v15  ;;  %v453_v40 = vsel %vm433_vm1, %v448_v23, %v452_v31  ;;  %v456_v41 = vor.u32 %v454_v29, %v452_v31  ;;  %v460_v47 = vrot.slane %v458_v36, 1 }
  0x1a   : > { %7314 = vmatprep.mubr.msk.bf16.mxu0 %vm694_vm2, %v445_v30  ;;  %v573_v45 = vsel %vm433_vm1, %v568_v34, %v572_v27  ;;  %v581_v46 = vsel %vm433_vm1, %v576_v35, %v580_v32  ;;  %v584_v48 = vor.u32 %v582_v38, %v580_v32  ;;  %v586_v50 = vshll.u32 %v8282_v37, 16  ;;  %v8351_v32 = vld [vmem:[%s8234_s25 + $0x40] sm:$0xff]  }
  0x1b   : > { %7315 = vmatmul.mubr.msk.bf16.vlgmr.msra.gmra.mxu0 %vm694_vm2, %v453_v40  ;;  %7346 = vmatprep.mubr.msk.bf16.mxu1 %vm694_vm2, %v573_v45  ;;  %v466_v51 = vshll.u32 %v8286_v39, 16  ;;  %v590_v52 = vshrl.u32 %v8282_v37, 16  ;;  %v594_v53 = vshll.u32 %v8291_v43, 16  ;;  %v461_v54 = vsel %vm433_vm1, %v456_v41, %v460_v47  ;;  %v8357_v40 = vld [vmem:[%s8234_s25 + $0xc0] sm:$0xff]  }
  0x1c   : > { %7445 = vmatpush3.bf16.msra.mxu0 %v1605_v13  ;;  %7347 = vmatmul.mubr.msk.bf16.vlgmr.msra.gmra.mxu1 %vm694_vm2, %v581_v46  ;;  %v464_v55 = vor.u32 %v462_v42, %v460_v47  ;;  %v470_v56 = vshrl.u32 %v8286_v39, 16  ;;  %v474_v57 = vshll.u32 %v8302_v49, 16  ;;  %v588_v58 = vrot.slane %v586_v50, 1  ;;  %v8361_v46 = vld [vmem:[%s8234_s25 + $0x48] sm:$0xff]  }
  0x1d   : > { %7913 = vmatprep.subr.msk.bf16.mxu0 %vm791_vm0, %v8276_v33  ;;  %7379 = vmatpush3.bf16.msra.mxu1 %v1149_v12  ;;  %v468_v59 = vrot.slane %v466_v51, 1  ;;  %v596_v60 = vrot.slane %v594_v53, 1  ;;  %v598_v62 = vshrl.u32 %v8291_v43, 16  ;;  %v478_v1 = vshrl.u32 %v8302_v49, 16  ;;  %v8366_v50 = vld [vmem:[%s8234_s25 + $0xc8] sm:$0xff]  }
  0x1e   : > { %7318 = vmatprep.mubr.msk.bf16.mxu0 %vm694_vm2, %v461_v54  ;;  %v476_v0 = vrot.slane %v474_v57, 1  ;;  %7912 = vmatprep.subr.msk.bf16.mxu1 %vm791_vm0, %v8296_v44  ;;  %v589_v2 = vsel %vm433_vm1, %v584_v48, %v588_v58  ;;  %v592_v6 = vor.u32 %v590_v52, %v588_v58  ;;  %v602_v12 = vshll.u32 %v8317_v61, 16  ;;  %v8375_v58 = vld [vmem:[%s8234_s25 + $0x50] sm:$0xff]  }
  0x1f   : > { %v469_v3 = vsel %vm433_vm1, %v464_v55, %v468_v59  ;;  %v472_v7 = vor.u32 %v470_v56, %v468_v59  ;;  %7350 = vmatprep.mubr.msk.bf16.mxu1 %vm694_vm2, %v589_v2  ;;  %v600_v9 = vor.u32 %v598_v62, %v596_v60  ;;  %v482_v13 = vshll.u32 %v8321_v63, 16 }
  0x20   : > { %v597_v14 = vsel %vm433_vm1, %v592_v6, %v596_v60  ;;  %v606_v18 = vshrl.u32 %v8317_v61, 16  ;;  %v610_v19 = vshll.u32 %v8329_v8, 16  ;;  %v604_v22 = vrot.slane %v602_v12, 1 }
  0x21   : > { %v477_v15 = vsel %vm433_vm1, %v472_v7, %v476_v0  ;;  %v484_v23 = vrot.slane %v482_v13, 1  ;;  %v486_v24 = vshrl.u32 %v8321_v63, 16  ;;  %v614_v25 = vshrl.u32 %v8329_v8, 16  ;;  %v8387_v7 = vld [vmem:[%s8234_s25 + $0x58] sm:$0xff]  }
  0x22   : > { %v480_v27 = vor.u32 %v478_v1, %v476_v0  ;;  %v612_v29 = vrot.slane %v610_v19, 1  ;;  %v490_v30 = vshll.u32 %v8339_v20, 16  ;;  %v618_v31 = vshll.u32 %v8342_v21, 16  ;;  %v8383_v1 = vld [vmem:[%s8234_s25 + $0xd0] sm:$0xff]  }
  0x23   : > { %7319 = vmatmul.mubr.msk.bf16.gmra.mxu0 %vm694_vm2, %v469_v3  ;;  %v605_v34 = vsel %vm433_vm1, %v600_v9, %v604_v22  ;;  %v488_v35 = vor.u32 %v486_v24, %v484_v23  ;;  %v608_v36 = vor.u32 %v606_v18, %v604_v22  ;;  %v498_v45 = vshll.u32 %v8351_v32, 16 }
  0x24   : > { %7322 = vmatprep.mubr.msk.bf16.mxu0 %vm694_vm2, %v477_v15  ;;  %7351 = vmatmul.mubr.msk.bf16.gmra.mxu1 %vm694_vm2, %v597_v14  ;;  %v492_v38 = vrot.slane %v490_v30, 1  ;;  %v616_v41 = vor.u32 %v614_v25, %v612_v29  ;;  %v620_v42 = vrot.slane %v618_v31, 1  ;;  %v485_v47 = vsel %vm433_vm1, %v480_v27, %v484_v23  ;;  %v8392_v15 = vld [vmem:[%s8234_s25 + $0xd8] sm:$0xff]  }
  0x25   : > { %7354 = vmatprep.mubr.msk.bf16.mxu1 %vm694_vm2, %v605_v34  ;;  %v494_v48 = vshrl.u32 %v8339_v20, 16  ;;  %v626_v52 = vshll.u32 %v8357_v40, 16  ;;  %v502_v53 = vshrl.u32 %v8351_v32, 16  ;;  %v506_v54 = vshll.u32 %v8361_v46, 16 }
  0x26   : > { %v493_v51 = vsel %vm433_vm1, %v488_v35, %v492_v38  ;;  %v613_v55 = vsel %vm433_vm1, %v608_v36, %v612_v29  ;;  %v500_v56 = vrot.slane %v498_v45, 1  ;;  %v622_v57 = vshrl.u32 %v8342_v21, 16  ;;  %v8407_v36 = vld [vmem:[%s8234_s25 + $0x60] sm:$0xff]  }
  0x27   : > { %v621_v59 = vsel %vm433_vm1, %v616_v41, %v620_v42  ;;  %v630_v60 = vshrl.u32 %v8357_v40, 16  ;;  %v634_v62 = vshll.u32 %v8366_v50, 16  ;;  %v496_v0 = vor.u32 %v494_v48, %v492_v38  ;;  %v8411_v41 = vld [vmem:[%s8234_s25 + $0xe0] sm:$0xff]   ;;  %v8415_v48 = vld [vmem:[%s8234_s25 + $0x68] sm:$0xff]  }
  0x28   : > { %v628_v2 = vrot.slane %v626_v52, 1  ;;  %v504_v3 = vor.u32 %v502_v53, %v500_v56  ;;  %v508_v6 = vrot.slane %v506_v54, 1  ;;  %v624_v9 = vor.u32 %v622_v57, %v620_v42  ;;  %v8419_v52 = vld [vmem:[%s8234_s25 + $0xe8] sm:$0xff]  }
  0x29   : > { %v514_v12 = vshll.u32 %v8375_v58, 16  ;;  %v636_v14 = vrot.slane %v634_v62, 1  ;;  %v501_v18 = vsel %vm433_vm1, %v496_v0, %v500_v56  ;;  %v510_v19 = vshrl.u32 %v8361_v46, 16 }
  0x2a   : > { %v632_v13 = vor.u32 %v630_v60, %v628_v2  ;;  %v642_v22 = vshll.u32 %v8383_v1, 16  ;;  %v509_v23 = vsel %vm433_vm1, %v504_v3, %v508_v6  ;;  %v518_v24 = vshrl.u32 %v8375_v58, 16  ;;  %v8426_v60 = vld [vmem:[%s8234_s25 + $0x70] sm:$0xff]  }
  0x2b   : > { %7323 = vmatmul.mubr.msk.bf16.gmra.mxu0 %vm694_vm2, %v485_v47  ;;  %v522_v25 = vshll.u32 %v8387_v7, 16  ;;  %v629_v27 = vsel %vm433_vm1, %v624_v9, %v628_v2  ;;  %v516_v29 = vrot.slane %v514_v12, 1  ;;  %v638_v30 = vshrl.u32 %v8366_v50, 16 }
  0x2c   : > { %7326 = vmatprep.mubr.msk.bf16.mxu0 %vm694_vm2, %v493_v51  ;;  %7355 = vmatmul.mubr.msk.bf16.gmra.mxu1 %vm694_vm2, %v613_v55  ;;  %v646_v31 = vshrl.u32 %v8383_v1, 16  ;;  %v637_v34 = vsel %vm433_vm1, %v632_v13, %v636_v14  ;;  %v650_v35 = vshll.u32 %v8392_v15, 16  ;;  %v512_v38 = vor.u32 %v510_v19, %v508_v6 }
  0x2d   : > { %7358 = vmatprep.mubr.msk.bf16.mxu1 %vm694_vm2, %v621_v59  ;;  %v644_v42 = vrot.slane %v642_v22, 1  ;;  %v520_v45 = vor.u32 %v518_v24, %v516_v29  ;;  %v524_v47 = vrot.slane %v522_v25, 1  ;;  %v640_v51 = vor.u32 %v638_v30, %v636_v14  ;;  %v8441_v25 = vld [vmem:[%s8234_s25 + $0xf0] sm:$0xff]  }
  0x2e   : > { %v652_v54 = vrot.slane %v650_v35, 1  ;;  %v526_v55 = vshrl.u32 %v8387_v7, 16  ;;  %v530_v56 = vshll.u32 %v8407_v36, 16  ;;  %v517_v57 = vsel %vm433_vm1, %v512_v38, %v516_v29 }
  0x2f   : > { %v648_v53 = vor.u32 %v646_v31, %v644_v42  ;;  %v658_v59 = vshll.u32 %v8411_v41, 16  ;;  %v525_v62 = vsel %vm433_vm1, %v520_v45, %v524_v47  ;;  %v534_v0 = vshrl.u32 %v8407_v36, 16  ;;  %v8448_v31 = vld [vmem:[%s8234_s25 + $0xf8] sm:$0xff]  }
  0x30   : > { %v538_v2 = vshll.u32 %v8415_v48, 16  ;;  %v645_v3 = vsel %vm433_vm1, %v640_v51, %v644_v42  ;;  %v654_v6 = vshrl.u32 %v8392_v15, 16  ;;  %v666_v9 = vshll.u32 %v8419_v52, 16 }
  0x31   : > { %v653_v12 = vsel %vm433_vm1, %v648_v53, %v652_v54  ;;  %v532_v13 = vrot.slane %v530_v56, 1  ;;  %v662_v14 = vshrl.u32 %v8411_v41, 16  ;;  %v546_v19 = vshll.u32 %v8426_v60, 16 }
  0x32   : > { %v660_v22 = vrot.slane %v658_v59, 1  ;;  %v540_v24 = vrot.slane %v538_v2, 1  ;;  %v656_v29 = vor.u32 %v654_v6, %v652_v54  ;;  %v668_v30 = vrot.slane %v666_v9, 1  ;;  %v8465_v6 = vld [vmem:[%s8234_s25 + $0x100] ss:$0 sps:$4 sm:$0xff]  }
  0x33   : > { %7327 = vmatmul.mubr.msk.bf16.gmra.mxu0 %vm694_vm2, %v501_v18  ;;  %v528_v18 = vor.u32 %v526_v55, %v524_v47  ;;  %v542_v38 = vshrl.u32 %v8415_v48, 16  ;;  %v548_v42 = vrot.slane %v546_v19, 1  ;;  %v670_v45 = vshrl.u32 %v8419_v52, 16 }
  0x34   : > { %7330 = vmatprep.mubr.msk.bf16.mxu0 %vm694_vm2, %v509_v23  ;;  %7359 = vmatmul.mubr.msk.bf16.gmra.mxu1 %vm694_vm2, %v629_v27  ;;  %v536_v23 = vor.u32 %v534_v0, %v532_v13  ;;  %v8444_v27 = vld [vmem:[%s8234_s25 + $0x78] sm:$0xff]   ;;  %v674_v51 = vshll.u32 %v8441_v25, 16  ;;  %v550_v53 = vshrl.u32 %v8426_v60, 16  ;;  %v661_v55 = vsel %vm433_vm1, %v656_v29, %v660_v22 }
  0x35   : > { %7362 = vmatprep.mubr.msk.bf16.mxu1 %vm694_vm2, %v637_v34  ;;  %v664_v34 = vor.u32 %v662_v14, %v660_v22  ;;  %v533_v35 = vsel %vm433_vm1, %v528_v18, %v532_v13  ;;  %v554_v54 = vshll.u32 %v8444_v27, 16  ;;  %v678_v56 = vshrl.u32 %v8441_v25, 16 }
  0x36   : > { %v541_v47 = vsel %vm433_vm1, %v536_v23, %v540_v24  ;;  %v676_v0 = vrot.slane %v674_v51, 1  ;;  %v552_v2 = vor.u32 %v550_v53, %v548_v42  ;;  %v672_v9 = vor.u32 %v670_v45, %v668_v30 }
  0x37   : > { %v669_v59 = vsel %vm433_vm1, %v664_v34, %v668_v30  ;;  %v558_v18 = vshrl.u32 %v8444_v27, 16  ;;  %v686_v23 = vshrl.u32 %v8448_v31, 16  ;;  %v1443_v34 = vrot.slane %v8237_v4, 1 }
  0x38   : > { %v680_v13 = vor.u32 %v678_v56, %v676_v0  ;;  %v677_v22 = vsel %vm433_vm1, %v672_v9, %v676_v0  ;;  %v1446_v53 = vrot.slane %v8255_v16, 1  ;;  %v1456_v0 = vrot.slane %v8339_v20, 1 }
  0x39   : > { %v1458_v9 = vrot.slane %v8351_v32, 1 }
  0x3b   : > { %7331 = vmatmul.mubr.msk.bf16.gmra.mxu0 %vm694_vm2, %v517_v57  ;;  %v682_v57 = vshll.u32 %v8448_v31, 16 }
  0x3c   : > { %7334 = vmatprep.mubr.msk.bf16.mxu0 %vm694_vm2, %v525_v62  ;;  %7363 = vmatmul.mubr.msk.bf16.gmra.mxu1 %vm694_vm2, %v645_v3  ;;  %v544_v62 = vor.u32 %v542_v38, %v540_v24  ;;  %v556_v3 = vrot.slane %v554_v54, 1  ;;  %v690_v24 = vshll.u32 %v8465_v6, 16  ;;  %v1448_v54 = vrot.slane %v8269_v28, 1 }
  0x3d   : > { %7366 = vmatprep.mubr.msk.bf16.mxu1 %vm694_vm2, %v653_v12  ;;  %v684_v12 = vrot.slane %v682_v57, 1  ;;  %v2619_v57 = vsel %vm791_vm0, %v8296_v44, 0  ;;  %v8514_v44 = vld [vmem:[%s10340_s1 + $0xe] sm:$0x3] }
  0x3e   : > { %v549_v14 = vsel %vm433_vm1, %v544_v62, %v548_v42  ;;  %v557_v19 = vsel %vm433_vm1, %v552_v2, %v556_v3  ;;  %v560_v30 = vor.u32 %v558_v18, %v556_v3  ;;  %v692_v42 = vrot.slane %v690_v24, 1 }
  0x3f   : > { %v685_v29 = vsel %vm433_vm1, %v680_v13, %v684_v12  ;;  %v688_v38 = vor.u32 %v686_v23, %v684_v12  ;;  %v1449_v56 = vsel %vm1442_vm3, %v1446_v53, %v1448_v54  ;;  %v1460_v12 = vrot.slane %v8361_v46, 1 }
  0x40   : > { %v565_v45 = vsel %vm433_vm1, %v560_v30, %v8266_v26  ;;  %v2975_v26 = vsel %vm791_vm0, %v8276_v33, 0  ;;  %v1452_v33 = vrot.slane %v8302_v49, 1  ;;  %v1462_v13 = vrot.slane %v8375_v58, 1 }
  0x41   : > { %v693_v51 = vsel %vm433_vm1, %v688_v38, %v692_v42  ;;  %v1466_v18 = vrot.slane %v8407_v36, 1  ;;  %v1474_v24 = vrot.slane %v8247_v10, 1  ;;  %v1478_v30 = vrot.slane %v8258_v17, 1 }
  0x42   : > { %v1486_v42 = vrot.slane %v8329_v8, 1 }
  0x43   : > { %7335 = vmatmul.mubr.msk.bf16.gmra.mxu0 %vm694_vm2, %v533_v35  ;;  %v1444_v35 = vrot.slane %v8240_v5, 1 }
  0x44   : > { %7338 = vmatprep.mubr.msk.bf16.mxu0 %vm694_vm2, %v541_v47  ;;  %7367 = vmatmul.mubr.msk.bf16.gmra.mxu1 %vm694_vm2, %v661_v55 }
  0x45   : > { %7370 = vmatprep.mubr.msk.bf16.mxu1 %vm694_vm2, %v669_v59  ;;  %v1445_v47 = vsel %vm1442_vm3, %v1443_v34, %v1444_v35  ;;  %v1447_v55 = vsel %vm1442_vm3, %v1444_v35, %v1446_v53  ;;  %v1450_v59 = vrot.slane %v8286_v39, 1  ;;  %v1482_v35 = vrot.slane %v8291_v43, 1 }
  0x46   : > { %v1494_v53 = vrot.slane %v8383_v1, 1 }
  0x47   : > { %v1451_v62 = vsel %vm1442_vm3, %v1448_v54, %v1450_v59 }
  0x4b   : > { %7339 = vmatmul.mubr.msk.bf16.gmra.mxu0 %vm694_vm2, %v549_v14  ;;  %v1464_v14 = vrot.slane %v8387_v7, 1 }
  0x4c   : > { %7342 = vmatprep.mubr.msk.bf16.mxu0 %vm694_vm2, %v557_v19  ;;  %7371 = vmatmul.mubr.msk.bf16.gmra.mxu1 %vm694_vm2, %v677_v22  ;;  %v1468_v19 = vrot.slane %v8415_v48, 1  ;;  %v1470_v22 = vrot.slane %v8426_v60, 1 }
  0x4d   : > { %7374 = vmatprep.mubr.msk.bf16.mxu1 %vm694_vm2, %v685_v29 }
  0x53   : > { %7343 = vmatmul.mubr.msk.bf16.gmra.mxu0 %vm694_vm2, %v565_v45 }
  0x54   : > { %7446 = vmatprep.mubr.msk.bf16.mxu0 %vm694_vm2, %v1445_v47  ;;  %7375 = vmatmul.mubr.msk.bf16.gmra.mxu1 %vm694_vm2, %v693_v51  ;;  %v1490_v47 = vrot.slane %v8357_v40, 1 }
  0x55   : > { %7380 = vmatprep.mubr.msk.bf16.mxu1 %vm694_vm2, %v8237_v4  ;;  %v8504_v4 = vld [vmem:[%s10340_s1 + $0xa] sm:$0x3] }
  0x5b   : > { %7447 = vmatmul.mubr.msk.bf16.vlgmr.msra.gmra.mxu0 %vm694_vm2, %v1447_v55  ;;  %v1498_v55 = vrot.slane %v8411_v41, 1 }
  0x5c   : > { %7577 = vmatpush3.bf16.msra.mxu0 %v2975_v26  ;;  %7450 = vmatprep.mubr.msk.bf16.mxu0 %vm694_vm2, %v1449_v56  ;;  %v8644_v56 = vld [vmem:[%s8234_s25 + $0x10] sm:$0xff]  }
  0x5d   : > { %7381 = vmatmul.mubr.msk.bf16.vlgmr.msra.gmra.mxu1 %vm694_vm2, %v8240_v5  ;;  %7915 = vmatprep.subr.msk.bf16.mxu0 %vm791_vm0, %v8514_v44  ;;  %v1453_v5 = vsel %vm1442_vm3, %v1450_v59, %v1452_v33  ;;  %v2265_v59 = vshll.u32 %v8644_v56, 16 }
  0x5e   : > { %7511 = vmatpush3.bf16.msra.mxu1 %v2619_v57  ;;  %7384 = vmatprep.mubr.msk.bf16.mxu1 %vm694_vm2, %v8255_v16  ;;  %v1454_v16 = vrot.slane %v8321_v63, 1  ;;  %v1502_v57 = vrot.slane %v8441_v25, 1 }
  0x5f   : > { %7914 = vmatprep.subr.msk.bf16.mxu1 %vm791_vm0, %v8504_v4 }
  0x60   : > { %v1455_v2 = vsel %vm1442_vm3, %v1452_v33, %v1454_v16  ;;  %v1457_v3 = vsel %vm1442_vm3, %v1454_v16, %v1456_v0  ;;  %v2267_v16 = vrot.slane %v2265_v59, 1 }
  0x63   : > { %7451 = vmatmul.mubr.msk.bf16.gmra.mxu0 %vm694_vm2, %v1451_v62 }
  0x64   : > { %7454 = vmatprep.mubr.msk.bf16.mxu0 %vm694_vm2, %v1453_v5  ;;  %v2263_v5 = vshrl.u32 %v8644_v56, 16 }
  0x65   : > { %7385 = vmatmul.mubr.msk.bf16.gmra.mxu1 %vm694_vm2, %v8269_v28  ;;  %v1459_v28 = vsel %vm1442_vm3, %v1456_v0, %v1458_v9  ;;  %v8667_v0 = vld [vmem:[%s8234_s25 + $0x20] sm:$0xff]  }
  0x66   : > { %7388 = vmatprep.mubr.msk.bf16.mxu1 %vm694_vm2, %v8286_v39  ;;  %v1461_v39 = vsel %vm1442_vm3, %v1458_v9, %v1460_v12  ;;  %v8672_v9 = vld [vmem:[%s8234_s25 + $0x28] sm:$0xff]  }
  0x6b   : > { %7455 = vmatmul.mubr.msk.bf16.gmra.mxu0 %vm694_vm2, %v1455_v2  ;;  %v2268_v2 = vor.u32 %v2267_v16, %v2263_v5 }
  0x6c   : > { %7458 = vmatprep.mubr.msk.bf16.mxu0 %vm694_vm2, %v1457_v3 }
  0x6d   : > { %7389 = vmatmul.mubr.msk.bf16.gmra.mxu1 %vm694_vm2, %v8302_v49  ;;  %v1463_v49 = vsel %vm1442_vm3, %v1460_v12, %v1462_v13 }
  0x6e   : > { %7392 = vmatprep.mubr.msk.bf16.mxu1 %vm694_vm2, %v8321_v63  ;;  %v1465_v63 = vsel %vm1442_vm3, %v1462_v13, %v1464_v14  ;;  %v2286_v13 = vshll.u32 %v8672_v9, 16 }
  0x73   : > { %7459 = vmatmul.mubr.msk.bf16.gmra.mxu0 %vm694_vm2, %v1459_v28  ;;  %v2278_v28 = vshll.u32 %v8667_v0, 16 }
  0x74   : > { %7462 = vmatprep.mubr.msk.bf16.mxu0 %vm694_vm2, %v1461_v39  ;;  %v2282_v39 = vshrl.u32 %v8667_v0, 16 }
  0x75   : > { %7393 = vmatmul.mubr.msk.bf16.gmra.mxu1 %vm694_vm2, %v8339_v20  ;;  %v1467_v20 = vsel %vm1442_vm3, %v1464_v14, %v1466_v18  ;;  %v7980_v14 = vld [vmem:[%s8234_s25 + $0x30] sm:$0xff]  }
  0x76   : > { %7396 = vmatprep.mubr.msk.bf16.mxu1 %vm694_vm2, %v8351_v32  ;;  %v1469_v32 = vsel %vm1442_vm3, %v1466_v18, %v1468_v19  ;;  %v2288_v18 = vrot.slane %v2286_v13, 1 }
  0x7b   : > { %7463 = vmatmul.mubr.msk.bf16.gmra.mxu0 %vm694_vm2, %v1463_v49 }
  0x7c   : > { %7466 = vmatprep.mubr.msk.bf16.mxu0 %vm694_vm2, %v1465_v63 }
  0x7d   : > { %7397 = vmatmul.mubr.msk.bf16.gmra.mxu1 %vm694_vm2, %v8361_v46  ;;  %v1472_v46 = vrot.slane %v8444_v27, 1 }
  0x7e   : > { %7400 = vmatprep.mubr.msk.bf16.mxu1 %vm694_vm2, %v8375_v58  ;;  %v1471_v58 = vsel %vm1442_vm3, %v1468_v19, %v1470_v22  ;;  %v7981_v19 = vld [vmem:[%s8234_s25 + $0x38] sm:$0xff]  }
  0x7f   : > { %v1473_v23 = vsel %vm1442_vm3, %v1470_v22, %v1472_v46 }
  0x83   : > { %7467 = vmatmul.mubr.msk.bf16.gmra.mxu0 %vm694_vm2, %v1467_v20  ;;  %v4571_v20 = vsel %vm791_vm0, %v8514_v44, 0 }
  0x84   : > { %7470 = vmatprep.mubr.msk.bf16.mxu0 %vm694_vm2, %v1469_v32  ;;  %v2294_v32 = vshll.u32 %v7980_v14, 16 }
  0x85   : > { %7401 = vmatmul.mubr.msk.bf16.gmra.mxu1 %vm694_vm2, %v8387_v7  ;;  %v1476_v7 = vrot.slane %v8250_v11, 1 }
  0x86   : > { %7404 = vmatprep.mubr.msk.bf16.mxu1 %vm694_vm2, %v8407_v36  ;;  %v1475_v36 = vsel %vm1442_vm3, %v1472_v46, %v1474_v24  ;;  %v2290_v46 = vshrl.u32 %v8672_v9, 16 }
  0x87   : > { %v1477_v29 = vsel %vm1442_vm3, %v1474_v24, %v1476_v7  ;;  %v2298_v24 = vshrl.u32 %v7980_v14, 16 }
  0x8b   : > { %7471 = vmatmul.mubr.msk.bf16.gmra.mxu0 %vm694_vm2, %v1471_v58 }
  0x8c   : > { %7474 = vmatprep.mubr.msk.bf16.mxu0 %vm694_vm2, %v1473_v23 }
  0x8d   : > { %7405 = vmatmul.mubr.msk.bf16.gmra.mxu1 %vm694_vm2, %v8415_v48  ;;  %v1480_v48 = vrot.slane %v8282_v37, 1 }
  0x8e   : > { %7408 = vmatprep.mubr.msk.bf16.mxu1 %vm694_vm2, %v8426_v60  ;;  %v1479_v60 = vsel %vm1442_vm3, %v1476_v7, %v1478_v30  ;;  %v2302_v7 = vshll.u32 %v7981_v19, 16 }
  0x8f   : > { %v1481_v34 = vsel %vm1442_vm3, %v1478_v30, %v1480_v48  ;;  %v7982_v30 = vld [vmem:[%s8234_s25 + $0x40] sm:$0xff]  }
  0x93   : > { %7475 = vmatmul.mubr.msk.bf16.gmra.mxu0 %vm694_vm2, %v1475_v36 }
  0x94   : > { %7478 = vmatprep.mubr.msk.bf16.mxu0 %vm694_vm2, %v1477_v29  ;;  %v2296_v29 = vrot.slane %v2294_v32, 1 }
  0x95   : > { %7409 = vmatmul.mubr.msk.bf16.gmra.mxu1 %vm694_vm2, %v8444_v27  ;;  %v1484_v27 = vrot.slane %v8317_v61, 1 }
  0x96   : > { %7412 = vmatprep.mubr.msk.bf16.mxu1 %vm694_vm2, %v8247_v10  ;;  %v1483_v10 = vsel %vm1442_vm3, %v1480_v48, %v1482_v35 }
  0x97   : > { %v1485_v38 = vsel %vm1442_vm3, %v1482_v35, %v1484_v27  ;;  %v2304_v35 = vrot.slane %v2302_v7, 1 }
  0x9b   : > { %7479 = vmatmul.mubr.msk.bf16.gmra.mxu0 %vm694_vm2, %v1479_v60 }
  0x9c   : > { %7482 = vmatprep.mubr.msk.bf16.mxu0 %vm694_vm2, %v1481_v34  ;;  %v2300_v34 = vor.u32 %v2298_v24, %v2296_v29 }
  0x9d   : > { %7413 = vmatmul.mubr.msk.bf16.gmra.mxu1 %vm694_vm2, %v8250_v11  ;;  %v1488_v11 = vrot.slane %v8342_v21, 1 }
  0x9e   : > { %7416 = vmatprep.mubr.msk.bf16.mxu1 %vm694_vm2, %v8258_v17  ;;  %v1487_v17 = vsel %vm1442_vm3, %v1484_v27, %v1486_v42  ;;  %v7983_v27 = vld [vmem:[%s8234_s25 + $0x48] sm:$0xff]  }
  0x9f   : > { %v1489_v45 = vsel %vm1442_vm3, %v1486_v42, %v1488_v11 }
  0xa3   : > { %7483 = vmatmul.mubr.msk.bf16.gmra.mxu0 %vm694_vm2, %v1483_v10  ;;  %v8716_v10 = vld [vmem:[%s10340_s1 + $0xc] sm:$0x3] }
  0xa4   : > { %7486 = vmatprep.mubr.msk.bf16.mxu0 %vm694_vm2, %v1485_v38 }
  0xa5   : > { %7417 = vmatmul.mubr.msk.bf16.gmra.mxu1 %vm694_vm2, %v8282_v37  ;;  %v1492_v37 = vrot.slane %v8366_v50, 1 }
  0xa6   : > { %7420 = vmatprep.mubr.msk.bf16.mxu1 %vm694_vm2, %v8291_v43  ;;  %v1491_v43 = vsel %vm1442_vm3, %v1488_v11, %v1490_v47  ;;  %v2310_v11 = vshll.u32 %v7982_v30, 16 }
  0xa7   : > { %v1493_v51 = vsel %vm1442_vm3, %v1490_v47, %v1492_v37  ;;  %v8728_v47 = vld [vmem:[%s10340_s1 + $0x10] sm:$0x3] }
  0xab   : > { %7487 = vmatmul.mubr.msk.bf16.gmra.mxu0 %vm694_vm2, %v1487_v17 }
  0xac   : > { %7490 = vmatprep.mubr.msk.bf16.mxu0 %vm694_vm2, %v1489_v45  ;;  %v2306_v45 = vshrl.u32 %v7981_v19, 16 }
  0xad   : > { %7421 = vmatmul.mubr.msk.bf16.gmra.mxu1 %vm694_vm2, %v8317_v61  ;;  %v1496_v61 = vrot.slane %v8392_v15, 1 }
  0xae   : > { %7424 = vmatprep.mubr.msk.bf16.mxu1 %vm694_vm2, %v8329_v8  ;;  %v1495_v8 = vsel %vm1442_vm3, %v1492_v37, %v1494_v53 }
  0xaf   : > { %v1497_v54 = vsel %vm1442_vm3, %v1494_v53, %v1496_v61  ;;  %v2314_v53 = vshrl.u32 %v7982_v30, 16 }
  0xb3   : > { %7491 = vmatmul.mubr.msk.bf16.gmra.mxu0 %vm694_vm2, %v1491_v43 }
  0xb4   : > { %7494 = vmatprep.mubr.msk.bf16.mxu0 %vm694_vm2, %v1493_v51  ;;  %v2305_v51 = vsel %vm433_vm1, %v2300_v34, %v2304_v35 }
  0xb5   : > { %7425 = vmatmul.mubr.msk.bf16.gmra.mxu1 %vm694_vm2, %v8342_v21  ;;  %v1500_v21 = vrot.slane %v8419_v52, 1 }
  0xb6   : > { %7428 = vmatprep.mubr.msk.bf16.mxu1 %vm694_vm2, %v8357_v40  ;;  %v1499_v40 = vsel %vm1442_vm3, %v1496_v61, %v1498_v55  ;;  %v2318_v61 = vshll.u32 %v7983_v27, 16 }
  0xb7   : > { %v1501_v26 = vsel %vm1442_vm3, %v1498_v55, %v1500_v21  ;;  %v1503_v33 = vsel %vm1442_vm3, %v1500_v21, %v1502_v57  ;;  %v2312_v55 = vrot.slane %v2310_v11, 1  ;;  %v7984_v21 = vld [vmem:[%s8234_s25 + $0x50] sm:$0xff]  }
  0xb8   : > { %v2320_v59 = vrot.slane %v2318_v61, 1  ;;  %v2326_v16 = vshll.u32 %v7984_v21, 16 }
  0xba   : > { %v2328_v13 = vrot.slane %v2326_v16, 1 }
  0xbb   : > { %7495 = vmatmul.mubr.msk.bf16.gmra.mxu0 %vm694_vm2, %v1495_v8 }
  0xbc   : > { %7498 = vmatprep.mubr.msk.bf16.mxu0 %vm694_vm2, %v1497_v54 }
  0xbd   : > { %7429 = vmatmul.mubr.msk.bf16.gmra.mxu1 %vm694_vm2, %v8366_v50  ;;  %v1504_v50 = vrot.slane %v8448_v31, 1 }
  0xbe   : > { %7432 = vmatprep.mubr.msk.bf16.mxu1 %vm694_vm2, %v8383_v1  ;;  %v8654_v1 = vld [vmem:[%s8234_s25 + $0x18] sm:$0xff]  }
  0xbf   : > { %v1505_v62 = vsel %vm1442_vm3, %v1502_v57, %v1504_v50 }
  0xc3   : > { %7499 = vmatmul.mubr.msk.bf16.gmra.mxu0 %vm694_vm2, %v1499_v40  ;;  %v2308_v40 = vor.u32 %v2306_v45, %v2304_v35 }
  0xc4   : > { %7502 = vmatprep.mubr.msk.bf16.mxu0 %vm694_vm2, %v1501_v26 }
  0xc5   : > { %7433 = vmatmul.mubr.msk.bf16.gmra.mxu1 %vm694_vm2, %v8392_v15  ;;  %v2270_v15 = vshll.u32 %v8654_v1, 16 }
  0xc6   : > { %7436 = vmatprep.mubr.msk.bf16.mxu1 %vm694_vm2, %v8411_v41  ;;  %v1506_v41 = vrot.slane %v8465_v6, 1  ;;  %v2274_v6 = vshrl.u32 %v8654_v1, 16 }
  0xc7   : > { %v2272_v3 = vrot.slane %v2270_v15, 1  ;;  %v2313_v15 = vsel %vm433_vm1, %v2308_v40, %v2312_v55 }
  0xc8   : > { %v1507_v12 = vsel %vm1442_vm3, %v1504_v50, %v1506_v41  ;;  %v2316_v50 = vor.u32 %v2314_v53, %v2312_v55  ;;  %v2322_v41 = vshrl.u32 %v7983_v27, 16  ;;  %v7989_v55 = vld [vmem:[%s8234_s25 + $0x78] sm:$0xff]  }
  0xc9   : > { %v2276_v49 = vor.u32 %v2274_v6, %v2272_v3 }
  0xcb   : > { %7503 = vmatmul.mubr.msk.bf16.gmra.mxu0 %vm694_vm2, %v1503_v33  ;;  %v7985_v33 = vld [vmem:[%s8234_s25 + $0x58] sm:$0xff]  }
  0xcc   : > { %7506 = vmatprep.mubr.msk.bf16.mxu0 %vm694_vm2, %v1505_v62  ;;  %v2334_v6 = vshll.u32 %v7985_v33, 16 }
  0xcd   : > { %7437 = vmatmul.mubr.msk.bf16.gmra.mxu1 %vm694_vm2, %v8419_v52  ;;  %v2273_v52 = vsel %vm433_vm1, %v2268_v2, %v2272_v3 }
  0xce   : > { %7440 = vmatprep.mubr.msk.bf16.mxu1 %vm694_vm2, %v8441_v25  ;;  %v2280_v25 = vrot.slane %v2278_v28, 1  ;;  %v2330_v28 = vshrl.u32 %v7984_v21, 16 }
  0xd0   : > { %v2284_v63 = vor.u32 %v2282_v39, %v2280_v25  ;;  %v2281_v22 = vsel %vm433_vm1, %v2276_v49, %v2280_v25  ;;  %v7986_v25 = vld [vmem:[%s8234_s25 + $0x60] sm:$0xff]  }
  0xd2   : > { %v2289_v23 = vsel %vm433_vm1, %v2284_v63, %v2288_v18 }
  0xd3   : > { %7507 = vmatmul.mubr.msk.bf16.gmra.mxu0 %vm694_vm2, %v1507_v12  ;;  %v2321_v12 = vsel %vm433_vm1, %v2316_v50, %v2320_v59 }
  0xd4   : > { %7578 = vmatprep.mubr.msk.bf16.mxu0 %vm694_vm2, %v8644_v56 }
  0xd5   : > { %7441 = vmatmul.mubr.msk.bf16.gmra.mxu1 %vm694_vm2, %v8448_v31  ;;  %v3430_v31 = vsel %vm791_vm0, %v8504_v4, 0  ;;  %v2292_v4 = vor.u32 %v2290_v46, %v2288_v18  ;;  %v2332_v18 = vor.u32 %v2330_v28, %v2328_v13  ;;  %v2342_v46 = vshll.u32 %v7986_v25, 16 }
  0xd6   : > { %7512 = vmatprep.mubr.msk.bf16.mxu1 %vm694_vm2, %v2273_v52 }
  0xd7   : > { %v2297_v17 = vsel %vm433_vm1, %v2292_v4, %v2296_v29  ;;  %v2344_v11 = vrot.slane %v2342_v46, 1 }
  0xdb   : > { %v8692_v58 = vpop.f32.mrf.mxu0  ;;  %7579 = vmatmul.mubr.msk.bf16.vlgmr.msra.gmra.mxu0 %vm694_vm2, %v8654_v1 }
  0xdc   : > { %7709 = vmatpush3.bf16.msra.mxu0 %v4571_v20  ;;  %7582 = vmatprep.mubr.msk.bf16.mxu0 %vm694_vm2, %v8667_v0  ;;  %v8701_v44 = vpop.f32.mrf.mxu1  ;;  %v7987_v20 = vld [vmem:[%s8234_s25 + $0x68] sm:$0xff]  }
  0xdd   : > { %7513 = vmatmul.mubr.msk.bf16.vlgmr.msra.gmra.mxu1 %vm694_vm2, %v2281_v22  ;;  %v8704_v36 = vpop.f32.mrf.mxu0  ;;  %7917 = vmatprep.subr.msk.bf16.mxu0 %vm791_vm0, %v8728_v47  ;;  %v2350_v4 = vshll.u32 %v7987_v20, 16  ;;  %v2354_v16 = vshrl.u32 %v7987_v20, 16 }
  0xde   : > { %7643 = vmatpush3.bf16.msra.mxu1 %v3430_v31  ;;  %7516 = vmatprep.mubr.msk.bf16.mxu1 %vm694_vm2, %v2289_v23  ;;  %v8708_v48 = vpop.f32.mrf.mxu1  ;;  %v2338_v23 = vshrl.u32 %v7985_v33, 16 }
  0xdf   : > { %10344 = vst [vmem:[#allocation3_spill] sm:$0xff] %v8708_v48  ;;  %v8710_v60 = vpop.f32.mrf.mxu0  ;;  %7916 = vmatprep.subr.msk.bf16.mxu1 %vm791_vm0, %v8716_v10  ;;  %v2352_v61 = vrot.slane %v2350_v4, 1 }
  0xe0   : > { %v8718_v38 = vpop.f32.mrf.mxu1 }
  0xe1   : > { %10345 = vst [vmem:[#allocation4_spill] sm:$0xff] %v8718_v38  ;;  %v8720_v42 = vpop.f32.mrf.mxu0  ;;  %v2356_v46 = vor.u32 %v2354_v16, %v2352_v61 }
  0xe2   : > { %v8730_v37 = vpop.f32.mrf.mxu1 }
  0xe3   : > { %10346 = vst [vmem:[#allocation5_spill] sm:$0xff] %v8730_v37  ;;  %v8732_v43 = vpop.f32.mrf.mxu0  ;;  %7583 = vmatmul.mubr.msk.bf16.gmra.mxu0 %vm694_vm2, %v8672_v9  ;;  %v8920_v37 = vld [vmem:[%s8234_s25 + $0xc8] sm:$0xff]  }
  0xe4   : > { %7586 = vmatprep.mubr.msk.bf16.mxu0 %vm694_vm2, %v7980_v14  ;;  %v8740_v8 = vpop.f32.mrf.mxu1  ;;  %v2324_v14 = vor.u32 %v2322_v41, %v2320_v59 }
  0xe5   : > { %10347 = vst [vmem:[#allocation6_spill] sm:$0xff] %v8740_v8  ;;  %7517 = vmatmul.mubr.msk.bf16.gmra.mxu1 %vm694_vm2, %v2297_v17  ;;  %v8743_v54 = vpop.f32.mrf.mxu0  ;;  %v7988_v17 = vld [vmem:[%s8234_s25 + $0x70] sm:$0xff]  }
  0xe6   : > { %7520 = vmatprep.mubr.msk.bf16.mxu1 %vm694_vm2, %v2305_v51  ;;  %v8747_v26 = vpop.f32.mrf.mxu1  ;;  %v2329_v31 = vsel %vm433_vm1, %v2324_v14, %v2328_v13  ;;  %v2358_v50 = vshll.u32 %v7988_v17, 16  ;;  %v2362_v28 = vshrl.u32 %v7988_v17, 16 }
  0xe7   : > { %10348 = vst [vmem:[#allocation7_spill] sm:$0xff] %v8747_v26  ;;  %v8749_v57 = vpop.f32.mrf.mxu0 }
  0xe8   : > { %v8752_v62 = vpop.f32.mrf.mxu1 }
  0xe9   : > { %10349 = vst [vmem:[#allocation8_spill] sm:$0xff] %v8752_v62  ;;  %v8754_v5 = vpop.f32.mrf.mxu0 }
  0xea   : > { %v8757_v2 = vpop.f32.mrf.mxu1 }
  0xeb   : > { %10350 = vst [vmem:[#allocation9_spill] sm:$0xff] %v8757_v2  ;;  %v8759_v3 = vpop.f32.mrf.mxu0  ;;  %7587 = vmatmul.mubr.msk.bf16.gmra.mxu0 %vm694_vm2, %v7981_v19  ;;  %v2336_v19 = vrot.slane %v2334_v6, 1  ;;  %v2366_v6 = vshll.u32 %v7989_v55, 16 }
  0xec   : > { %7590 = vmatprep.mubr.msk.bf16.mxu0 %vm694_vm2, %v7982_v30  ;;  %v8764_v52 = vpop.f32.mrf.mxu1  ;;  %v2346_v30 = vshrl.u32 %v7986_v25, 16 }
  0xed   : > { %10351 = vst [vmem:[#allocation10_spill] sm:$0xff] %v8764_v52  ;;  %7521 = vmatmul.mubr.msk.bf16.gmra.mxu1 %vm694_vm2, %v2313_v15  ;;  %v8767_v39 = vpop.f32.mrf.mxu0  ;;  %v2337_v29 = vsel %vm433_vm1, %v2332_v18, %v2336_v19  ;;  %v2340_v45 = vor.u32 %v2338_v23, %v2336_v19  ;;  %v2360_v18 = vrot.slane %v2358_v50, 1  ;;  %v7990_v19 = vld [vmem:[%s8234_s25 + $0x80] sm:$0xff]   ;;  %v8899_v52 = vld [vmem:[%s8234_s25 + $0xb8] sm:$0xff]  }
  0xee   : > { %7524 = vmatprep.mubr.msk.bf16.mxu1 %vm694_vm2, %v2321_v12  ;;  %v8771_v49 = vpop.f32.mrf.mxu1  ;;  %v2348_v53 = vor.u32 %v2346_v30, %v2344_v11  ;;  %v7991_v30 = vld [vmem:[%s8234_s25 + $0x88] sm:$0xff]   ;;  %v2378_v16 = vshrl.u32 %v7990_v19, 16 }
  0xef   : > { %10352 = vst [vmem:[#allocation11_spill] sm:$0xff] %v8771_v49  ;;  %v8773_v63 = vpop.f32.mrf.mxu0  ;;  %v2345_v59 = vsel %vm433_vm1, %v2340_v45, %v2344_v11  ;;  %v2364_v23 = vor.u32 %v2362_v28, %v2360_v18  ;;  %v2374_v11 = vshll.u32 %v7990_v19, 16  ;;  %v2361_v45 = vsel %vm433_vm1, %v2356_v46, %v2360_v18  ;;  %v7992_v46 = vld [vmem:[%s8234_s25 + $0x90] sm:$0xff]  }
  0xf0   : > { %v8776_v32 = vpop.f32.mrf.mxu1  ;;  %v2353_v12 = vsel %vm433_vm1, %v2348_v53, %v2352_v61  ;;  %v2370_v53 = vshrl.u32 %v7989_v55, 16 }
  0xf1   : > { %10353 = vst [vmem:[#allocation12_spill] sm:$0xff] %v8776_v32  ;;  %v8778_v22 = vpop.f32.mrf.mxu0  ;;  %v2376_v18 = vrot.slane %v2374_v11, 1  ;;  %v2386_v11 = vshrl.u32 %v7991_v30, 16 }
  0xf2   : > { %v8781_v24 = vpop.f32.mrf.mxu1 }
  0xf3   : > { %10354 = vst [vmem:[#allocation13_spill] sm:$0xff] %v8781_v24  ;;  %v8783_v7 = vpop.f32.mrf.mxu0  ;;  %7591 = vmatmul.mubr.msk.bf16.gmra.mxu0 %vm694_vm2, %v7983_v27 }
  0xf4   : > { %7594 = vmatprep.mubr.msk.bf16.mxu0 %vm694_vm2, %v7984_v21  ;;  %v8788_v34 = vpop.f32.mrf.mxu1 }
  0xf5   : > { %10355 = vst [vmem:[#allocation14_spill] sm:$0xff] %v8788_v34  ;;  %7525 = vmatmul.mubr.msk.bf16.gmra.mxu1 %vm694_vm2, %v2329_v31  ;;  %v8791_v35 = vpop.f32.mrf.mxu0  ;;  %v8872_v34 = vld [vmem:[%s8234_s25 + $0xa8] sm:$0xff]  }
  0xf6   : > { %7528 = vmatprep.mubr.msk.bf16.mxu1 %vm694_vm2, %v2337_v29  ;;  %v8795_v51 = vpop.f32.mrf.mxu1  ;;  %v2368_v29 = vrot.slane %v2366_v6, 1 }
  0xf7   : > { %10356 = vst [vmem:[#allocation15_spill] sm:$0xff] %v8795_v51  ;;  %v8797_v27 = vpop.f32.mrf.mxu0 }
  0xf8   : > { %v8800_v40 = vpop.f32.mrf.mxu1 }
  0xf9   : > { %10357 = vst [vmem:[#allocation16_spill] sm:$0xff] %v8800_v40  ;;  %v8802_v21 = vpop.f32.mrf.mxu0 }
  0xfa   : > { %v8805_v15 = vpop.f32.mrf.mxu1 }
  0xfb   : > { %10358 = vst [vmem:[#allocation17_spill] sm:$0xff] %v8805_v15  ;;  %v8807_v41 = vpop.f32.mrf.mxu0  ;;  %7595 = vmatmul.mubr.msk.bf16.gmra.mxu0 %vm694_vm2, %v7985_v33 }
  0xfc   : > { %7598 = vmatprep.mubr.msk.bf16.mxu0 %vm694_vm2, %v7986_v25  ;;  %v8812_v13 = vpop.f32.mrf.mxu1 }
  0xfd   : > { %10359 = vst [vmem:[#allocation18_spill] sm:$0xff] %v8812_v13  ;;  %7529 = vmatmul.mubr.msk.bf16.gmra.mxu1 %vm694_vm2, %v2345_v59  ;;  %v8815_v14 = vpop.f32.mrf.mxu0  ;;  %v2369_v59 = vsel %vm433_vm1, %v2364_v23, %v2368_v29  ;;  %v2380_v23 = vor.u32 %v2378_v16, %v2376_v18  ;;  %v7993_v13 = vld [vmem:[%s8234_s25 + $0x98] sm:$0xff]  }
  0xfe   : > { %7532 = vmatprep.mubr.msk.bf16.mxu1 %vm694_vm2, %v2353_v12  ;;  %v8819_v31 = vpop.f32.mrf.mxu1  ;;  %v2382_v12 = vshll.u32 %v7991_v30, 16  ;;  %v2398_v16 = vshll.u32 %v7993_v13, 16  ;;  %v2402_v24 = vshrl.u32 %v7993_v13, 16 }
  0xff   : > { %10360 = vst [vmem:[#allocation19_spill] sm:$0xff] %v8819_v31  ;;  %v8821_v33 = vpop.f32.mrf.mxu0 }
 0x100   : > { %v8824_v4 = vpop.f32.mrf.mxu1  ;;  %v2384_v31 = vrot.slane %v2382_v12, 1  ;;  %v2400_v51 = vrot.slane %v2398_v16, 1  ;;  %v2414_v16 = vshll.u32 %v8872_v34, 16 }
 0x101   : > { %10361 = vst [vmem:[#allocation20_spill] sm:$0xff] %v8824_v4  ;;  %v8826_v25 = vpop.f32.mrf.mxu0 }
 0x102   : > { %v8829_v50 = vpop.f32.mrf.mxu1  ;;  %v2416_v49 = vrot.slane %v2414_v16, 1 }
 0x103   : > { %10362 = vst [vmem:[#allocation21_spill] sm:$0xff] %v8829_v50  ;;  %v8831_v61 = vpop.f32.mrf.mxu0  ;;  %7599 = vmatmul.mubr.msk.bf16.gmra.mxu0 %vm694_vm2, %v7987_v20  ;;  %v2372_v50 = vor.u32 %v2370_v53, %v2368_v29  ;;  %v2385_v53 = vsel %vm433_vm1, %v2380_v23, %v2384_v31 }
 0x104   : > { %7602 = vmatprep.mubr.msk.bf16.mxu0 %vm694_vm2, %v7988_v17  ;;  %v8836_v28 = vpop.f32.mrf.mxu1 }
 0x105   : > { %10363 = vst [vmem:[#allocation22_spill] sm:$0xff] %v8836_v28  ;;  %7533 = vmatmul.mubr.msk.bf16.gmra.mxu1 %vm694_vm2, %v2361_v45  ;;  %v8839_v6 = vpop.f32.mrf.mxu0  ;;  %v2390_v45 = vshll.u32 %v7992_v46, 16  ;;  %v2377_v28 = vsel %vm433_vm1, %v2372_v50, %v2376_v18  ;;  %v7994_v18 = vld [vmem:[%s8234_s25 + $0xa0] sm:$0xff]  }
 0x106   : > { %7536 = vmatprep.mubr.msk.bf16.mxu1 %vm694_vm2, %v2369_v59  ;;  %v8843_v4 = vpop.f32.mrf.mxu1  ;;  %v2394_v59 = vshrl.u32 %v7992_v46, 16 }
 0x107   : > { %10364 = vst [vmem:[#allocation23_spill] sm:$0xff] %v8843_v4  ;;  %v8845_v20 = vpop.f32.mrf.mxu0  ;;  %v2392_v50 = vrot.slane %v2390_v45, 1 }
 0x108   : > { %v8848_v15 = vpop.f32.mrf.mxu1 }
 0x109   : > { %10365 = vst [vmem:[#allocation24_spill] sm:$0xff] %v8848_v15  ;;  %v8850_v17 = vpop.f32.mrf.mxu0  ;;  %v2396_v23 = vor.u32 %v2394_v59, %v2392_v50  ;;  %v2410_v59 = vshrl.u32 %v7994_v18, 16 }
 0x10a   : > { %v8853_v40 = vpop.f32.mrf.mxu1 }
 0x10b   : > { %10366 = vst [vmem:[#allocation25_spill] sm:$0xff] %v8853_v40  ;;  %v8855_v29 = vpop.f32.mrf.mxu0  ;;  %7603 = vmatmul.mubr.msk.bf16.gmra.mxu0 %vm694_vm2, %v7989_v55  ;;  %v2388_v40 = vor.u32 %v2386_v11, %v2384_v31 }
 0x10c   : > { %7606 = vmatprep.mubr.msk.bf16.mxu0 %vm694_vm2, %v7990_v19  ;;  %v8860_v12 = vpop.f32.mrf.mxu1 }
 0x10d   : > { %10367 = vst [vmem:[#allocation26_spill] sm:$0xff] %v8860_v12  ;;  %7537 = vmatmul.mubr.msk.bf16.gmra.mxu1 %vm694_vm2, %v2377_v28  ;;  %v8863_v15 = vpop.f32.mrf.mxu0  ;;  %v2406_v28 = vshll.u32 %v7994_v18, 16  ;;  %v2393_v45 = vsel %vm433_vm1, %v2388_v40, %v2392_v50 }
 0x10e   : > { %7540 = vmatprep.mubr.msk.bf16.mxu1 %vm694_vm2, %v2385_v53  ;;  %v8867_v4 = vpop.f32.mrf.mxu1  ;;  %v2401_v53 = vsel %vm433_vm1, %v2396_v23, %v2400_v51 }
 0x10f   : > { %10368 = vst [vmem:[#allocation27_spill] sm:$0xff] %v8867_v4  ;;  %v8869_v55 = vpop.f32.mrf.mxu0  ;;  %v2408_v50 = vrot.slane %v2406_v28, 1  ;;  %v2404_v4 = vor.u32 %v2402_v24, %v2400_v51  ;;  %v2418_v24 = vshrl.u32 %v8872_v34, 16 }
 0x110   : > { %v8874_v19 = vpop.f32.mrf.mxu1 }
 0x111   : > { %10369 = vst [vmem:[#allocation28_spill] sm:$0xff] %v8874_v19  ;;  %v8876_v12 = vpop.f32.mrf.mxu0  ;;  %v2412_v23 = vor.u32 %v2410_v59, %v2408_v50  ;;  %v2409_v28 = vsel %vm433_vm1, %v2404_v4, %v2408_v50  ;;  %v8915_v50 = vld [vmem:[%s8234_s25 + $0xc0] sm:$0xff]   ;;  %v2420_v62 = vor.u32 %v2418_v24, %v2416_v49  ;;  %v2434_v24 = vshrl.u32 %v8899_v52, 16 }
 0x112   : > { %v8879_v31 = vpop.f32.mrf.mxu1 }
 0x113   : > { %10370 = vst [vmem:[#allocation29_spill] sm:$0xff] %v8879_v31  ;;  %v8881_v11 = vpop.f32.mrf.mxu0  ;;  %7607 = vmatmul.mubr.msk.bf16.gmra.mxu0 %vm694_vm2, %v7991_v30  ;;  %v7996_v31 = vld [vmem:[%s8234_s25 + $0xb0] sm:$0xff]   ;;  %v2417_v59 = vsel %vm433_vm1, %v2412_v23, %v2416_v49 }
 0x114   : > { %7610 = vmatprep.mubr.msk.bf16.mxu0 %vm694_vm2, %v7992_v46  ;;  %v8887_v19 = vpop.f32.mrf.mxu1  ;;  %v2426_v16 = vshrl.u32 %v7996_v31, 16 }
 0x115   : > { %10371 = vst [vmem:[#allocation30_spill] sm:$0xff] %v8887_v19  ;;  %7541 = vmatmul.mubr.msk.bf16.gmra.mxu1 %vm694_vm2, %v2393_v45  ;;  %v8890_v40 = vpop.f32.mrf.mxu0  ;;  %v2422_v45 = vshll.u32 %v7996_v31, 16 }
 0x116   : > { %7544 = vmatprep.mubr.msk.bf16.mxu1 %vm694_vm2, %v2401_v53  ;;  %v8894_v30 = vpop.f32.mrf.mxu1 }
 0x117   : > { %10372 = vst [vmem:[#allocation31_spill] sm:$0xff] %v8894_v30  ;;  %v8896_v32 = vpop.f32.mrf.mxu0  ;;  %v2430_v30 = vshll.u32 %v8899_v52, 16  ;;  %v2424_v4 = vrot.slane %v2422_v45, 1  ;;  %v2438_v45 = vshll.u32 %v8915_v50, 16 }
 0x118   : > { %v8901_v46 = vpop.f32.mrf.mxu1 }
 0x119   : > { %10373 = vst [vmem:[#allocation32_spill] sm:$0xff] %v8901_v46  ;;  %v8903_v19 = vpop.f32.mrf.mxu0  ;;  %v2428_v26 = vor.u32 %v2426_v16, %v2424_v4  ;;  %v2432_v8 = vrot.slane %v2430_v30, 1  ;;  %v2440_v16 = vrot.slane %v2438_v45, 1 }
 0x11a   : > { %v8907_v51 = vpop.f32.mrf.mxu1 }
 0x11b   : > { %10374 = vst [vmem:[#allocation33_spill] sm:$0xff] %v8907_v51  ;;  %v7448_v53 = vpop.f32.mrf.mxu0  ;;  %7611 = vmatmul.mubr.msk.bf16.gmra.mxu0 %vm694_vm2, %v7993_v13 }
 0x11c   : > { %7614 = vmatprep.mubr.msk.bf16.mxu0 %vm694_vm2, %v7994_v18 }
 0x11d   : > { %v7382_v46 = vpop.f32.mrf.mxu1  ;;  %7545 = vmatmul.mubr.msk.bf16.gmra.mxu1 %vm694_vm2, %v2409_v28  ;;  %v1641_v2 = vpop.f32.mrf.mxu0 }
 0x11e   : > { %v1194_v51 = vadd.f32 %v7382_v46, %v8692_v58  ;;  %7548 = vmatprep.mubr.msk.bf16.mxu1 %vm694_vm2, %v2417_v59  ;;  %v2425_v46 = vsel %vm433_vm1, %v2420_v62, %v2424_v4 }
 0x11f   : > { %v1185_v13 = vpop.f32.mrf.mxu1  ;;  %v7449_v23 = vpop.f32.mrf.mxu0 }
 0x120   : > { %v1898_v18 = vadd.f32 %v7448_v53, %v1194_v51  ;;  %v1186_v38 = vadd.f32 %v1185_v13, %v8704_v36  ;;  %v2433_v36 = vsel %vm433_vm1, %v2428_v26, %v2432_v8  ;;  %v2442_v51 = vshrl.u32 %v8915_v50, 16 }
 0x121   : > { %v7383_v28 = vpop.f32.mrf.mxu1  ;;  %v1644_v48 = vpop.f32.mrf.mxu0  ;;  %v2446_v53 = vshll.u32 %v8920_v37, 16  ;;  %v2436_v13 = vor.u32 %v2434_v24, %v2432_v8 }
 0x122   : > { %1963 = vst.msk [vmem:[#allocation2 + $0x10] sm:$0xff] %vm1960_vm4, %v1898_v18  ;;  %v1896_v58 = vadd.f32 %v1641_v2, %v1186_v38  ;;  %v1197_v49 = vadd.f32 %v7383_v28, %v8710_v60  ;;  %v2444_v18 = vor.u32 %v2442_v51, %v2440_v16 }
 0x123   : > { %v1188_v30 = vpop.f32.mrf.mxu1  ;;  %v7452_v59 = vpop.f32.mrf.mxu0  ;;  %7615 = vmatmul.mubr.msk.bf16.gmra.mxu0 %vm694_vm2, %v8872_v34  ;;  %v8938_v34 = vld [vmem:[%s8234_s25 + $0xd0] sm:$0xff]   ;;  %v2448_v28 = vrot.slane %v2446_v53, 1  ;;  %v2441_v24 = vsel %vm433_vm1, %v2436_v13, %v2440_v16 }
 0x124   : > { %1961 = vst.msk [vmem:[#allocation2] sm:$0xff] %vm1960_vm4, %v1896_v58  ;;  %v1899_v38 = vadd.f32 %v7449_v23, %v1197_v49  ;;  %v1189_v60 = vadd.f32 %v1188_v30, %v8720_v42  ;;  %7618 = vmatprep.mubr.msk.bf16.mxu0 %vm694_vm2, %v7996_v31  ;;  %v8944_v31 = vld [vmem:[%s8234_s25 + $0xd8] sm:$0xff]   ;;  %v2450_v30 = vshrl.u32 %v8920_v37, 16 }
 0x125   : > { %v7386_v62 = vpop.f32.mrf.mxu1  ;;  %7549 = vmatmul.mubr.msk.bf16.gmra.mxu1 %vm694_vm2, %v2425_v46  ;;  %v1657_v2 = vpop.f32.mrf.mxu0  ;;  %v2462_v53 = vshll.u32 %v8944_v31, 16 }
 0x126   : > { %1964 = vst.msk [vmem:[#allocation2 + $0x18] sm:$0xff] %vm1960_vm4, %v1899_v38  ;;  %v1897_v26 = vadd.f32 %v1644_v48, %v1189_v60  ;;  %v1210_v4 = vadd.f32 %v7386_v62, %v8732_v43  ;;  %7552 = vmatprep.mubr.msk.bf16.mxu1 %vm694_vm2, %v2433_v36  ;;  %v2454_v48 = vshll.u32 %v8938_v34, 16 }
 0x127   : > { %v1201_v23 = vpop.f32.mrf.mxu1  ;;  %v7453_v42 = vpop.f32.mrf.mxu0 }
 0x128   : > { %1962 = vst.msk [vmem:[#allocation2 + $0x8] sm:$0xff] %vm1960_vm4, %v1897_v26  ;;  %v1902_v58 = vadd.f32 %v7452_v59, %v1210_v4  ;;  %v1202_v45 = vadd.f32 %v1201_v23, %v8743_v54  ;;  %v2449_v54 = vsel %vm433_vm1, %v2444_v18, %v2448_v28  ;;  %v2458_v59 = vshrl.u32 %v8938_v34, 16 }
 0x129   : > { %v7387_v49 = vpop.f32.mrf.mxu1  ;;  %v1660_v46 = vpop.f32.mrf.mxu0  ;;  %v2452_v4 = vor.u32 %v2450_v30, %v2448_v28 }
 0x12a   : > { %1967 = vst.msk [vmem:[#allocation2 + $0x30] sm:$0xff] %vm1960_vm4, %v1902_v58  ;;  %v1900_v43 = vadd.f32 %v1657_v2, %v1202_v45  ;;  %v1213_v8 = vadd.f32 %v7387_v49, %v8749_v57  ;;  %v8964_v2 = vld [vmem:[%s8234_s25 + $0xe0] sm:$0xff]  }
 0x12b   : > { %v1204_v36 = vpop.f32.mrf.mxu1  ;;  %v7456_v51 = vpop.f32.mrf.mxu0  ;;  %7619 = vmatmul.mubr.msk.bf16.gmra.mxu0 %vm694_vm2, %v8899_v52  ;;  %v2456_v52 = vrot.slane %v2454_v48, 1  ;;  %v2474_v30 = vshrl.u32 %v8964_v2, 16 }
 0x12c   : > { %1965 = vst.msk [vmem:[#allocation2 + $0x20] sm:$0xff] %vm1960_vm4, %v1900_v43  ;;  %v1903_v38 = vadd.f32 %v7453_v42, %v1213_v8  ;;  %v1205_v57 = vadd.f32 %v1204_v36, %v8754_v5  ;;  %7622 = vmatprep.mubr.msk.bf16.mxu0 %vm694_vm2, %v8915_v50  ;;  %v2464_v42 = vrot.slane %v2462_v53, 1  ;;  %v8970_v50 = vld [vmem:[%s8234_s25 + $0xe8] sm:$0xff]   ;;  %v2466_v43 = vshrl.u32 %v8944_v31, 16  ;;  %v8990_v53 = vld [vmem:[%s8234_s25 + $0xf0] sm:$0xff]  }
 0x12d   : > { %v7390_v60 = vpop.f32.mrf.mxu1  ;;  %7553 = vmatmul.mubr.msk.bf16.gmra.mxu1 %vm694_vm2, %v2441_v24  ;;  %v1673_v62 = vpop.f32.mrf.mxu0  ;;  %v2460_v23 = vor.u32 %v2458_v59, %v2456_v52  ;;  %v2457_v48 = vsel %vm433_vm1, %v2452_v4, %v2456_v52  ;;  %v2478_v36 = vshll.u32 %v8970_v50, 16 }
 0x12e   : > { %1968 = vst.msk [vmem:[#allocation2 + $0x38] sm:$0xff] %vm1960_vm4, %v1903_v38  ;;  %v1901_v16 = vadd.f32 %v1660_v46, %v1205_v57  ;;  %v1226_v26 = vadd.f32 %v7390_v60, %v8759_v3  ;;  %7556 = vmatprep.mubr.msk.bf16.mxu1 %vm694_vm2, %v2449_v54  ;;  %v2470_v46 = vshll.u32 %v8964_v2, 16  ;;  %v2468_v60 = vor.u32 %v2466_v43, %v2464_v42 }
 0x12f   : > { %v1217_v5 = vpop.f32.mrf.mxu1  ;;  %v7457_v13 = vpop.f32.mrf.mxu0 }
 0x130   : > { %1966 = vst.msk [vmem:[#allocation2 + $0x28] sm:$0xff] %vm1960_vm4, %v1901_v16  ;;  %v1906_v18 = vadd.f32 %v7456_v51, %v1226_v26  ;;  %v1218_v58 = vadd.f32 %v1217_v5, %v8767_v39  ;;  %v2465_v39 = vsel %vm433_vm1, %v2460_v23, %v2464_v42  ;;  %v2480_v16 = vrot.slane %v2478_v36, 1 }
 0x131   : > { %v7391_v45 = vpop.f32.mrf.mxu1  ;;  %v1676_v49 = vpop.f32.mrf.mxu0  ;;  %v2486_v23 = vshll.u32 %v8990_v53, 16 }
 0x132   : > { %1971 = vst.msk [vmem:[#allocation2 + $0x50] sm:$0xff] %vm1960_vm4, %v1906_v18  ;;  %v1904_v3 = vadd.f32 %v1673_v62, %v1218_v58  ;;  %v1229_v28 = vadd.f32 %v7391_v45, %v8773_v63  ;;  %v2482_v58 = vshrl.u32 %v8970_v50, 16 }
 0x133   : > { %v1220_v8 = vpop.f32.mrf.mxu1  ;;  %v7460_v24 = vpop.f32.mrf.mxu0  ;;  %7623 = vmatmul.mubr.msk.bf16.gmra.mxu0 %vm694_vm2, %v8920_v37  ;;  %v2472_v37 = vrot.slane %v2470_v46, 1  ;;  %v2490_v46 = vshrl.u32 %v8990_v53, 16 }
 0x134   : > { %1969 = vst.msk [vmem:[#allocation2 + $0x40] sm:$0xff] %vm1960_vm4, %v1904_v3  ;;  %v1907_v51 = vadd.f32 %v7457_v13, %v1229_v28  ;;  %v1221_v63 = vadd.f32 %v1220_v8, %v8778_v22  ;;  %7626 = vmatprep.mubr.msk.bf16.mxu0 %vm694_vm2, %v8938_v34  ;;  %v8996_v34 = vld [vmem:[%s8234_s25 + $0xf8] sm:$0xff]   ;;  %v9016_v8 = vld [vmem:[%s8234_s25 + $0x100] sm:$0xff]  }
 0x135   : > { %v7394_v54 = vpop.f32.mrf.mxu1  ;;  %7557 = vmatmul.mubr.msk.bf16.gmra.mxu1 %vm694_vm2, %v2457_v48  ;;  %v1689_v59 = vpop.f32.mrf.mxu0  ;;  %v2476_v52 = vor.u32 %v2474_v30, %v2472_v37  ;;  %v2473_v18 = vsel %vm433_vm1, %v2468_v60, %v2472_v37  ;;  %v2494_v3 = vshll.u32 %v8996_v34, 16  ;;  %v2484_v30 = vor.u32 %v2482_v58, %v2480_v16  ;;  %v8009_v60 = vld [vmem:[%s8234_s25 + $0x20] sm:$0xff]  }
 0x136   : > { %1972 = vst.msk [vmem:[#allocation2 + $0x58] sm:$0xff] %vm1960_vm4, %v1907_v51  ;;  %v1905_v38 = vadd.f32 %v1676_v49, %v1221_v63  ;;  %v1242_v57 = vadd.f32 %v7394_v54, %v8783_v7  ;;  %7560 = vmatprep.mubr.msk.bf16.mxu1 %vm694_vm2, %v2465_v39  ;;  %v9022_v63 = vld [vmem:[%s8234_s25 + $0x108] sm:$0xff]   ;;  %v4217_v58 = vshll.u32 %v8009_v60, 16 }
 0x137   : > { %v1233_v22 = vpop.f32.mrf.mxu1  ;;  %v7461_v62 = vpop.f32.mrf.mxu0 }
 0x138   : > { %1970 = vst.msk [vmem:[#allocation2 + $0x48] sm:$0xff] %vm1960_vm4, %v1905_v38  ;;  %v1910_v26 = vadd.f32 %v7460_v24, %v1242_v57  ;;  %v1234_v4 = vadd.f32 %v1233_v22, %v8791_v35  ;;  %v2481_v35 = vsel %vm433_vm1, %v2476_v52, %v2480_v16  ;;  %v2498_v57 = vshrl.u32 %v8996_v34, 16 }
 0x139   : > { %v7395_v5 = vpop.f32.mrf.mxu1  ;;  %v1692_v13 = vpop.f32.mrf.mxu0 }
 0x13a   : > { %1975 = vst.msk [vmem:[#allocation2 + $0x70] sm:$0xff] %vm1960_vm4, %v1910_v26  ;;  %v1908_v7 = vadd.f32 %v1689_v59, %v1234_v4  ;;  %v1245_v42 = vadd.f32 %v7395_v5, %v8797_v27  ;;  %v2506_v4 = vshrl.u32 %v9016_v8, 16  ;;  %v2510_v5 = vshll.u32 %v9022_v63, 16 }
 0x13b   : > { %v1236_v45 = vpop.f32.mrf.mxu1  ;;  %v7464_v49 = vpop.f32.mrf.mxu0  ;;  %7627 = vmatmul.mubr.msk.bf16.gmra.mxu0 %vm694_vm2, %v8944_v31  ;;  %v2488_v31 = vrot.slane %v2486_v23, 1 }
 0x13c   : > { %1973 = vst.msk [vmem:[#allocation2 + $0x60] sm:$0xff] %vm1960_vm4, %v1908_v7  ;;  %v1911_v28 = vadd.f32 %v7461_v62, %v1245_v42  ;;  %v1237_v27 = vadd.f32 %v1236_v45, %v8802_v21  ;;  %7630 = vmatprep.mubr.msk.bf16.mxu0 %vm694_vm2, %v8964_v2  ;;  %v2496_v2 = vrot.slane %v2494_v3, 1  ;;  %v2512_v3 = vrot.slane %v2510_v5, 1 }
 0x13d   : > { %v7398_v48 = vpop.f32.mrf.mxu1  ;;  %7561 = vmatmul.mubr.msk.bf16.gmra.mxu1 %vm694_vm2, %v2473_v18  ;;  %v1705_v43 = vpop.f32.mrf.mxu0  ;;  %v2492_v51 = vor.u32 %v2490_v46, %v2488_v31  ;;  %v2489_v52 = vsel %vm433_vm1, %v2484_v30, %v2488_v31  ;;  %v9043_v18 = vld [vmem:[%s8234_s25 + $0x28] sm:$0xff]  }
 0x13e   : > { %1976 = vst.msk [vmem:[#allocation2 + $0x78] sm:$0xff] %vm1960_vm4, %v1911_v28  ;;  %v1909_v24 = vadd.f32 %v1692_v13, %v1237_v27  ;;  %v1258_v39 = vadd.f32 %v7398_v48, %v8807_v41  ;;  %7564 = vmatprep.mubr.msk.bf16.mxu1 %vm694_vm2, %v2481_v35  ;;  %v2502_v41 = vshll.u32 %v9016_v8, 16 }
 0x13f   : > { %v1249_v21 = vpop.f32.mrf.mxu1  ;;  %v7465_v36 = vpop.f32.mrf.mxu0 }
 0x140   : > { %1974 = vst.msk [vmem:[#allocation2 + $0x68] sm:$0xff] %vm1960_vm4, %v1909_v24  ;;  %v1914_v54 = vadd.f32 %v7464_v49, %v1258_v39  ;;  %v1250_v59 = vadd.f32 %v1249_v21, %v8815_v14  ;;  %v2497_v14 = vsel %vm433_vm1, %v2492_v51, %v2496_v2  ;;  %v2504_v42 = vrot.slane %v2502_v41, 1 }
 0x141   : > { %v7399_v37 = vpop.f32.mrf.mxu1  ;;  %v1708_v38 = vpop.f32.mrf.mxu0  ;;  %v4215_v24 = vshrl.u32 %v8009_v60, 16  ;;  %v4219_v39 = vrot.slane %v4217_v58, 1 }
 0x142   : > { %1979 = vst.msk [vmem:[#allocation2 + $0x90] sm:$0xff] %vm1960_vm4, %v1914_v54  ;;  %v1912_v22 = vadd.f32 %v1705_v43, %v1250_v59  ;;  %v1261_v62 = vadd.f32 %v7399_v37, %v8821_v33  ;;  %v8011_v59 = vld [vmem:[%s8234_s25 + $0x30] sm:$0xff]  }
 0x143   : > { %v1252_v16 = vpop.f32.mrf.mxu1  ;;  %v7468_v26 = vpop.f32.mrf.mxu0  ;;  %7631 = vmatmul.mubr.msk.bf16.gmra.mxu0 %vm694_vm2, %v8970_v50  ;;  %v2500_v50 = vor.u32 %v2498_v57, %v2496_v2  ;;  %v4220_v41 = vor.u32 %v4219_v39, %v4215_v24  ;;  %v3273_v39 = vrot.slane %v8672_v9, 1 }
 0x144   : > { %1977 = vst.msk [vmem:[#allocation2 + $0x80] sm:$0xff] %vm1960_vm4, %v1912_v22  ;;  %v1915_v13 = vadd.f32 %v7465_v36, %v1261_v62  ;;  %v1253_v33 = vadd.f32 %v1252_v16, %v8826_v25  ;;  %7634 = vmatprep.mubr.msk.bf16.mxu0 %vm694_vm2, %v8990_v53  ;;  %v8008_v25 = vld [vmem:[%s8234_s25 + $0x110] ss:$0 sps:$4 sm:$0xff]   ;;  %v2508_v53 = vor.u32 %v2506_v4, %v2504_v42  ;;  %v2514_v36 = vshrl.u32 %v9022_v63, 16  ;;  %v9066_v22 = vld [vmem:[%s8234_s25 + $0x38] sm:$0xff]  }
 0x145   : > { %v7402_v23 = vpop.f32.mrf.mxu1  ;;  %7565 = vmatmul.mubr.msk.bf16.gmra.mxu1 %vm694_vm2, %v2489_v52  ;;  %v1721_v7 = vpop.f32.mrf.mxu0  ;;  %v2505_v31 = vsel %vm433_vm1, %v2500_v50, %v2504_v42  ;;  %v2518_v51 = vshll.u32 %v8008_v25, 16  ;;  %v4230_v4 = vshll.u32 %v8011_v59, 16  ;;  %v4234_v50 = vshrl.u32 %v8011_v59, 16  ;;  %v8013_v25 = vld [vmem:[%s8234_s25 + $0x40] sm:$0xff]  }
 0x146   : > { %1980 = vst.msk [vmem:[#allocation2 + $0x98] sm:$0xff] %vm1960_vm4, %v1915_v13  ;;  %v1913_v45 = vadd.f32 %v1708_v38, %v1253_v33  ;;  %v1274_v49 = vadd.f32 %v7402_v23, %v8831_v61  ;;  %7568 = vmatprep.mubr.msk.bf16.mxu1 %vm694_vm2, %v2497_v14  ;;  %v4222_v61 = vshll.u32 %v9043_v18, 16  ;;  %v2513_v54 = vsel %vm433_vm1, %v2508_v53, %v2512_v3 }
 0x147   : > { %v1265_v35 = vpop.f32.mrf.mxu1  ;;  %v7469_v46 = vpop.f32.mrf.mxu0  ;;  %v2516_v52 = vor.u32 %v2514_v36, %v2512_v3  ;;  %v3269_v14 = vrot.slane %v8654_v1, 1  ;;  %v4226_v33 = vshrl.u32 %v9043_v18, 16  ;;  %v4238_v42 = vshll.u32 %v9066_v22, 16 }
 0x148   : > { %1978 = vst.msk [vmem:[#allocation2 + $0x88] sm:$0xff] %vm1960_vm4, %v1913_v45  ;;  %v1918_v28 = vadd.f32 %v7468_v26, %v1274_v49  ;;  %v1266_v27 = vadd.f32 %v1265_v35, %v8839_v6  ;;  %v4224_v60 = vrot.slane %v4222_v61, 1  ;;  %v4232_v49 = vrot.slane %v4230_v4, 1 }
 0x149   : > { %v7403_v48 = vpop.f32.mrf.mxu1  ;;  %v1724_v43 = vpop.f32.mrf.mxu0  ;;  %v4246_v61 = vshll.u32 %v8013_v25, 16 }
 0x14a   : > { %1983 = vst.msk [vmem:[#allocation2 + $0xb0] sm:$0xff] %vm1960_vm4, %v1918_v28  ;;  %v1916_v30 = vadd.f32 %v1721_v7, %v1266_v27  ;;  %v1277_v21 = vadd.f32 %v7403_v48, %v8845_v20  ;;  %v4225_v7 = vsel %vm433_vm1, %v4220_v41, %v4224_v60  ;;  %v4228_v53 = vor.u32 %v4226_v33, %v4224_v60  ;;  %v9090_v48 = vld [vmem:[%s8234_s25 + $0x48] sm:$0xff]   ;;  %v8015_v60 = vld [vmem:[%s8234_s25 + $0x50] sm:$0xff]  }
 0x14b   : > { %v1268_v2 = vpop.f32.mrf.mxu1  ;;  %v7472_v6 = vpop.f32.mrf.mxu0  ;;  %7635 = vmatmul.mubr.msk.bf16.gmra.mxu0 %vm694_vm2, %v8996_v34  ;;  %v4236_v28 = vor.u32 %v4234_v50, %v4232_v49  ;;  %v4240_v27 = vrot.slane %v4238_v42, 1  ;;  %v4254_v9 = vshll.u32 %v9090_v48, 16  ;;  %v4248_v41 = vrot.slane %v4246_v61, 1  ;;  %v9142_v61 = vld [vmem:[%s8234_s25 + $0x68] sm:$0xff]  }
 0x14c   : > { %1981 = vst.msk [vmem:[#allocation2 + $0xa0] sm:$0xff] %vm1960_vm4, %v1916_v30  ;;  %v1919_v37 = vadd.f32 %v7469_v46, %v1277_v21  ;;  %v1269_v38 = vadd.f32 %v1268_v2, %v8850_v17  ;;  %7638 = vmatprep.mubr.msk.bf16.mxu0 %vm694_vm2, %v9016_v8  ;;  %v2520_v17 = vrot.slane %v2518_v51, 1  ;;  %v3268_v8 = vrot.slane %v8644_v56, 1 }
 0x14d   : > { %v7406_v20 = vpop.f32.mrf.mxu1  ;;  %7569 = vmatmul.mubr.msk.bf16.gmra.mxu1 %vm694_vm2, %v2505_v31  ;;  %v1737_v57 = vpop.f32.mrf.mxu0  ;;  %v4233_v36 = vsel %vm433_vm1, %v4228_v53, %v4232_v49  ;;  %v4242_v51 = vshrl.u32 %v9066_v22, 16  ;;  %v10376_v49 = vld [vmem:[#allocation4_spill] sm:$0xff] }
 0x14e   : > { %1984 = vst.msk [vmem:[#allocation2 + $0xb8] sm:$0xff] %vm1960_vm4, %v1919_v37  ;;  %v1917_v34 = vadd.f32 %v1724_v43, %v1269_v38  ;;  %v1290_v62 = vadd.f32 %v7406_v20, %v8855_v29  ;;  %7572 = vmatprep.mubr.msk.bf16.mxu1 %vm694_vm2, %v2513_v54  ;;  %v2521_v58 = vsel %vm433_vm1, %v2516_v52, %v2520_v17  ;;  %v4250_v54 = vshrl.u32 %v8013_v25, 16 }
 0x14f   : > { %v1281_v16 = vpop.f32.mrf.mxu1  ;;  %v7473_v26 = vpop.f32.mrf.mxu0  ;;  %v3270_v18 = vsel %vm1442_vm3, %v3268_v8, %v3269_v14  ;;  %v4256_v17 = vrot.slane %v4254_v9, 1 }
 0x150   : > { %1982 = vst.msk [vmem:[#allocation2 + $0xa8] sm:$0xff] %vm1960_vm4, %v1917_v34  ;;  %v1922_v5 = vadd.f32 %v7472_v6, %v1290_v62  ;;  %v1282_v13 = vadd.f32 %v1281_v16, %v8863_v15  ;;  %v4241_v6 = vsel %vm433_vm1, %v4236_v28, %v4240_v27  ;;  %v4244_v34 = vor.u32 %v4242_v51, %v4240_v27  ;;  %v9118_v16 = vld [vmem:[%s8234_s25 + $0x58] sm:$0xff]   ;;  %v8017_v28 = vld [vmem:[%s8234_s25 + $0x60] sm:$0xff]  }
 0x151   : > { %v7407_v29 = vpop.f32.mrf.mxu1  ;;  %v1740_v23 = vpop.f32.mrf.mxu0  ;;  %v8108_v51 = vld [vmem:[%s8234_s25 + $0x40] sm:$0xff]   ;;  %v4278_v9 = vshll.u32 %v8017_v28, 16 }
 0x152   : > { %1987 = vst.msk [vmem:[#allocation2 + $0xd0] sm:$0xff] %vm1960_vm4, %v1922_v5  ;;  %v1920_v56 = vadd.f32 %v1737_v57, %v1282_v13  ;;  %v1293_v1 = vadd.f32 %v7407_v29, %v8869_v55  ;;  %v8107_v13 = vld [vmem:[%s8234_s25 + $0x38] sm:$0xff]   ;;  %v4262_v29 = vshll.u32 %v8015_v60, 16  ;;  %v4249_v42 = vsel %vm433_vm1, %v4244_v34, %v4248_v41  ;;  %v10380_v34 = vld [vmem:[#allocation8_spill] sm:$0xff] }
 0x153   : > { %v1284_v45 = vpop.f32.mrf.mxu1  ;;  %v7476_v15 = vpop.f32.mrf.mxu0  ;;  %7639 = vmatmul.mubr.msk.bf16.gmra.mxu0 %vm694_vm2, %v9022_v63  ;;  %v3277_v33 = vrot.slane %v8107_v13, 1 }
 0x154   : > { %1985 = vst.msk [vmem:[#allocation2 + $0xc0] sm:$0xff] %vm1960_vm4, %v1920_v56  ;;  %v1923_v35 = vadd.f32 %v7473_v26, %v1293_v1  ;;  %v1285_v46 = vadd.f32 %v1284_v45, %v8876_v12  ;;  %7710 = vmatprep.mubr.msk.bf16.mxu0 %vm694_vm2, %v4225_v7  ;;  %v3271_v12 = vrot.slane %v8667_v0, 1  ;;  %v5382_v0 = vsel %vm791_vm0, %v8728_v47, 0  ;;  %v10375_v7 = vld [vmem:[#allocation3_spill] sm:$0xff] }
 0x155   : > { %v7410_v55 = vpop.f32.mrf.mxu1  ;;  %7573 = vmatmul.mubr.msk.bf16.gmra.mxu1 %vm694_vm2, %v2521_v58  ;;  %v1753_v3 = vpop.f32.mrf.mxu0  ;;  %v4927_v47 = vsel %vm791_vm0, %v8716_v10, 0  ;;  %v4252_v10 = vor.u32 %v4250_v54, %v4248_v41  ;;  %v4266_v45 = vshrl.u32 %v8015_v60, 16  ;;  %v4282_v60 = vshrl.u32 %v8017_v28, 16 }
 0x156   : > { %1988 = vst.msk [vmem:[#allocation2 + $0xd8] sm:$0xff] %vm1960_vm4, %v1923_v35  ;;  %v1921_v63 = vadd.f32 %v1740_v23, %v1285_v46  ;;  %v1306_v43 = vadd.f32 %v7410_v55, %v8881_v11  ;;  %7644 = vmatprep.mubr.msk.bf16.mxu1 %vm694_vm2, %v3270_v18  ;;  %v3272_v37 = vsel %vm1442_vm3, %v3269_v14, %v3271_v12 }
 0x157   : > { %v1297_v31 = vpop.f32.mrf.mxu1  ;;  %v7477_v24 = vpop.f32.mrf.mxu0  ;;  %v3274_v57 = vsel %vm1442_vm3, %v3271_v12, %v3273_v39  ;;  %v4257_v58 = vsel %vm433_vm1, %v4252_v10, %v4256_v17 }
 0x158   : > { %1986 = vst.msk [vmem:[#allocation2 + $0xc8] sm:$0xff] %vm1960_vm4, %v1921_v63  ;;  %v1926_v30 = vadd.f32 %v7476_v15, %v1306_v43  ;;  %v1298_v21 = vadd.f32 %v1297_v31, %v8890_v40  ;;  %v4270_v15 = vshll.u32 %v9118_v16, 16 }
 0x159   : > { %v7411_v2 = vpop.f32.mrf.mxu1  ;;  %v1756_v11 = vpop.f32.mrf.mxu0 }
 0x15a   : > { %1991 = vst.msk [vmem:[#allocation2 + $0xf0] sm:$0xff] %vm1960_vm4, %v1926_v30  ;;  %v1924_v59 = vadd.f32 %v1753_v3, %v1298_v21  ;;  %v1309_v40 = vadd.f32 %v7411_v2, %v8896_v32  ;;  %v4264_v3 = vrot.slane %v4262_v29, 1  ;;  %v10378_v21 = vld [vmem:[#allocation6_spill] sm:$0xff]  ;;  %v3279_v2 = vrot.slane %v8108_v51, 1 }
 0x15b   : > { %v1300_v38 = vpop.f32.mrf.mxu1  ;;  %v7480_v20 = vpop.f32.mrf.mxu0  ;;  %7711 = vmatmul.mubr.msk.bf16.vlgmr.msra.gmra.mxu0 %vm694_vm2, %v4233_v36 }
 0x15c   : > { %1989 = vst.msk [vmem:[#allocation2 + $0xe0] sm:$0xff] %vm1960_vm4, %v1924_v59  ;;  %v1927_v22 = vadd.f32 %v7477_v24, %v1309_v40  ;;  %v1301_v32 = vadd.f32 %v1300_v38, %v8903_v19  ;;  %7841 = vmatpush3.bf16.msra.mxu0 %v5382_v0  ;;  %7714 = vmatprep.mubr.msk.bf16.mxu0 %vm694_vm2, %v4241_v6  ;;  %v8106_v19 = vld [vmem:[%s8234_s25 + $0x30] sm:$0xff]   ;;  %v8109_v6 = vld [vmem:[%s8234_s25 + $0x48] sm:$0xff]   ;;  %v10379_v40 = vld [vmem:[#allocation7_spill] sm:$0xff] }
 0x15d   : > { %v7414_v62 = vpop.f32.mrf.mxu1  ;;  %7645 = vmatmul.mubr.msk.bf16.vlgmr.msra.gmra.mxu1 %vm694_vm2, %v3272_v37  ;;  %v1769_v52 = vpop.f32.mrf.mxu0  ;;  %v3275_v14 = vrot.slane %v8106_v19, 1  ;;  %v4268_v24 = vor.u32 %v4266_v45, %v4264_v3  ;;  %v3281_v54 = vrot.slane %v8109_v6, 1 }
 0x15e   : > { %1992 = vst.msk [vmem:[#allocation2 + $0xf8] sm:$0xff] %vm1960_vm4, %v1927_v22  ;;  %v1925_v26 = vadd.f32 %v1756_v11, %v1301_v32  ;;  %v1322_v8 = vadd.f32 %v7414_v62, %v8701_v44  ;;  %7775 = vmatpush3.bf16.msra.mxu1 %v4927_v47  ;;  %7648 = vmatprep.mubr.msk.bf16.mxu1 %vm694_vm2, %v3274_v57  ;;  %v4258_v44 = vshrl.u32 %v9090_v48, 16  ;;  %v10377_v48 = vld [vmem:[#allocation5_spill] sm:$0xff]  ;;  %v4286_v22 = vshll.u32 %v9142_v61, 16 }
 0x15f   : > { %v1313_v4 = vpop.f32.mrf.mxu1  ;;  %v7481_v5 = vpop.f32.mrf.mxu0  ;;  %v3276_v35 = vsel %vm1442_vm3, %v3273_v39, %v3275_v14  ;;  %v3278_v55 = vsel %vm1442_vm3, %v3275_v14, %v3277_v33  ;;  %v4272_v39 = vrot.slane %v4270_v15, 1  ;;  %v10381_v14 = vld [vmem:[#allocation9_spill] sm:$0xff]  ;;  %v8111_v15 = vld [vmem:[%s8234_s25 + $0x58] sm:$0xff]  }
 0x160   : > { %1990 = vst.msk [vmem:[#allocation2 + $0xe8] sm:$0xff] %vm1960_vm4, %v1925_v26  ;;  %v1930_v23 = vadd.f32 %v7480_v20, %v1322_v8  ;;  %v1314_v50 = vadd.f32 %v1313_v4, %v10375_v7  ;;  %v4260_v43 = vor.u32 %v4258_v44, %v4256_v17  ;;  %v4274_v20 = vshrl.u32 %v9118_v16, 16  ;;  %v8019_v8 = vld [vmem:[%s8234_s25 + $0x70] sm:$0xff]   ;;  %v9166_v7 = vld [vmem:[%s8234_s25 + $0x78] sm:$0xff]  }
 0x161   : > { %v7415_v56 = vpop.f32.mrf.mxu1  ;;  %v1772_v1 = vpop.f32.mrf.mxu0  ;;  %v4273_v41 = vsel %vm433_vm1, %v4268_v24, %v4272_v39  ;;  %v3282_v16 = vsel %vm1442_vm3, %v3279_v2, %v3281_v54  ;;  %v4280_v26 = vrot.slane %v4278_v9, 1 }
 0x162   : > { %1995 = vst.msk [vmem:[#allocation2 + $0x110] sm:$0xff] %vm1960_vm4, %v1930_v23  ;;  %v1928_v18 = vadd.f32 %v1769_v52, %v1314_v50  ;;  %v1325_v25 = vadd.f32 %v7415_v56, %v10376_v49  ;;  %v4265_v38 = vsel %vm433_vm1, %v4260_v43, %v4264_v3  ;;  %v3280_v52 = vsel %vm1442_vm3, %v3277_v33, %v3279_v2  ;;  %v8110_v56 = vld [vmem:[%s8234_s25 + $0x50] sm:$0xff]  }
 0x163   : > { %v1316_v46 = vpop.f32.mrf.mxu1  ;;  %v7484_v53 = vpop.f32.mrf.mxu0  ;;  %7715 = vmatmul.mubr.msk.bf16.gmra.mxu0 %vm694_vm2, %v4249_v42  ;;  %v4284_v29 = vor.u32 %v4282_v60, %v4280_v26  ;;  %v4288_v23 = vrot.slane %v4286_v22, 1  ;;  %v10382_v42 = vld [vmem:[#allocation10_spill] sm:$0xff]  ;;  %v4294_v49 = vshll.u32 %v8019_v8, 16  ;;  %v10385_v2 = vld [vmem:[#allocation13_spill] sm:$0xff]  ;;  %v8113_v22 = vld [vmem:[%s8234_s25 + $0x68] sm:$0xff]  }
 0x164   : > { %1993 = vst.msk [vmem:[#allocation2 + $0x100] sm:$0xff] %vm1960_vm4, %v1928_v18  ;;  %v1931_v27 = vadd.f32 %v7481_v5, %v1325_v25  ;;  %v1317_v63 = vadd.f32 %v1316_v46, %v10377_v48  ;;  %7718 = vmatprep.mubr.msk.bf16.mxu0 %vm694_vm2, %v4257_v58  ;;  %v4276_v5 = vor.u32 %v4274_v20, %v4272_v39  ;;  %v3285_v18 = vrot.slane %v8111_v15, 1 }
 0x165   : > { %v7418_v12 = vpop.f32.mrf.mxu1  ;;  %7649 = vmatmul.mubr.msk.bf16.gmra.mxu1 %vm694_vm2, %v3276_v35  ;;  %v1785_v31 = vpop.f32.mrf.mxu0  ;;  %v10383_v35 = vld [vmem:[#allocation11_spill] sm:$0xff]  ;;  %v4298_v48 = vshrl.u32 %v8019_v8, 16 }
 0x166   : > { %1996 = vst.msk [vmem:[#allocation2 + $0x118] sm:$0xff] %vm1960_vm4, %v1931_v27  ;;  %v1929_v30 = vadd.f32 %v1772_v1, %v1317_v63  ;;  %v1338_v36 = vadd.f32 %v7418_v12, %v10378_v21  ;;  %7652 = vmatprep.mubr.msk.bf16.mxu1 %vm694_vm2, %v3278_v55  ;;  %v3283_v1 = vrot.slane %v8110_v56, 1  ;;  %v4290_v55 = vshrl.u32 %v9142_v61, 16  ;;  %v10384_v12 = vld [vmem:[#allocation12_spill] sm:$0xff] }
 0x167   : > { %v1329_v11 = vpop.f32.mrf.mxu1  ;;  %v7485_v0 = vpop.f32.mrf.mxu0  ;;  %v4289_v27 = vsel %vm433_vm1, %v4284_v29, %v4288_v23  ;;  %v4302_v63 = vshll.u32 %v9166_v7, 16  ;;  %v4296_v21 = vrot.slane %v4294_v49, 1 }
 0x168   : > { %1994 = vst.msk [vmem:[#allocation2 + $0x108] sm:$0xff] %vm1960_vm4, %v1929_v30  ;;  %v1934_v59 = vadd.f32 %v7484_v53, %v1338_v36  ;;  %v1330_v37 = vadd.f32 %v1329_v11, %v10379_v40  ;;  %v4281_v53 = vsel %vm433_vm1, %v4276_v5, %v4280_v26  ;;  %v3284_v24 = vsel %vm1442_vm3, %v3281_v54, %v3283_v1  ;;  %v8021_v36 = vld [vmem:[%s8234_s25 + $0x80] sm:$0xff]   ;;  %v9190_v40 = vld [vmem:[%s8234_s25 + $0x88] sm:$0xff]  }
 0x169   : > { %v7419_v47 = vpop.f32.mrf.mxu1  ;;  %v1788_v57 = vpop.f32.mrf.mxu0  ;;  %v3286_v61 = vsel %vm1442_vm3, %v3283_v1, %v3285_v18  ;;  %v4300_v9 = vor.u32 %v4298_v48, %v4296_v21  ;;  %v10389_v1 = vld [vmem:[#allocation17_spill] sm:$0xff] }
 0x16a   : > { %1999 = vst.msk [vmem:[#allocation2 + $0x130] sm:$0xff] %vm1960_vm4, %v1934_v59  ;;  %v1932_v32 = vadd.f32 %v1785_v31, %v1330_v37  ;;  %v1341_v62 = vadd.f32 %v7419_v47, %v10380_v34  ;;  %v4304_v59 = vrot.slane %v4302_v63, 1  ;;  %v8112_v47 = vld [vmem:[%s8234_s25 + $0x60] sm:$0xff]   ;;  %v4310_v34 = vshll.u32 %v8021_v36, 16  ;;  %v8115_v63 = vld [vmem:[%s8234_s25 + $0x78] sm:$0xff]  }
 0x16b   : > { %v1332_v10 = vpop.f32.mrf.mxu1  ;;  %v7488_v17 = vpop.f32.mrf.mxu0  ;;  %7719 = vmatmul.mubr.msk.bf16.gmra.mxu0 %vm694_vm2, %v4265_v38  ;;  %v10386_v38 = vld [vmem:[#allocation14_spill] sm:$0xff] }
 0x16c   : > { %1997 = vst.msk [vmem:[#allocation2 + $0x120] sm:$0xff] %vm1960_vm4, %v1932_v32  ;;  %v1935_v19 = vadd.f32 %v7485_v0, %v1341_v62  ;;  %v1333_v4 = vadd.f32 %v1332_v10, %v10381_v14  ;;  %7722 = vmatprep.mubr.msk.bf16.mxu0 %vm694_vm2, %v4273_v41  ;;  %v4292_v0 = vor.u32 %v4290_v55, %v4288_v23  ;;  %v3289_v32 = vrot.slane %v8113_v22, 1 }
 0x16d   : > { %v7422_v13 = vpop.f32.mrf.mxu1  ;;  %7653 = vmatmul.mubr.msk.bf16.gmra.mxu1 %vm694_vm2, %v3280_v52  ;;  %v1801_v33 = vpop.f32.mrf.mxu0  ;;  %v10387_v52 = vld [vmem:[#allocation15_spill] sm:$0xff]  ;;  %v4314_v14 = vshrl.u32 %v8021_v36, 16 }
 0x16e   : > { %2000 = vst.msk [vmem:[#allocation2 + $0x138] sm:$0xff] %vm1960_vm4, %v1935_v19  ;;  %v1933_v50 = vadd.f32 %v1788_v57, %v1333_v4  ;;  %v1354_v44 = vadd.f32 %v7422_v13, %v10382_v42  ;;  %7656 = vmatprep.mubr.msk.bf16.mxu1 %vm694_vm2, %v3282_v16  ;;  %v3287_v57 = vrot.slane %v8112_v47, 1  ;;  %v4306_v16 = vshrl.u32 %v9166_v7, 16  ;;  %v10388_v13 = vld [vmem:[#allocation16_spill] sm:$0xff] }
 0x16f   : > { %v1345_v58 = vpop.f32.mrf.mxu1  ;;  %v7489_v45 = vpop.f32.mrf.mxu0  ;;  %v4305_v19 = vsel %vm433_vm1, %v4300_v9, %v4304_v59  ;;  %v4318_v4 = vshll.u32 %v9190_v40, 16  ;;  %v4312_v42 = vrot.slane %v4310_v34, 1 }
 0x170   : > { %1998 = vst.msk [vmem:[#allocation2 + $0x128] sm:$0xff] %vm1960_vm4, %v1933_v50  ;;  %v1938_v25 = vadd.f32 %v7488_v17, %v1354_v44  ;;  %v1346_v46 = vadd.f32 %v1345_v58, %v10383_v35  ;;  %v4297_v17 = vsel %vm433_vm1, %v4292_v0, %v4296_v21  ;;  %v3288_v29 = vsel %vm1442_vm3, %v3285_v18, %v3287_v57  ;;  %v9209_v44 = vld [vmem:[%s8234_s25 + $0x90] sm:$0xff]   ;;  %v9216_v35 = vld [vmem:[%s8234_s25 + $0x98] sm:$0xff]  }
 0x171   : > { %v7423_v3 = vpop.f32.mrf.mxu1  ;;  %v1804_v28 = vpop.f32.mrf.mxu0  ;;  %v3290_v7 = vsel %vm1442_vm3, %v3287_v57, %v3289_v32  ;;  %v4316_v49 = vor.u32 %v4314_v14, %v4312_v42  ;;  %v10393_v57 = vld [vmem:[#allocation21_spill] sm:$0xff] }
 0x172   : > { %2003 = vst.msk [vmem:[#allocation2 + $0x150] sm:$0xff] %vm1960_vm4, %v1938_v25  ;;  %v1936_v43 = vadd.f32 %v1801_v33, %v1346_v46  ;;  %v1357_v31 = vadd.f32 %v7423_v3, %v10384_v12  ;;  %v4320_v25 = vrot.slane %v4318_v4, 1  ;;  %v8114_v3 = vld [vmem:[%s8234_s25 + $0x70] sm:$0xff]   ;;  %v4326_v12 = vshll.u32 %v9209_v44, 16  ;;  %v8117_v4 = vld [vmem:[%s8234_s25 + $0x88] sm:$0xff]  }
 0x173   : > { %v1348_v39 = vpop.f32.mrf.mxu1  ;;  %v7492_v30 = vpop.f32.mrf.mxu0  ;;  %7723 = vmatmul.mubr.msk.bf16.gmra.mxu0 %vm694_vm2, %v4281_v53  ;;  %v10390_v53 = vld [vmem:[#allocation18_spill] sm:$0xff] }
 0x174   : > { %2001 = vst.msk [vmem:[#allocation2 + $0x140] sm:$0xff] %vm1960_vm4, %v1936_v43  ;;  %v1939_v51 = vadd.f32 %v7489_v45, %v1357_v31  ;;  %v1349_v11 = vadd.f32 %v1348_v39, %v10385_v2  ;;  %7726 = vmatprep.mubr.msk.bf16.mxu0 %vm694_vm2, %v4289_v27  ;;  %v4308_v45 = vor.u32 %v4306_v16, %v4304_v59  ;;  %v3293_v43 = vrot.slane %v8115_v63, 1 }
 0x175   : > { %v7426_v6 = vpop.f32.mrf.mxu1  ;;  %7657 = vmatmul.mubr.msk.bf16.gmra.mxu1 %vm694_vm2, %v3284_v24  ;;  %v1817_v54 = vpop.f32.mrf.mxu0  ;;  %v10391_v24 = vld [vmem:[#allocation19_spill] sm:$0xff]  ;;  %v4330_v2 = vshrl.u32 %v9209_v44, 16 }
 0x176   : > { %2004 = vst.msk [vmem:[#allocation2 + $0x158] sm:$0xff] %vm1960_vm4, %v1939_v51  ;;  %v1937_v37 = vadd.f32 %v1804_v28, %v1349_v11  ;;  %v1370_v20 = vadd.f32 %v7426_v6, %v10386_v38  ;;  %7660 = vmatprep.mubr.msk.bf16.mxu1 %vm694_vm2, %v3286_v61  ;;  %v3291_v28 = vrot.slane %v8114_v3, 1  ;;  %v4322_v61 = vshrl.u32 %v9190_v40, 16  ;;  %v10392_v6 = vld [vmem:[#allocation20_spill] sm:$0xff] }
 0x177   : > { %v1361_v41 = vpop.f32.mrf.mxu1  ;;  %v7493_v60 = vpop.f32.mrf.mxu0  ;;  %v4321_v51 = vsel %vm433_vm1, %v4316_v49, %v4320_v25  ;;  %v4334_v11 = vshll.u32 %v9216_v35, 16  ;;  %v4328_v38 = vrot.slane %v4326_v12, 1 }
 0x178   : > { %2002 = vst.msk [vmem:[#allocation2 + $0x148] sm:$0xff] %vm1960_vm4, %v1937_v37  ;;  %v1942_v62 = vadd.f32 %v7492_v30, %v1370_v20  ;;  %v1362_v10 = vadd.f32 %v1361_v41, %v10387_v52  ;;  %v4313_v30 = vsel %vm433_vm1, %v4308_v45, %v4312_v42  ;;  %v3292_v9 = vsel %vm1442_vm3, %v3289_v32, %v3291_v28  ;;  %v9237_v20 = vld [vmem:[%s8234_s25 + $0xa0] sm:$0xff]   ;;  %v9244_v52 = vld [vmem:[%s8234_s25 + $0xa8] sm:$0xff]  }
 0x179   : > { %v7427_v26 = vpop.f32.mrf.mxu1  ;;  %v1820_v8 = vpop.f32.mrf.mxu0  ;;  %v3294_v40 = vsel %vm1442_vm3, %v3291_v28, %v3293_v43  ;;  %v4332_v34 = vor.u32 %v4330_v2, %v4328_v38  ;;  %v4350_v45 = vshll.u32 %v9244_v52, 16  ;;  %v9265_v28 = vld [vmem:[%s8234_s25 + $0xb0] sm:$0xff]  }
 0x17a   : > { %2007 = vst.msk [vmem:[#allocation2 + $0x170] sm:$0xff] %vm1960_vm4, %v1942_v62  ;;  %v1940_v5 = vadd.f32 %v1817_v54, %v1362_v10  ;;  %v1373_v33 = vadd.f32 %v7427_v26, %v10388_v13  ;;  %v4336_v62 = vrot.slane %v4334_v11, 1  ;;  %v8116_v26 = vld [vmem:[%s8234_s25 + $0x80] sm:$0xff]   ;;  %v4342_v13 = vshll.u32 %v9237_v20, 16 }
 0x17b   : > { %v1364_v23 = vpop.f32.mrf.mxu1  ;;  %v7496_v50 = vpop.f32.mrf.mxu0  ;;  %7727 = vmatmul.mubr.msk.bf16.gmra.mxu0 %vm694_vm2, %v4297_v17  ;;  %v10394_v17 = vld [vmem:[#allocation22_spill] sm:$0xff] }
 0x17c   : > { %2005 = vst.msk [vmem:[#allocation2 + $0x160] sm:$0xff] %vm1960_vm4, %v1940_v5  ;;  %v1943_v56 = vadd.f32 %v7493_v60, %v1373_v33  ;;  %v1365_v58 = vadd.f32 %v1364_v23, %v10389_v1  ;;  %7730 = vmatprep.mubr.msk.bf16.mxu0 %vm694_vm2, %v4305_v19  ;;  %v4324_v60 = vor.u32 %v4322_v61, %v4320_v25  ;;  %v3297_v5 = vrot.slane %v8117_v4, 1 }
 0x17d   : > { %v7430_v15 = vpop.f32.mrf.mxu1  ;;  %7661 = vmatmul.mubr.msk.bf16.gmra.mxu1 %vm694_vm2, %v3288_v29  ;;  %v1833_v18 = vpop.f32.mrf.mxu0  ;;  %v10395_v29 = vld [vmem:[#allocation23_spill] sm:$0xff]  ;;  %v4337_v1 = vsel %vm433_vm1, %v4332_v34, %v4336_v62  ;;  %v4344_v3 = vrot.slane %v4342_v13, 1  ;;  %v10401_v13 = vld [vmem:[#allocation29_spill] sm:$0xff] }
 0x17e   : > { %2008 = vst.msk [vmem:[#allocation2 + $0x178] sm:$0xff] %vm1960_vm4, %v1943_v56  ;;  %v1941_v46 = vadd.f32 %v1820_v8, %v1365_v58  ;;  %v1386_v55 = vadd.f32 %v7430_v15, %v10390_v53  ;;  %7664 = vmatprep.mubr.msk.bf16.mxu1 %vm694_vm2, %v3290_v7  ;;  %v3295_v8 = vrot.slane %v8116_v26, 1  ;;  %v4338_v7 = vshrl.u32 %v9216_v35, 16 }
 0x17f   : > { %v1377_v27 = vpop.f32.mrf.mxu1  ;;  %v7497_v48 = vpop.f32.mrf.mxu0  ;;  %v4346_v58 = vshrl.u32 %v9237_v20, 16 }
 0x180   : > { %2006 = vst.msk [vmem:[#allocation2 + $0x168] sm:$0xff] %vm1960_vm4, %v1941_v46  ;;  %v1946_v31 = vadd.f32 %v7496_v50, %v1386_v55  ;;  %v1378_v39 = vadd.f32 %v1377_v27, %v10391_v24  ;;  %v4329_v50 = vsel %vm433_vm1, %v4324_v60, %v4328_v38  ;;  %v3296_v25 = vsel %vm1442_vm3, %v3293_v43, %v3295_v8 }
 0x181   : > { %v7431_v21 = vpop.f32.mrf.mxu1  ;;  %v1836_v36 = vpop.f32.mrf.mxu0  ;;  %v3298_v55 = vsel %vm1442_vm3, %v3295_v8, %v3297_v5  ;;  %v4340_v12 = vor.u32 %v4338_v7, %v4336_v62  ;;  %v4348_v24 = vor.u32 %v4346_v58, %v4344_v3  ;;  %v10400_v62 = vld [vmem:[#allocation28_spill] sm:$0xff] }
 0x182   : > { %2011 = vst.msk [vmem:[#allocation2 + $0x190] sm:$0xff] %vm1960_vm4, %v1946_v31  ;;  %v1944_v0 = vadd.f32 %v1833_v18, %v1378_v39  ;;  %v1389_v54 = vadd.f32 %v7431_v21, %v10392_v6  ;;  %v10396_v18 = vld [vmem:[#allocation24_spill] sm:$0xff]  ;;  %v4352_v39 = vrot.slane %v4350_v45, 1  ;;  %v10398_v21 = vld [vmem:[#allocation26_spill] sm:$0xff]  ;;  %v8120_v45 = vld [vmem:[%s8234_s25 + $0xa0] sm:$0xff]  }
 0x183   : > { %v1380_v59 = vpop.f32.mrf.mxu1  ;;  %v7500_v37 = vpop.f32.mrf.mxu0  ;;  %7731 = vmatmul.mubr.msk.bf16.gmra.mxu0 %vm694_vm2, %v4313_v30  ;;  %v9272_v30 = vld [vmem:[%s8234_s25 + $0xb8] sm:$0xff]   ;;  %v4345_v38 = vsel %vm433_vm1, %v4340_v12, %v4344_v3  ;;  %v10403_v3 = vld [vmem:[#allocation31_spill] sm:$0xff] }
 0x184   : > { %2009 = vst.msk [vmem:[#allocation2 + $0x180] sm:$0xff] %vm1960_vm4, %v1944_v0  ;;  %v1947_v47 = vadd.f32 %v7497_v48, %v1389_v54  ;;  %v1381_v41 = vadd.f32 %v1380_v59, %v10393_v57  ;;  %7734 = vmatprep.mubr.msk.bf16.mxu0 %vm694_vm2, %v4321_v51  ;;  %v10397_v48 = vld [vmem:[#allocation25_spill] sm:$0xff]  ;;  %v8119_v6 = vld [vmem:[%s8234_s25 + $0x98] sm:$0xff]   ;;  %v4353_v60 = vsel %vm433_vm1, %v4348_v24, %v4352_v39 }
 0x185   : > { %v7434_v22 = vpop.f32.mrf.mxu1  ;;  %7665 = vmatmul.mubr.msk.bf16.gmra.mxu1 %vm694_vm2, %v3292_v9  ;;  %v1849_v32 = vpop.f32.mrf.mxu0  ;;  %v8118_v51 = vld [vmem:[%s8234_s25 + $0x90] sm:$0xff]   ;;  %v3301_v54 = vrot.slane %v8119_v6, 1  ;;  %v4358_v9 = vshll.u32 %v9265_v28, 16 }
 0x186   : > { %2012 = vst.msk [vmem:[#allocation2 + $0x198] sm:$0xff] %vm1960_vm4, %v1947_v47  ;;  %v1945_v10 = vadd.f32 %v1836_v36, %v1381_v41  ;;  %v1402_v16 = vadd.f32 %v7434_v22, %v10394_v17  ;;  %7668 = vmatprep.mubr.msk.bf16.mxu1 %vm694_vm2, %v3294_v40  ;;  %v3299_v2 = vrot.slane %v8118_v51, 1  ;;  %v4354_v47 = vshrl.u32 %v9244_v52, 16 }
 0x187   : > { %v1393_v19 = vpop.f32.mrf.mxu1  ;;  %v7501_v14 = vpop.f32.mrf.mxu0  ;;  %v4362_v22 = vshrl.u32 %v9265_v28, 16 }
 0x188   : > { %2010 = vst.msk [vmem:[#allocation2 + $0x188] sm:$0xff] %vm1960_vm4, %v1945_v10  ;;  %v1950_v33 = vadd.f32 %v7500_v37, %v1402_v16  ;;  %v1394_v23 = vadd.f32 %v1393_v19, %v10395_v29  ;;  %v10399_v37 = vld [vmem:[#allocation27_spill] sm:$0xff]  ;;  %v3300_v17 = vsel %vm1442_vm3, %v3297_v5, %v3299_v2  ;;  %v3302_v8 = vsel %vm1442_vm3, %v3299_v2, %v3301_v54 }
 0x189   : > { %v7435_v42 = vpop.f32.mrf.mxu1  ;;  %v1852_v56 = vpop.f32.mrf.mxu0  ;;  %v4360_v19 = vrot.slane %v4358_v9, 1  ;;  %v4356_v29 = vor.u32 %v4354_v47, %v4352_v39  ;;  %v9321_v9 = vld [vmem:[%s8234_s25 + $0xd0] sm:$0xff]  }
 0x18a   : > { %2015 = vst.msk [vmem:[#allocation2 + $0x1b0] sm:$0xff] %vm1960_vm4, %v1950_v33  ;;  %v1948_v15 = vadd.f32 %v1849_v32, %v1394_v23  ;;  %v1405_v49 = vadd.f32 %v7435_v42, %v10396_v18  ;;  %v4366_v32 = vshll.u32 %v9272_v30, 16  ;;  %v9300_v42 = vld [vmem:[%s8234_s25 + $0xc8] sm:$0xff]  }
 0x18b   : > { %v1396_v46 = vpop.f32.mrf.mxu1  ;;  %v7504_v53 = vpop.f32.mrf.mxu0  ;;  %7735 = vmatmul.mubr.msk.bf16.gmra.mxu0 %vm694_vm2, %v4329_v50  ;;  %v4364_v50 = vor.u32 %v4362_v22, %v4360_v19  ;;  %v4382_v39 = vshll.u32 %v9300_v42, 16 }
 0x18c   : > { %2013 = vst.msk [vmem:[#allocation2 + $0x1a0] sm:$0xff] %vm1960_vm4, %v1948_v15  ;;  %v1951_v27 = vadd.f32 %v7501_v14, %v1405_v49  ;;  %v1397_v63 = vadd.f32 %v1396_v46, %v10397_v48  ;;  %7738 = vmatprep.mubr.msk.bf16.mxu0 %vm694_vm2, %v4337_v1  ;;  %v9293_v14 = vld [vmem:[%s8234_s25 + $0xc0] sm:$0xff]   ;;  %v4368_v7 = vrot.slane %v4366_v32, 1  ;;  %v10402_v1 = vld [vmem:[#allocation30_spill] sm:$0xff]  ;;  %v3303_v15 = vrot.slane %v8120_v45, 1 }
 0x18d   : > { %v7438_v43 = vpop.f32.mrf.mxu1  ;;  %7669 = vmatmul.mubr.msk.bf16.gmra.mxu1 %vm694_vm2, %v3296_v25  ;;  %v1865_v31 = vpop.f32.mrf.mxu0  ;;  %v8121_v25 = vld [vmem:[%s8234_s25 + $0xa8] sm:$0xff]   ;;  %v4361_v48 = vsel %vm433_vm1, %v4356_v29, %v4360_v19  ;;  %v4378_v24 = vshrl.u32 %v9293_v14, 16 }
 0x18e   : > { %2016 = vst.msk [vmem:[#allocation2 + $0x1b8] sm:$0xff] %vm1960_vm4, %v1951_v27  ;;  %v1949_v61 = vadd.f32 %v1852_v56, %v1397_v63  ;;  %v1418_v36 = vadd.f32 %v7438_v43, %v10398_v21  ;;  %7672 = vmatprep.mubr.msk.bf16.mxu1 %vm694_vm2, %v3298_v55  ;;  %v3305_v46 = vrot.slane %v8121_v25, 1  ;;  %v4370_v63 = vshrl.u32 %v9272_v30, 16  ;;  %v10404_v21 = vld [vmem:[#allocation32_spill] sm:$0xff] }
 0x18f   : > { %v1409_v11 = vpop.f32.mrf.mxu1  ;;  %v7505_v0 = vpop.f32.mrf.mxu0  ;;  %v3304_v51 = vsel %vm1442_vm3, %v3301_v54, %v3303_v15 }
 0x190   : > { %2014 = vst.msk [vmem:[#allocation2 + $0x1a8] sm:$0xff] %vm1960_vm4, %v1949_v61  ;;  %v1954_v59 = vadd.f32 %v7504_v53, %v1418_v36  ;;  %v1410_v40 = vadd.f32 %v1409_v11, %v10399_v37  ;;  %v4374_v53 = vshll.u32 %v9293_v14, 16  ;;  %v10405_v37 = vld [vmem:[#allocation33_spill] sm:$0xff] }
 0x191   : > { %v7439_v57 = vpop.f32.mrf.mxu1  ;;  %v1868_v41 = vpop.f32.mrf.mxu0 }
 0x192   : > { %2019 = vst.msk [vmem:[#allocation2 + $0x1d0] sm:$0xff] %vm1960_vm4, %v1954_v59  ;;  %v1952_v34 = vadd.f32 %v1865_v31, %v1410_v40  ;;  %v1421_v10 = vadd.f32 %v7439_v57, %v10400_v62  ;;  %v4369_v31 = vsel %vm433_vm1, %v4364_v50, %v4368_v7  ;;  %v4376_v6 = vrot.slane %v4374_v53, 1 }
 0x193   : > { %v1412_v16 = vpop.f32.mrf.mxu1  ;;  %v7508_v26 = vpop.f32.mrf.mxu0  ;;  %7739 = vmatmul.mubr.msk.bf16.gmra.mxu0 %vm694_vm2, %v4345_v38  ;;  %v4372_v38 = vor.u32 %v4370_v63, %v4368_v7  ;;  %v8124_v63 = vld [vmem:[%s8234_s25 + $0xc0] sm:$0xff]  }
 0x194   : > { %2017 = vst.msk [vmem:[#allocation2 + $0x1c0] sm:$0xff] %vm1960_vm4, %v1952_v34  ;;  %v1955_v4 = vadd.f32 %v7505_v0, %v1421_v10  ;;  %v1413_v33 = vadd.f32 %v1412_v16, %v10401_v13  ;;  %7742 = vmatprep.mubr.msk.bf16.mxu0 %vm694_vm2, %v4353_v60  ;;  %v3306_v0 = vsel %vm1442_vm3, %v3303_v15, %v3305_v46  ;;  %v9328_v60 = vld [vmem:[%s8234_s25 + $0xd8] sm:$0xff]   ;;  %v8122_v34 = vld [vmem:[%s8234_s25 + $0xb0] sm:$0xff]   ;;  %v4386_v13 = vshrl.u32 %v9300_v42, 16 }
 0x195   : > { %v7442_v5 = vpop.f32.mrf.mxu1  ;;  %7673 = vmatmul.mubr.msk.bf16.gmra.mxu1 %vm694_vm2, %v3300_v17  ;;  %v1881_v23 = vpop.f32.mrf.mxu0  ;;  %v4380_v57 = vor.u32 %v4378_v24, %v4376_v6  ;;  %v3307_v62 = vrot.slane %v8122_v34, 1  ;;  %v8123_v16 = vld [vmem:[%s8234_s25 + $0xb8] sm:$0xff]   ;;  %v4398_v50 = vshll.u32 %v9328_v60, 16  ;;  %v8125_v24 = vld [vmem:[%s8234_s25 + $0xc8] sm:$0xff]  }
 0x196   : > { %2020 = vst.msk [vmem:[#allocation2 + $0x1d8] sm:$0xff] %vm1960_vm4, %v1955_v4  ;;  %v1953_v56 = vadd.f32 %v1868_v41, %v1413_v33  ;;  %v1434_v58 = vadd.f32 %v7442_v5, %v10402_v1  ;;  %7676 = vmatprep.mubr.msk.bf16.mxu1 %vm694_vm2, %v3302_v8  ;;  %v4384_v41 = vrot.slane %v4382_v39, 1  ;;  %v4390_v8 = vshll.u32 %v9321_v9, 16 }
 0x197   : > { %v1425_v18 = vpop.f32.mrf.mxu1  ;;  %v7509_v49 = vpop.f32.mrf.mxu0  ;;  %v4377_v4 = vsel %vm433_vm1, %v4372_v38, %v4376_v6  ;;  %v3313_v39 = vrot.slane %v8125_v24, 1  ;;  %v9407_v24 = vld [vmem:[%s8234_s25 + $0x100] sm:$0xff]  }
 0x198   : > { %2018 = vst.msk [vmem:[#allocation2 + $0x1c8] sm:$0xff] %vm1960_vm4, %v1953_v56  ;;  %v1958_v55 = vadd.f32 %v7508_v26, %v1434_v58  ;;  %v1426_v27 = vadd.f32 %v1425_v18, %v10403_v3  ;;  %v3309_v26 = vrot.slane %v8123_v16, 1  ;;  %v4385_v5 = vsel %vm433_vm1, %v4380_v57, %v4384_v41  ;;  %v9351_v18 = vld [vmem:[%s8234_s25 + $0xe0] sm:$0xff]  }
 0x199   : > { %v7443_v12 = vpop.f32.mrf.mxu1  ;;  %v1884_v43 = vpop.f32.mrf.mxu0  ;;  %v3308_v56 = vsel %vm1442_vm3, %v3305_v46, %v3307_v62  ;;  %v4392_v15 = vrot.slane %v4390_v8, 1  ;;  %v4388_v25 = vor.u32 %v4386_v13, %v4384_v41  ;;  %v4400_v3 = vrot.slane %v4398_v50, 1  ;;  %v9379_v41 = vld [vmem:[%s8234_s25 + $0xf0] sm:$0xff]  }
 0x19a   : > { %2023 = vst.msk [vmem:[#allocation2 + $0x1f0] sm:$0xff] %vm1960_vm4, %v1958_v55  ;;  %v1956_v61 = vadd.f32 %v1881_v23, %v1426_v27  ;;  %v1437_v36 = vadd.f32 %v7443_v12, %v10404_v21  ;;  %v4394_v23 = vshrl.u32 %v9321_v9, 16  ;;  %v3310_v45 = vsel %vm1442_vm3, %v3307_v62, %v3309_v26  ;;  %v9358_v27 = vld [vmem:[%s8234_s25 + $0xe8] sm:$0xff]  }
 0x19b   : > { %v1428_v2 = vpop.f32.mrf.mxu1  ;;  %v7580_v11 = vpop.f32.mrf.mxu0  ;;  %7743 = vmatmul.mubr.msk.bf16.gmra.mxu0 %vm694_vm2, %v4361_v48  ;;  %v3311_v12 = vrot.slane %v8124_v63, 1  ;;  %v4410_v6 = vshrl.u32 %v9351_v18, 16  ;;  %v4422_v50 = vshll.u32 %v9379_v41, 16 }
 0x19c   : > { %2021 = vst.msk [vmem:[#allocation2 + $0x1e0] sm:$0xff] %vm1960_vm4, %v1956_v61  ;;  %v1959_v59 = vadd.f32 %v7509_v49, %v1437_v36  ;;  %v1429_v40 = vadd.f32 %v1428_v2, %v10405_v37  ;;  %7746 = vmatprep.mubr.msk.bf16.mxu0 %vm694_vm2, %v4369_v31  ;;  %v4396_v55 = vor.u32 %v4394_v23, %v4392_v15  ;;  %v4406_v61 = vshll.u32 %v9351_v18, 16 }
 0x19d   : > { %v7514_v54 = vpop.f32.mrf.mxu1  ;;  %7677 = vmatmul.mubr.msk.bf16.gmra.mxu1 %vm694_vm2, %v3304_v51  ;;  %v3011_v47 = vpop.f32.mrf.mxu0  ;;  %v4393_v36 = vsel %vm433_vm1, %v4388_v25, %v4392_v15  ;;  %v4402_v51 = vshrl.u32 %v9328_v60, 16 }
 0x19e   : > { %2024 = vst.msk [vmem:[#allocation2 + $0x1f8] sm:$0xff] %vm1960_vm4, %v1959_v59  ;;  %v1957_v22 = vadd.f32 %v1884_v43, %v1429_v40  ;;  %v9331_v32 = vadd.f32 %v7580_v11, %v7514_v54  ;;  %7680 = vmatprep.mubr.msk.bf16.mxu1 %vm694_vm2, %v3306_v0  ;;  %v4401_v0 = vsel %vm433_vm1, %v4396_v55, %v4400_v3  ;;  %v4414_v59 = vshll.u32 %v9358_v27, 16 }
 0x19f   : > { %v2655_v10 = vpop.f32.mrf.mxu1  ;;  %v7581_v17 = vpop.f32.mrf.mxu0  ;;  %v3312_v40 = vsel %vm1442_vm3, %v3309_v26, %v3311_v12  ;;  %v4408_v57 = vrot.slane %v4406_v61, 1  ;;  %v4404_v34 = vor.u32 %v4402_v51, %v4400_v3  ;;  %v9386_v26 = vld [vmem:[%s8234_s25 + $0xf8] sm:$0xff]  }
 0x1a0   : > { %2022 = vst.msk [vmem:[#allocation2 + $0x1e8] sm:$0xff] %vm1960_vm4, %v1957_v22  ;;  %v9338_v19 = vadd.f32 %v3011_v47, %v2655_v10  ;;  %v3314_v47 = vsel %vm1442_vm3, %v3311_v12, %v3313_v39  ;;  %v4416_v16 = vrot.slane %v4414_v59, 1  ;;  %v8128_v59 = vld [vmem:[%s8234_s25 + $0xe0] sm:$0xff]  }
 0x1a1   : > { %v7515_v33 = vpop.f32.mrf.mxu1  ;;  %v3014_v29 = vpop.f32.mrf.mxu0 }
 0x1a2   : > { %v9345_v7 = vadd.f32 %v7581_v17, %v7515_v33  ;;  %v4412_v17 = vor.u32 %v4410_v6, %v4408_v57 }
 0x1a3   : > { %v2658_v1 = vpop.f32.mrf.mxu1  ;;  %v7584_v58 = vpop.f32.mrf.mxu0  ;;  %7747 = vmatmul.mubr.msk.bf16.gmra.mxu0 %vm694_vm2, %v4377_v4  ;;  %v8126_v4 = vld [vmem:[%s8234_s25 + $0xd0] sm:$0xff]  }
 0x1a4   : > { %v9353_v49 = vadd.f32 %v3014_v29, %v2658_v1  ;;  %7750 = vmatprep.mubr.msk.bf16.mxu0 %vm694_vm2, %v4385_v5  ;;  %v3315_v13 = vrot.slane %v8126_v4, 1  ;;  %v8127_v5 = vld [vmem:[%s8234_s25 + $0xd8] sm:$0xff]   ;;  %v4409_v1 = vsel %vm433_vm1, %v4404_v34, %v4408_v57  ;;  %v4417_v25 = vsel %vm433_vm1, %v4412_v17, %v4416_v16 }
 0x1a5   : > { %v7518_v53 = vpop.f32.mrf.mxu1  ;;  %7681 = vmatmul.mubr.msk.bf16.gmra.mxu1 %vm694_vm2, %v3308_v56  ;;  %v3027_v46 = vpop.f32.mrf.mxu0  ;;  %v3317_v23 = vrot.slane %v8127_v5, 1  ;;  %v4438_v34 = vshll.u32 %v9407_v24, 16  ;;  %v4434_v17 = vshrl.u32 %v9386_v26, 16 }
 0x1a6   : > { %v9360_v48 = vadd.f32 %v7584_v58, %v7518_v53  ;;  %7684 = vmatprep.mubr.msk.bf16.mxu1 %vm694_vm2, %v3310_v45  ;;  %v4418_v58 = vshrl.u32 %v9358_v27, 16  ;;  %v4426_v53 = vshrl.u32 %v9379_v41, 16  ;;  %v3316_v3 = vsel %vm1442_vm3, %v3313_v39, %v3315_v13 }
 0x1a7   : > { %v2671_v43 = vpop.f32.mrf.mxu1  ;;  %v7585_v31 = vpop.f32.mrf.mxu0 }
 0x1a8   : > { %v9366_v21 = vadd.f32 %v3027_v46, %v2671_v43  ;;  %v4430_v46 = vshll.u32 %v9386_v26, 16  ;;  %v3318_v43 = vsel %vm1442_vm3, %v3315_v13, %v3317_v23 }
 0x1a9   : > { %v7519_v2 = vpop.f32.mrf.mxu1  ;;  %v3030_v11 = vpop.f32.mrf.mxu0 }
 0x1aa   : > { %v9373_v37 = vadd.f32 %v7585_v31, %v7519_v2  ;;  %v4424_v31 = vrot.slane %v4422_v50, 1 }
 0x1ab   : > { %v2674_v38 = vpop.f32.mrf.mxu1  ;;  %v7588_v54 = vpop.f32.mrf.mxu0  ;;  %7751 = vmatmul.mubr.msk.bf16.gmra.mxu0 %vm694_vm2, %v4393_v36  ;;  %v4420_v36 = vor.u32 %v4418_v58, %v4416_v16 }
 0x1ac   : > { %v9381_v22 = vadd.f32 %v3030_v11, %v2674_v38  ;;  %7754 = vmatprep.mubr.msk.bf16.mxu0 %vm694_vm2, %v4401_v0  ;;  %v4428_v2 = vor.u32 %v4426_v53, %v4424_v31  ;;  %v4432_v11 = vrot.slane %v4430_v46, 1  ;;  %v9414_v0 = vld [vmem:[%s8234_s25 + $0x108] sm:$0xff]  }
 0x1ad   : > { %v7522_v62 = vpop.f32.mrf.mxu1  ;;  %7685 = vmatmul.mubr.msk.bf16.gmra.mxu1 %vm694_vm2, %v3312_v40  ;;  %v3043_v10 = vpop.f32.mrf.mxu0  ;;  %v3319_v40 = vrot.slane %v8128_v59, 1  ;;  %v8131_v59 = vld [vmem:[%s8234_s25 + $0xf8] sm:$0xff]  }
 0x1ae   : > { %v9388_v8 = vadd.f32 %v7588_v54, %v7522_v62  ;;  %7688 = vmatprep.mubr.msk.bf16.mxu1 %vm694_vm2, %v3314_v47  ;;  %v8129_v47 = vld [vmem:[%s8234_s25 + $0xe8] sm:$0xff]   ;;  %v4433_v13 = vsel %vm433_vm1, %v4428_v2, %v4432_v11  ;;  %v4436_v46 = vor.u32 %v4434_v17, %v4432_v11  ;;  %v3325_v11 = vrot.slane %v8131_v59, 1 }
 0x1af   : > { %v2687_v33 = vpop.f32.mrf.mxu1  ;;  %v7589_v29 = vpop.f32.mrf.mxu0  ;;  %v3321_v57 = vrot.slane %v8129_v47, 1  ;;  %v3320_v50 = vsel %vm1442_vm3, %v3317_v23, %v3319_v40  ;;  %v4450_v47 = vshrl.u32 %v9414_v0, 16 }
 0x1b0   : > { %v9394_v56 = vadd.f32 %v3043_v10, %v2687_v33  ;;  %v4425_v10 = vsel %vm433_vm1, %v4420_v36, %v4424_v31  ;;  %v4442_v33 = vshrl.u32 %v9407_v24, 16  ;;  %v8130_v36 = vld [vmem:[%s8234_s25 + $0xf0] sm:$0xff]  }
 0x1b1   : > { %v7523_v45 = vpop.f32.mrf.mxu1  ;;  %v3046_v15 = vpop.f32.mrf.mxu0 }
 0x1b2   : > { %v9401_v55 = vadd.f32 %v7589_v29, %v7523_v45  ;;  %v4446_v29 = vshll.u32 %v9414_v0, 16  ;;  %v3322_v45 = vsel %vm1442_vm3, %v3319_v40, %v3321_v57 }
 0x1b3   : > { %v2690_v63 = vpop.f32.mrf.mxu1  ;;  %v7592_v12 = vpop.f32.mrf.mxu0  ;;  %7755 = vmatmul.mubr.msk.bf16.gmra.mxu0 %vm694_vm2, %v4409_v1 }
 0x1b4   : > { %v9409_v61 = vadd.f32 %v3046_v15, %v2690_v63  ;;  %7758 = vmatprep.mubr.msk.bf16.mxu0 %vm694_vm2, %v4417_v25  ;;  %v4440_v15 = vrot.slane %v4438_v34, 1  ;;  %v9435_v25 = vld [vmem:[%s8234_s25 + $0x110] sm:$0xff]  }
 0x1b5   : > { %v7526_v51 = vpop.f32.mrf.mxu1  ;;  %7689 = vmatmul.mubr.msk.bf16.gmra.mxu1 %vm694_vm2, %v3316_v3  ;;  %v3059_v39 = vpop.f32.mrf.mxu0  ;;  %v4454_v40 = vshll.u32 %v9435_v25, 16 }
 0x1b6   : > { %v9416_v6 = vadd.f32 %v7592_v12, %v7526_v51  ;;  %7692 = vmatprep.mubr.msk.bf16.mxu1 %vm694_vm2, %v3318_v43  ;;  %v4444_v63 = vor.u32 %v4442_v33, %v4440_v15  ;;  %v4448_v12 = vrot.slane %v4446_v29, 1  ;;  %v9442_v43 = vld [vmem:[%s8234_s25 + $0x118] sm:$0xff]   ;;  %v3323_v51 = vrot.slane %v8130_v36, 1 }
 0x1b7   : > { %v2703_v38 = vpop.f32.mrf.mxu1  ;;  %v7593_v54 = vpop.f32.mrf.mxu0 }
 0x1b8   : > { %v9422_v62 = vadd.f32 %v3059_v39, %v2703_v38  ;;  %v4449_v17 = vsel %vm433_vm1, %v4444_v63, %v4448_v12  ;;  %v3324_v33 = vsel %vm1442_vm3, %v3321_v57, %v3323_v51 }
 0x1b9   : > { %v7527_v16 = vpop.f32.mrf.mxu1  ;;  %v3062_v4 = vpop.f32.mrf.mxu0 }
 0x1ba   : > { %v9429_v5 = vadd.f32 %v7593_v54, %v7527_v16  ;;  %v4441_v54 = vsel %vm433_vm1, %v4436_v46, %v4440_v15  ;;  %v4458_v16 = vshrl.u32 %v9435_v25, 16  ;;  %v4452_v15 = vor.u32 %v4450_v47, %v4448_v12  ;;  %v9466_v46 = vld [vmem:[%s8234_s25 + $0x120] ss:$0 sps:$4 sm:$0xff]  }
 0x1bb   : > { %v2706_v1 = vpop.f32.mrf.mxu1  ;;  %v7596_v58 = vpop.f32.mrf.mxu0  ;;  %7759 = vmatmul.mubr.msk.bf16.gmra.mxu0 %vm694_vm2, %v4425_v10  ;;  %10406 = vst [vmem:[#allocation3_spill] sm:$0xff] %v9466_v46 }
 0x1bc   : > { %v9437_v53 = vadd.f32 %v3062_v4, %v2706_v1  ;;  %7762 = vmatprep.mubr.msk.bf16.mxu0 %vm694_vm2, %v4433_v13  ;;  %v4462_v4 = vshll.u32 %v9442_v43, 16  ;;  %v3326_v1 = vsel %vm1442_vm3, %v3323_v51, %v3325_v11  ;;  %v8132_v51 = vld [vmem:[%s8234_s25 + $0x100] sm:$0xff]  }
 0x1bd   : > { %v7530_v3 = vpop.f32.mrf.mxu1  ;;  %7693 = vmatmul.mubr.msk.bf16.gmra.mxu1 %vm694_vm2, %v3320_v50  ;;  %v3075_v23 = vpop.f32.mrf.mxu0 }
 0x1be   : > { %v9444_v31 = vadd.f32 %v7596_v58, %v7530_v3  ;;  %7696 = vmatprep.mubr.msk.bf16.mxu1 %vm694_vm2, %v3322_v45  ;;  %v4456_v58 = vrot.slane %v4454_v40, 1  ;;  %v4464_v63 = vrot.slane %v4462_v4, 1  ;;  %v8133_v40 = vld [vmem:[%s8234_s25 + $0x108] sm:$0xff]  }
 0x1bf   : > { %v2719_v39 = vpop.f32.mrf.mxu1  ;;  %v7597_v2 = vpop.f32.mrf.mxu0  ;;  %v3329_v12 = vrot.slane %v8133_v40, 1 }
 0x1c0   : > { %v9450_v38 = vadd.f32 %v3075_v23, %v2719_v39  ;;  %v4460_v23 = vor.u32 %v4458_v16, %v4456_v58  ;;  %v3327_v39 = vrot.slane %v8132_v51, 1  ;;  %v4457_v47 = vsel %vm433_vm1, %v4452_v15, %v4456_v58 }
 0x1c1   : > { %v7531_v34 = vpop.f32.mrf.mxu1  ;;  %v3078_v10 = vpop.f32.mrf.mxu0 }
 0x1c2   : > { %v9457_v13 = vadd.f32 %v7597_v2, %v7531_v34  ;;  %v4466_v34 = vshrl.u32 %v9442_v43, 16  ;;  %v4465_v4 = vsel %vm433_vm1, %v4460_v23, %v4464_v63  ;;  %v3330_v58 = vsel %vm1442_vm3, %v3327_v39, %v3329_v12 }
 0x1c3   : > { %v2722_v29 = vpop.f32.mrf.mxu1  ;;  %v7600_v50 = vpop.f32.mrf.mxu0  ;;  %7763 = vmatmul.mubr.msk.bf16.gmra.mxu0 %vm694_vm2, %v4441_v54 }
 0x1c4   : > { %v9462_v45 = vadd.f32 %v3078_v10, %v2722_v29  ;;  %7766 = vmatprep.mubr.msk.bf16.mxu0 %vm694_vm2, %v4449_v17  ;;  %v4470_v10 = vshll.u32 %v9466_v46, 16  ;;  %v3328_v29 = vsel %vm1442_vm3, %v3325_v11, %v3327_v39  ;;  %v8135_v11 = vld [vmem:[%s8234_s25 + $0x28] sm:$0xff]  }
 0x1c5   : > { %v7534_v3 = vpop.f32.mrf.mxu1  ;;  %7697 = vmatmul.mubr.msk.bf16.gmra.mxu1 %vm694_vm2, %v3324_v33  ;;  %v3091_v57 = vpop.f32.mrf.mxu0  ;;  %v5221_v40 = vrot.slane %v8135_v11, 1 }
 0x1c6   : > { %v9469_v36 = vadd.f32 %v7600_v50, %v7534_v3  ;;  %7700 = vmatprep.mubr.msk.bf16.mxu1 %vm694_vm2, %v3326_v1  ;;  %v4468_v3 = vor.u32 %v4466_v34, %v4464_v63 }
 0x1c7   : > { %v2735_v2 = vpop.f32.mrf.mxu1  ;;  %v7601_v59 = vpop.f32.mrf.mxu0 }
 0x1c8   : > { %v9474_v54 = vadd.f32 %v3091_v57, %v2735_v2  ;;  %v4472_v57 = vrot.slane %v4470_v10, 1  ;;  %v8134_v2 = vld [vmem:[%s8234_s25 + $0x20] sm:$0xff]  }
 0x1c9   : > { %v7535_v17 = vpop.f32.mrf.mxu1  ;;  %v3094_v16 = vpop.f32.mrf.mxu0 }
 0x1ca   : > { %v9480_v33 = vadd.f32 %v7601_v59, %v7535_v17  ;;  %v5220_v59 = vrot.slane %v8134_v2, 1  ;;  %v4473_v10 = vsel %vm433_vm1, %v4468_v3, %v4472_v57 }
 0x1cb   : > { %v2738_v50 = vpop.f32.mrf.mxu1  ;;  %v7604_v1 = vpop.f32.mrf.mxu0  ;;  %7767 = vmatmul.mubr.msk.bf16.gmra.mxu0 %vm694_vm2, %v4457_v47  ;;  %v8136_v47 = vld [vmem:[%s8234_s25 + $0x110] ss:$0 sps:$4 sm:$0xff]  }
 0x1cc   : > { %v9485_v15 = vadd.f32 %v3094_v16, %v2738_v50  ;;  %7770 = vmatprep.mubr.msk.bf16.mxu0 %vm694_vm2, %v4465_v4  ;;  %v3331_v39 = vrot.slane %v8136_v47, 1  ;;  %v5222_v50 = vsel %vm1442_vm3, %v5220_v59, %v5221_v40 }
 0x1cd   : > { %v7538_v51 = vpop.f32.mrf.mxu1  ;;  %7701 = vmatmul.mubr.msk.bf16.gmra.mxu1 %vm694_vm2, %v3328_v29  ;;  %v3107_v23 = vpop.f32.mrf.mxu0 }
 0x1ce   : > { %v9491_v17 = vadd.f32 %v7604_v1, %v7538_v51  ;;  %7704 = vmatprep.mubr.msk.bf16.mxu1 %vm694_vm2, %v3330_v58  ;;  %v3332_v1 = vsel %vm1442_vm3, %v3329_v12, %v3331_v39 }
 0x1cf   : > { %v2751_v16 = vpop.f32.mrf.mxu1  ;;  %v7605_v63 = vpop.f32.mrf.mxu0 }
 0x1d0   : > { %v9495_v34 = vadd.f32 %v3107_v23, %v2751_v16  ;;  %v8137_v23 = vld [vmem:[%s8234_s25 + $0x30] sm:$0xff]  }
 0x1d1   : > { %v7539_v4 = vpop.f32.mrf.mxu1  ;;  %v3110_v29 = vpop.f32.mrf.mxu0  ;;  %v5223_v16 = vrot.slane %v8137_v23, 1 }
 0x1d2   : > { %10407 = vst [vmem:[#allocation4_spill] sm:$0xff] %v9495_v34  ;;  %v9499_v46 = vadd.f32 %v7605_v63, %v7539_v4  ;;  %v8138_v34 = vld [vmem:[%s8234_s25 + $0x38] sm:$0xff]  }
 0x1d3   : > { %v2754_v51 = vpop.f32.mrf.mxu1  ;;  %v7608_v58 = vpop.f32.mrf.mxu0  ;;  %7771 = vmatmul.mubr.msk.bf16.gmra.mxu0 %vm694_vm2, %v4473_v10  ;;  %v5225_v59 = vrot.slane %v8138_v34, 1  ;;  %v5224_v4 = vsel %vm1442_vm3, %v5221_v40, %v5223_v16 }
 0x1d4   : > { %10408 = vst [vmem:[#allocation5_spill] sm:$0xff] %v9499_v46  ;;  %v9503_v47 = vadd.f32 %v3110_v29, %v2754_v51  ;;  %7842 = vmatprep.mubr.msk.bf16.mxu0 %vm694_vm2, %v5222_v50 }
 0x1d5   : > { %v7542_v3 = vpop.f32.mrf.mxu1  ;;  %7705 = vmatmul.mubr.msk.bf16.gmra.mxu1 %vm694_vm2, %v3332_v1  ;;  %v3123_v57 = vpop.f32.mrf.mxu0  ;;  %v5226_v51 = vsel %vm1442_vm3, %v5223_v16, %v5225_v59 }
 0x1d6   : > { %10409 = vst [vmem:[#allocation6_spill] sm:$0xff] %v9503_v47  ;;  %v9509_v63 = vadd.f32 %v7608_v58, %v7542_v3  ;;  %7776 = vmatprep.mubr.msk.bf16.mxu1 %vm694_vm2, %v8134_v2  ;;  %v8139_v2 = vld [vmem:[%s8234_s25 + $0x40] sm:$0xff]  }
 0x1d7   : > { %v2767_v12 = vpop.f32.mrf.mxu1  ;;  %v7609_v39 = vpop.f32.mrf.mxu0  ;;  %v5227_v3 = vrot.slane %v8139_v2, 1 }
 0x1d8   : > { %10410 = vst [vmem:[#allocation7_spill] sm:$0xff] %v9509_v63  ;;  %v9512_v10 = vadd.f32 %v3123_v57, %v2767_v12  ;;  %v8140_v12 = vld [vmem:[%s8234_s25 + $0x48] sm:$0xff]  }
 0x1d9   : > { %v7543_v29 = vpop.f32.mrf.mxu1  ;;  %v3126_v50 = vpop.f32.mrf.mxu0 }
 0x1da   : > { %10411 = vst [vmem:[#allocation8_spill] sm:$0xff] %v9512_v10  ;;  %v9516_v1 = vadd.f32 %v7609_v39, %v7543_v29  ;;  %v5229_v10 = vrot.slane %v8140_v12, 1 }
 0x1db   : > { %v2770_v47 = vpop.f32.mrf.mxu1  ;;  %v7612_v46 = vpop.f32.mrf.mxu0  ;;  %7843 = vmatmul.mubr.msk.bf16.vlgmr.msra.gmra.mxu0 %vm694_vm2, %v5224_v4 }
 0x1dc   : > { %10412 = vst [vmem:[#allocation9_spill] sm:$0xff] %v9516_v1  ;;  %v9519_v58 = vadd.f32 %v3126_v50, %v2770_v47  ;;  %7846 = vmatprep.mubr.msk.bf16.mxu0 %vm694_vm2, %v5226_v51  ;;  %v5228_v47 = vsel %vm1442_vm3, %v5225_v59, %v5227_v3 }
 0x1dd   : > { %v7546_v57 = vpop.f32.mrf.mxu1  ;;  %7777 = vmatmul.mubr.msk.bf16.vlgmr.msra.gmra.mxu1 %vm694_vm2, %v8135_v11  ;;  %v3139_v40 = vpop.f32.mrf.mxu0 }
 0x1de   : > { %10413 = vst [vmem:[#allocation10_spill] sm:$0xff] %v9519_v58  ;;  %v9525_v16 = vadd.f32 %v7612_v46, %v7546_v57  ;;  %7780 = vmatprep.mubr.msk.bf16.mxu1 %vm694_vm2, %v8137_v23  ;;  %v5230_v58 = vsel %vm1442_vm3, %v5227_v3, %v5229_v10  ;;  %v8141_v23 = vld [vmem:[%s8234_s25 + $0x50] sm:$0xff]  }
 0x1df   : > { %v2783_v39 = vpop.f32.mrf.mxu1  ;;  %v7613_v29 = vpop.f32.mrf.mxu0  ;;  %v5231_v57 = vrot.slane %v8141_v23, 1 }
 0x1e0   : > { %10414 = vst [vmem:[#allocation11_spill] sm:$0xff] %v9525_v16  ;;  %v9528_v4 = vadd.f32 %v3139_v40, %v2783_v39  ;;  %v8142_v39 = vld [vmem:[%s8234_s25 + $0x58] sm:$0xff]  }
 0x1e1   : > { %v7547_v50 = vpop.f32.mrf.mxu1  ;;  %v3142_v51 = vpop.f32.mrf.mxu0 }
 0x1e2   : > { %10415 = vst [vmem:[#allocation12_spill] sm:$0xff] %v9528_v4  ;;  %v9532_v11 = vadd.f32 %v7613_v29, %v7547_v50  ;;  %v5233_v4 = vrot.slane %v8142_v39, 1 }
 0x1e3   : > { %v2786_v1 = vpop.f32.mrf.mxu1  ;;  %v7616_v63 = vpop.f32.mrf.mxu0  ;;  %7847 = vmatmul.mubr.msk.bf16.gmra.mxu0 %vm694_vm2, %v5228_v47 }
 0x1e4   : > { %10416 = vst [vmem:[#allocation13_spill] sm:$0xff] %v9532_v11  ;;  %v9535_v46 = vadd.f32 %v3142_v51, %v2786_v1  ;;  %7850 = vmatprep.mubr.msk.bf16.mxu0 %vm694_vm2, %v5230_v58  ;;  %v5232_v1 = vsel %vm1442_vm3, %v5229_v10, %v5231_v57 }
 0x1e5   : > { %v7550_v40 = vpop.f32.mrf.mxu1  ;;  %7781 = vmatmul.mubr.msk.bf16.gmra.mxu1 %vm694_vm2, %v8138_v34  ;;  %v3155_v59 = vpop.f32.mrf.mxu0 }
 0x1e6   : > { %10417 = vst [vmem:[#allocation14_spill] sm:$0xff] %v9535_v46  ;;  %v9541_v3 = vadd.f32 %v7616_v63, %v7550_v40  ;;  %7784 = vmatprep.mubr.msk.bf16.mxu1 %vm694_vm2, %v8139_v2  ;;  %v5234_v46 = vsel %vm1442_vm3, %v5231_v57, %v5233_v4  ;;  %v8143_v2 = vld [vmem:[%s8234_s25 + $0x60] sm:$0xff]  }
 0x1e7   : > { %v2799_v29 = vpop.f32.mrf.mxu1  ;;  %v7617_v50 = vpop.f32.mrf.mxu0  ;;  %v5235_v40 = vrot.slane %v8143_v2, 1 }
 0x1e8   : > { %10418 = vst [vmem:[#allocation15_spill] sm:$0xff] %v9541_v3  ;;  %v9544_v47 = vadd.f32 %v3155_v59, %v2799_v29  ;;  %v8144_v29 = vld [vmem:[%s8234_s25 + $0x68] sm:$0xff]  }
 0x1e9   : > { %v7551_v58 = vpop.f32.mrf.mxu1  ;;  %v3158_v51 = vpop.f32.mrf.mxu0 }
 0x1ea   : > { %10419 = vst [vmem:[#allocation16_spill] sm:$0xff] %v9544_v47  ;;  %v9548_v34 = vadd.f32 %v7617_v50, %v7551_v58  ;;  %v5237_v47 = vrot.slane %v8144_v29, 1 }
 0x1eb   : > { %v2802_v11 = vpop.f32.mrf.mxu1  ;;  %v7620_v16 = vpop.f32.mrf.mxu0  ;;  %7851 = vmatmul.mubr.msk.bf16.gmra.mxu0 %vm694_vm2, %v5232_v1 }
 0x1ec   : > { %10420 = vst [vmem:[#allocation17_spill] sm:$0xff] %v9548_v34  ;;  %v9551_v63 = vadd.f32 %v3158_v51, %v2802_v11  ;;  %7854 = vmatprep.mubr.msk.bf16.mxu0 %vm694_vm2, %v5234_v46  ;;  %v5236_v11 = vsel %vm1442_vm3, %v5233_v4, %v5235_v40 }
 0x1ed   : > { %v7554_v59 = vpop.f32.mrf.mxu1  ;;  %7785 = vmatmul.mubr.msk.bf16.gmra.mxu1 %vm694_vm2, %v8140_v12  ;;  %v3171_v10 = vpop.f32.mrf.mxu0 }
 0x1ee   : > { %10421 = vst [vmem:[#allocation18_spill] sm:$0xff] %v9551_v63  ;;  %v9557_v57 = vadd.f32 %v7620_v16, %v7554_v59  ;;  %7788 = vmatprep.mubr.msk.bf16.mxu1 %vm694_vm2, %v8141_v23  ;;  %v5238_v63 = vsel %vm1442_vm3, %v5235_v40, %v5237_v47  ;;  %v8145_v23 = vld [vmem:[%s8234_s25 + $0x70] sm:$0xff]  }
 0x1ef   : > { %v2815_v50 = vpop.f32.mrf.mxu1  ;;  %v7621_v58 = vpop.f32.mrf.mxu0  ;;  %v5239_v59 = vrot.slane %v8145_v23, 1 }
 0x1f0   : > { %10422 = vst [vmem:[#allocation19_spill] sm:$0xff] %v9557_v57  ;;  %v9560_v1 = vadd.f32 %v3171_v10, %v2815_v50  ;;  %v8146_v50 = vld [vmem:[%s8234_s25 + $0x78] sm:$0xff]  }
 0x1f1   : > { %v7555_v46 = vpop.f32.mrf.mxu1  ;;  %v3174_v51 = vpop.f32.mrf.mxu0 }
 0x1f2   : > { %10423 = vst [vmem:[#allocation20_spill] sm:$0xff] %v9560_v1  ;;  %v9564_v12 = vadd.f32 %v7621_v58, %v7555_v46  ;;  %v5241_v1 = vrot.slane %v8146_v50, 1 }
 0x1f3   : > { %v2818_v34 = vpop.f32.mrf.mxu1  ;;  %v7624_v3 = vpop.f32.mrf.mxu0  ;;  %7855 = vmatmul.mubr.msk.bf16.gmra.mxu0 %vm694_vm2, %v5236_v11 }
 0x1f4   : > { %10424 = vst [vmem:[#allocation21_spill] sm:$0xff] %v9564_v12  ;;  %v9567_v16 = vadd.f32 %v3174_v51, %v2818_v34  ;;  %7858 = vmatprep.mubr.msk.bf16.mxu0 %vm694_vm2, %v5238_v63  ;;  %v5240_v34 = vsel %vm1442_vm3, %v5237_v47, %v5239_v59 }
 0x1f5   : > { %v7558_v10 = vpop.f32.mrf.mxu1  ;;  %7789 = vmatmul.mubr.msk.bf16.gmra.mxu1 %vm694_vm2, %v8142_v39  ;;  %v3187_v4 = vpop.f32.mrf.mxu0 }
 0x1f6   : > { %10425 = vst [vmem:[#allocation22_spill] sm:$0xff] %v9567_v16  ;;  %v9573_v40 = vadd.f32 %v7624_v3, %v7558_v10  ;;  %7792 = vmatprep.mubr.msk.bf16.mxu1 %vm694_vm2, %v8143_v2  ;;  %v5242_v16 = vsel %vm1442_vm3, %v5239_v59, %v5241_v1  ;;  %v8147_v2 = vld [vmem:[%s8234_s25 + $0x80] sm:$0xff]  }
 0x1f7   : > { %v2831_v58 = vpop.f32.mrf.mxu1  ;;  %v7625_v46 = vpop.f32.mrf.mxu0  ;;  %v5243_v10 = vrot.slane %v8147_v2, 1 }
 0x1f8   : > { %10426 = vst [vmem:[#allocation23_spill] sm:$0xff] %v9573_v40  ;;  %v9576_v11 = vadd.f32 %v3187_v4, %v2831_v58  ;;  %v8148_v58 = vld [vmem:[%s8234_s25 + $0x88] sm:$0xff]  }
 0x1f9   : > { %v7559_v63 = vpop.f32.mrf.mxu1  ;;  %v3190_v51 = vpop.f32.mrf.mxu0 }
 0x1fa   : > { %10427 = vst [vmem:[#allocation24_spill] sm:$0xff] %v9576_v11  ;;  %v9580_v39 = vadd.f32 %v7625_v46, %v7559_v63  ;;  %v5245_v11 = vrot.slane %v8148_v58, 1 }
 0x1fb   : > { %v2834_v12 = vpop.f32.mrf.mxu1  ;;  %v7628_v57 = vpop.f32.mrf.mxu0  ;;  %7859 = vmatmul.mubr.msk.bf16.gmra.mxu0 %vm694_vm2, %v5240_v34 }
 0x1fc   : > { %10428 = vst [vmem:[#allocation25_spill] sm:$0xff] %v9580_v39  ;;  %v9583_v3 = vadd.f32 %v3190_v51, %v2834_v12  ;;  %7862 = vmatprep.mubr.msk.bf16.mxu0 %vm694_vm2, %v5242_v16  ;;  %v5244_v12 = vsel %vm1442_vm3, %v5241_v1, %v5243_v10  ;;  %v5246_v51 = vsel %vm1442_vm3, %v5243_v10, %v5245_v11 }
 0x1fd   : > { %v7562_v4 = vpop.f32.mrf.mxu1  ;;  %7793 = vmatmul.mubr.msk.bf16.gmra.mxu1 %vm694_vm2, %v8144_v29  ;;  %v3203_v47 = vpop.f32.mrf.mxu0 }
 0x1fe   : > { %10429 = vst [vmem:[#allocation26_spill] sm:$0xff] %v9583_v3  ;;  %v9589_v40 = vadd.f32 %v7628_v57, %v7562_v4  ;;  %7796 = vmatprep.mubr.msk.bf16.mxu1 %vm694_vm2, %v8145_v23  ;;  %v5247_v23 = vrot.slane %v9209_v44, 1 }
 0x1ff   : > { %v2847_v59 = vpop.f32.mrf.mxu1  ;;  %v7629_v46 = vpop.f32.mrf.mxu0 }
 0x200   : > { %v9592_v63 = vadd.f32 %v3203_v47, %v2847_v59  ;;  %v5249_v47 = vrot.slane %v9216_v35, 1 }
 0x201   : > { %v7563_v34 = vpop.f32.mrf.mxu1  ;;  %v3206_v16 = vpop.f32.mrf.mxu0 }
 0x202   : > { %v9596_v3 = vadd.f32 %v7629_v46, %v7563_v34  ;;  %v5250_v44 = vsel %vm1442_vm3, %v5247_v23, %v5249_v47 }
 0x203   : > { %v2850_v29 = vpop.f32.mrf.mxu1  ;;  %v7632_v39 = vpop.f32.mrf.mxu0  ;;  %7863 = vmatmul.mubr.msk.bf16.gmra.mxu0 %vm694_vm2, %v5244_v12  ;;  %v5248_v12 = vsel %vm1442_vm3, %v5245_v11, %v5247_v23  ;;  %v8149_v23 = vld [vmem:[%s8234_s25 + $0x90] sm:$0xff]  }
 0x204   : > { %v9599_v57 = vadd.f32 %v3206_v16, %v2850_v29  ;;  %7866 = vmatprep.mubr.msk.bf16.mxu0 %vm694_vm2, %v5246_v51 }
 0x205   : > { %v7566_v4 = vpop.f32.mrf.mxu1  ;;  %7797 = vmatmul.mubr.msk.bf16.gmra.mxu1 %vm694_vm2, %v8146_v50  ;;  %v3219_v1 = vpop.f32.mrf.mxu0 }
 0x206   : > { %10430 = vst [vmem:[#allocation27_spill] sm:$0xff] %v9599_v57  ;;  %v9605_v59 = vadd.f32 %v7632_v39, %v7566_v4  ;;  %7800 = vmatprep.mubr.msk.bf16.mxu1 %vm694_vm2, %v8147_v2  ;;  %v5251_v39 = vrot.slane %v9237_v20, 1  ;;  %v5253_v4 = vrot.slane %v9244_v52, 1 }
 0x207   : > { %v2863_v10 = vpop.f32.mrf.mxu1  ;;  %v7633_v46 = vpop.f32.mrf.mxu0 }
 0x208   : > { %v9608_v34 = vadd.f32 %v3219_v1, %v2863_v10 }
 0x209   : > { %v7567_v16 = vpop.f32.mrf.mxu1  ;;  %v3222_v51 = vpop.f32.mrf.mxu0 }
 0x20a   : > { %v9612_v29 = vadd.f32 %v7633_v46, %v7567_v16  ;;  %v5252_v16 = vsel %vm1442_vm3, %v5249_v47, %v5251_v39 }
 0x20b   : > { %v2866_v50 = vpop.f32.mrf.mxu1  ;;  %v7636_v57 = vpop.f32.mrf.mxu0  ;;  %7867 = vmatmul.mubr.msk.bf16.gmra.mxu0 %vm694_vm2, %v5248_v12 }
 0x20c   : > { %10431 = vst [vmem:[#allocation28_spill] sm:$0xff] %v9612_v29  ;;  %v9615_v35 = vadd.f32 %v3222_v51, %v2866_v50  ;;  %7870 = vmatprep.mubr.msk.bf16.mxu0 %vm694_vm2, %v5250_v44  ;;  %v5254_v50 = vsel %vm1442_vm3, %v5251_v39, %v5253_v4 }
 0x20d   : > { %v7570_v2 = vpop.f32.mrf.mxu1  ;;  %7801 = vmatmul.mubr.msk.bf16.gmra.mxu1 %vm694_vm2, %v8148_v58  ;;  %v3235_v11 = vpop.f32.mrf.mxu0 }
 0x20e   : > { %10432 = vst [vmem:[#allocation29_spill] sm:$0xff] %v9615_v35  ;;  %v9621_v1 = vadd.f32 %v7636_v57, %v7570_v2  ;;  %7804 = vmatprep.mubr.msk.bf16.mxu1 %vm694_vm2, %v8149_v23  ;;  %v5255_v2 = vrot.slane %v9265_v28, 1  ;;  %v8150_v23 = vld [vmem:[%s8234_s25 + $0x98] sm:$0xff]  }
 0x20f   : > { %v2879_v10 = vpop.f32.mrf.mxu1  ;;  %v7637_v46 = vpop.f32.mrf.mxu0 }
 0x210   : > { %v9625_v12 = vadd.f32 %v3235_v11, %v2879_v10  ;;  %v5257_v10 = vrot.slane %v9272_v30, 1 }
 0x211   : > { %v7571_v51 = vpop.f32.mrf.mxu1  ;;  %v3238_v44 = vpop.f32.mrf.mxu0 }
 0x212   : > { %10433 = vst [vmem:[#allocation30_spill] sm:$0xff] %v9625_v12  ;;  %v9629_v58 = vadd.f32 %v7637_v46, %v7571_v51  ;;  %v5256_v51 = vsel %vm1442_vm3, %v5253_v4, %v5255_v2 }
 0x213   : > { %v2882_v35 = vpop.f32.mrf.mxu1  ;;  %v7640_v29 = vpop.f32.mrf.mxu0  ;;  %7871 = vmatmul.mubr.msk.bf16.gmra.mxu0 %vm694_vm2, %v5252_v16 }
 0x214   : > { %10434 = vst [vmem:[#allocation31_spill] sm:$0xff] %v9629_v58  ;;  %v9632_v57 = vadd.f32 %v3238_v44, %v2882_v35  ;;  %7874 = vmatprep.mubr.msk.bf16.mxu0 %vm694_vm2, %v5254_v50 }
 0x215   : > { %v7574_v11 = vpop.f32.mrf.mxu1  ;;  %7805 = vmatmul.mubr.msk.bf16.gmra.mxu1 %vm694_vm2, %v8150_v23  ;;  %v3251_v47 = vpop.f32.mrf.mxu0 }
 0x216   : > { %10435 = vst [vmem:[#allocation32_spill] sm:$0xff] %v9632_v57  ;;  %v9639_v39 = vadd.f32 %v7640_v29, %v7574_v11  ;;  %7808 = vmatprep.mubr.msk.bf16.mxu1 %vm694_vm2, %v9237_v20  ;;  %v5258_v57 = vsel %vm1442_vm3, %v5255_v2, %v5257_v10  ;;  %v5259_v20 = vrot.slane %v9293_v14, 1  ;;  %v5261_v2 = vrot.slane %v9300_v42, 1 }
 0x217   : > { %v2895_v46 = vpop.f32.mrf.mxu1  ;;  %v7641_v16 = vpop.f32.mrf.mxu0 }
 0x218   : > { %v9643_v35 = vadd.f32 %v3251_v47, %v2895_v46  ;;  %v3787_v46 = vld [vmem:[#allocation2 + $0x10] sm:$0xff] }
 0x219   : > { %v7575_v44 = vpop.f32.mrf.mxu1  ;;  %v3254_v50 = vpop.f32.mrf.mxu0 }
 0x21a   : > { %v9647_v58 = vadd.f32 %v7641_v16, %v7575_v44 }
 0x21b   : > { %v2898_v23 = vpop.f32.mrf.mxu1  ;;  %v9649_v12 = vpop.f32.mrf.mxu0  ;;  %7875 = vmatmul.mubr.msk.bf16.gmra.mxu0 %vm694_vm2, %v5256_v51 }
 0x21c   : > { %10436 = vst [vmem:[#allocation33_spill] sm:$0xff] %v9647_v58  ;;  %10437 = vst [vmem:[#allocation34_spill] sm:$0xff] %v9649_v12  ;;  %v9652_v29 = vadd.f32 %v3254_v50, %v2898_v23  ;;  %7878 = vmatprep.mubr.msk.bf16.mxu0 %vm694_vm2, %v5258_v57  ;;  %v5260_v50 = vsel %vm1442_vm3, %v5257_v10, %v5259_v20  ;;  %v3785_v23 = vld [vmem:[#allocation2] sm:$0xff] }
 0x21d   : > { %v7646_v11 = vpop.f32.mrf.mxu1  ;;  %7809 = vmatmul.mubr.msk.bf16.gmra.mxu1 %vm694_vm2, %v9244_v52  ;;  %v9658_v4 = vpop.f32.mrf.mxu0 }
 0x21e   : > { %10438 = vst [vmem:[#allocation35_spill] sm:$0xff] %v9652_v29  ;;  %10439 = vst [vmem:[#allocation36_spill] sm:$0xff] %v9658_v4  ;;  %v3723_v47 = vadd.f32 %v7646_v11, %v9331_v32  ;;  %7812 = vmatprep.mubr.msk.bf16.mxu1 %vm694_vm2, %v9265_v28  ;;  %v5262_v4 = vsel %vm1442_vm3, %v5259_v20, %v5261_v2  ;;  %v3788_v11 = vld [vmem:[#allocation2 + $0x18] sm:$0xff]  ;;  %v5263_v20 = vrot.slane %v9321_v9, 1 }
 0x21f   : > { %v3466_v16 = vpop.f32.mrf.mxu1  ;;  %v9664_v51 = vpop.f32.mrf.mxu0 }
 0x220   : > { %v3851_v57 = vadd.f32 %v3787_v46, %v3723_v47  ;;  %v3721_v44 = vadd.f32 %v3466_v16, %v9338_v19  ;;  %v3786_v47 = vld [vmem:[#allocation2 + $0x8] sm:$0xff]  ;;  %v5265_v16 = vrot.slane %v9328_v60, 1 }
 0x221   : > { %v7647_v52 = vpop.f32.mrf.mxu1  ;;  %v9668_v12 = vpop.f32.mrf.mxu0 }
 0x222   : > { %3915 = vst.msk [vmem:[#allocation2 + $0x10] sm:$0xff] %vm1960_vm4, %v3851_v57  ;;  %v3849_v32 = vadd.f32 %v3785_v23, %v3721_v44  ;;  %v3724_v28 = vadd.f32 %v7647_v52, %v9345_v7  ;;  %v5264_v23 = vsel %vm1442_vm3, %v5261_v2, %v5263_v20  ;;  %v3789_v52 = vld [vmem:[#allocation2 + $0x20] sm:$0xff] }
 0x223   : > { %v3469_v29 = vpop.f32.mrf.mxu1  ;;  %v9673_v58 = vpop.f32.mrf.mxu0  ;;  %7879 = vmatmul.mubr.msk.bf16.gmra.mxu0 %vm694_vm2, %v5260_v50 }
 0x224   : > { %3913 = vst.msk [vmem:[#allocation2] sm:$0xff] %vm1960_vm4, %v3849_v32  ;;  %v3852_v19 = vadd.f32 %v3788_v11, %v3724_v28  ;;  %v3722_v10 = vadd.f32 %v3469_v29, %v9353_v49  ;;  %7882 = vmatprep.mubr.msk.bf16.mxu0 %vm694_vm2, %v5262_v4  ;;  %v3791_v49 = vld [vmem:[#allocation2 + $0x30] sm:$0xff] }
 0x225   : > { %v7650_v46 = vpop.f32.mrf.mxu1  ;;  %7813 = vmatmul.mubr.msk.bf16.gmra.mxu1 %vm694_vm2, %v9272_v30  ;;  %v9682_v7 = vpop.f32.mrf.mxu0 }
 0x226   : > { %3916 = vst.msk [vmem:[#allocation2 + $0x18] sm:$0xff] %vm1960_vm4, %v3852_v19  ;;  %v3850_v57 = vadd.f32 %v3786_v47, %v3722_v10  ;;  %v3727_v44 = vadd.f32 %v7650_v46, %v9360_v48  ;;  %7816 = vmatprep.mubr.msk.bf16.mxu1 %vm694_vm2, %v9293_v14  ;;  %v5266_v48 = vsel %vm1442_vm3, %v5263_v20, %v5265_v16  ;;  %v3792_v19 = vld [vmem:[#allocation2 + $0x38] sm:$0xff]  ;;  %v5267_v20 = vrot.slane %v9351_v18, 1  ;;  %v3790_v46 = vld [vmem:[#allocation2 + $0x28] sm:$0xff] }
 0x227   : > { %v3482_v29 = vpop.f32.mrf.mxu1  ;;  %v9689_v4 = vpop.f32.mrf.mxu0 }
 0x228   : > { %3914 = vst.msk [vmem:[#allocation2 + $0x8] sm:$0xff] %vm1960_vm4, %v3850_v57  ;;  %v3855_v50 = vadd.f32 %v3791_v49, %v3727_v44  ;;  %v3725_v30 = vadd.f32 %v3482_v29, %v9366_v21  ;;  %v5269_v44 = vrot.slane %v9358_v27, 1 }
 0x229   : > { %v7651_v32 = vpop.f32.mrf.mxu1  ;;  %v9694_v28 = vpop.f32.mrf.mxu0 }
 0x22a   : > { %3919 = vst.msk [vmem:[#allocation2 + $0x30] sm:$0xff] %vm1960_vm4, %v3855_v50  ;;  %v3853_v14 = vadd.f32 %v3789_v52, %v3725_v30  ;;  %v3728_v11 = vadd.f32 %v7651_v32, %v9373_v37  ;;  %v5268_v52 = vsel %vm1442_vm3, %v5265_v16, %v5267_v20  ;;  %v3793_v32 = vld [vmem:[#allocation2 + $0x40] sm:$0xff] }
 0x22b   : > { %v3485_v10 = vpop.f32.mrf.mxu1  ;;  %v9699_v47 = vpop.f32.mrf.mxu0  ;;  %7883 = vmatmul.mubr.msk.bf16.gmra.mxu0 %vm694_vm2, %v5264_v23 }
 0x22c   : > { %3917 = vst.msk [vmem:[#allocation2 + $0x20] sm:$0xff] %vm1960_vm4, %v3853_v14  ;;  %v3856_v21 = vadd.f32 %v3792_v19, %v3728_v11  ;;  %v3726_v2 = vadd.f32 %v3485_v10, %v9381_v22  ;;  %7886 = vmatprep.mubr.msk.bf16.mxu0 %vm694_vm2, %v5266_v48  ;;  %v3795_v22 = vld [vmem:[#allocation2 + $0x50] sm:$0xff]  ;;  %v3796_v19 = vld [vmem:[#allocation2 + $0x58] sm:$0xff] }
 0x22d   : > { %v7654_v57 = vpop.f32.mrf.mxu1  ;;  %7817 = vmatmul.mubr.msk.bf16.gmra.mxu1 %vm694_vm2, %v9300_v42  ;;  %v9708_v37 = vpop.f32.mrf.mxu0 }
 0x22e   : > { %3920 = vst.msk [vmem:[#allocation2 + $0x38] sm:$0xff] %vm1960_vm4, %v3856_v21  ;;  %v3854_v49 = vadd.f32 %v3790_v46, %v3726_v2  ;;  %v3731_v29 = vadd.f32 %v7654_v57, %v9388_v8  ;;  %7820 = vmatprep.mubr.msk.bf16.mxu1 %vm694_vm2, %v9321_v9  ;;  %v5270_v8 = vsel %vm1442_vm3, %v5267_v20, %v5269_v44  ;;  %v5271_v2 = vrot.slane %v9379_v41, 1  ;;  %v3794_v20 = vld [vmem:[#allocation2 + $0x48] sm:$0xff] }
 0x22f   : > { %v3498_v50 = vpop.f32.mrf.mxu1  ;;  %v9715_v30 = vpop.f32.mrf.mxu0  ;;  %v5273_v57 = vrot.slane %v9386_v26, 1 }
 0x230   : > { %3918 = vst.msk [vmem:[#allocation2 + $0x28] sm:$0xff] %vm1960_vm4, %v3854_v49  ;;  %v3859_v23 = vadd.f32 %v3795_v22, %v3731_v29  ;;  %v3729_v42 = vadd.f32 %v3498_v50, %v9394_v56 }
 0x231   : > { %v7655_v48 = vpop.f32.mrf.mxu1  ;;  %v9720_v14 = vpop.f32.mrf.mxu0 }
 0x232   : > { %3923 = vst.msk [vmem:[#allocation2 + $0x50] sm:$0xff] %vm1960_vm4, %v3859_v23  ;;  %v3857_v9 = vadd.f32 %v3793_v32, %v3729_v42  ;;  %v3732_v11 = vadd.f32 %v7655_v48, %v9401_v55  ;;  %v5272_v42 = vsel %vm1442_vm3, %v5269_v44, %v5271_v2 }
 0x233   : > { %v3501_v10 = vpop.f32.mrf.mxu1  ;;  %v9725_v21 = vpop.f32.mrf.mxu0  ;;  %7887 = vmatmul.mubr.msk.bf16.gmra.mxu0 %vm694_vm2, %v5268_v52  ;;  %v3797_v52 = vld [vmem:[#allocation2 + $0x60] sm:$0xff] }
 0x234   : > { %3921 = vst.msk [vmem:[#allocation2 + $0x40] sm:$0xff] %vm1960_vm4, %v3857_v9  ;;  %v3860_v56 = vadd.f32 %v3796_v19, %v3732_v11  ;;  %v3730_v16 = vadd.f32 %v3501_v10, %v9409_v61  ;;  %7890 = vmatprep.mubr.msk.bf16.mxu0 %vm694_vm2, %v5270_v8  ;;  %v3799_v61 = vld [vmem:[#allocation2 + $0x70] sm:$0xff]  ;;  %v3800_v9 = vld [vmem:[#allocation2 + $0x78] sm:$0xff]  ;;  %v5275_v10 = vrot.slane %v9407_v24, 1 }
 0x235   : > { %v7658_v46 = vpop.f32.mrf.mxu1  ;;  %7821 = vmatmul.mubr.msk.bf16.gmra.mxu1 %vm694_vm2, %v9328_v60  ;;  %v9734_v55 = vpop.f32.mrf.mxu0 }
 0x236   : > { %3924 = vst.msk [vmem:[#allocation2 + $0x58] sm:$0xff] %vm1960_vm4, %v3860_v56  ;;  %v3858_v49 = vadd.f32 %v3794_v20, %v3730_v16  ;;  %v3735_v29 = vadd.f32 %v7658_v46, %v9416_v6  ;;  %7824 = vmatprep.mubr.msk.bf16.mxu1 %vm694_vm2, %v9351_v18  ;;  %v5274_v6 = vsel %vm1442_vm3, %v5271_v2, %v5273_v57  ;;  %v3798_v56 = vld [vmem:[#allocation2 + $0x68] sm:$0xff]  ;;  %v5277_v2 = vrot.slane %v9414_v0, 1 }
 0x237   : > { %v3514_v22 = vpop.f32.mrf.mxu1  ;;  %v9741_v50 = vpop.f32.mrf.mxu0 }
 0x238   : > { %3922 = vst.msk [vmem:[#allocation2 + $0x48] sm:$0xff] %vm1960_vm4, %v3858_v49  ;;  %v3863_v23 = vadd.f32 %v3799_v61, %v3735_v29  ;;  %v3733_v60 = vadd.f32 %v3514_v22, %v9422_v62  ;;  %v5276_v22 = vsel %vm1442_vm3, %v5273_v57, %v5275_v10 }
 0x239   : > { %v7659_v32 = vpop.f32.mrf.mxu1  ;;  %v9746_v48 = vpop.f32.mrf.mxu0 }
 0x23a   : > { %3927 = vst.msk [vmem:[#allocation2 + $0x70] sm:$0xff] %vm1960_vm4, %v3863_v23  ;;  %v3861_v18 = vadd.f32 %v3797_v52, %v3733_v60  ;;  %v3736_v8 = vadd.f32 %v7659_v32, %v9429_v5  ;;  %v3801_v23 = vld [vmem:[#allocation2 + $0x80] sm:$0xff]  ;;  %v3804_v32 = vld [vmem:[#allocation2 + $0x98] sm:$0xff] }
 0x23b   : > { %v3517_v11 = vpop.f32.mrf.mxu1  ;;  %v9751_v19 = vpop.f32.mrf.mxu0  ;;  %7891 = vmatmul.mubr.msk.bf16.gmra.mxu0 %vm694_vm2, %v5272_v42 }
 0x23c   : > { %3925 = vst.msk [vmem:[#allocation2 + $0x60] sm:$0xff] %vm1960_vm4, %v3861_v18  ;;  %v3864_v62 = vadd.f32 %v3800_v9, %v3736_v8  ;;  %v3734_v44 = vadd.f32 %v3517_v11, %v9437_v53  ;;  %7894 = vmatprep.mubr.msk.bf16.mxu0 %vm694_vm2, %v5274_v6  ;;  %v3803_v53 = vld [vmem:[#allocation2 + $0x90] sm:$0xff]  ;;  %v5279_v8 = vrot.slane %v9435_v25, 1  ;;  %v3802_v9 = vld [vmem:[#allocation2 + $0x88] sm:$0xff] }
 0x23d   : > { %v7662_v16 = vpop.f32.mrf.mxu1  ;;  %7825 = vmatmul.mubr.msk.bf16.gmra.mxu1 %vm694_vm2, %v9358_v27  ;;  %v9760_v5 = vpop.f32.mrf.mxu0 }
 0x23e   : > { %3928 = vst.msk [vmem:[#allocation2 + $0x78] sm:$0xff] %vm1960_vm4, %v3864_v62  ;;  %v3862_v20 = vadd.f32 %v3798_v56, %v3734_v44  ;;  %v3739_v46 = vadd.f32 %v7662_v16, %v9444_v31  ;;  %7828 = vmatprep.mubr.msk.bf16.mxu1 %vm694_vm2, %v9379_v41  ;;  %v5278_v31 = vsel %vm1442_vm3, %v5275_v10, %v5277_v2  ;;  %v5281_v62 = vrot.slane %v9442_v43, 1 }
 0x23f   : > { %v3530_v49 = vpop.f32.mrf.mxu1  ;;  %v9767_v29 = vpop.f32.mrf.mxu0 }
 0x240   : > { %3926 = vst.msk [vmem:[#allocation2 + $0x68] sm:$0xff] %vm1960_vm4, %v3862_v20  ;;  %v3867_v61 = vadd.f32 %v3803_v53, %v3739_v46  ;;  %v3737_v27 = vadd.f32 %v3530_v49, %v9450_v38  ;;  %v5280_v46 = vsel %vm1442_vm3, %v5277_v2, %v5279_v8  ;;  %v3805_v53 = vld [vmem:[#allocation2 + $0xa0] sm:$0xff] }
 0x241   : > { %v7663_v60 = vpop.f32.mrf.mxu1  ;;  %v9772_v42 = vpop.f32.mrf.mxu0 }
 0x242   : > { %3931 = vst.msk [vmem:[#allocation2 + $0x90] sm:$0xff] %vm1960_vm4, %v3867_v61  ;;  %v3865_v41 = vadd.f32 %v3801_v23, %v3737_v27  ;;  %v3740_v52 = vadd.f32 %v7663_v60, %v9457_v13 }
 0x243   : > { %v3533_v6 = vpop.f32.mrf.mxu1  ;;  %v9777_v18 = vpop.f32.mrf.mxu0  ;;  %7895 = vmatmul.mubr.msk.bf16.gmra.mxu0 %vm694_vm2, %v5276_v22  ;;  %v3808_v22 = vld [vmem:[#allocation2 + $0xb8] sm:$0xff] }
 0x244   : > { %3929 = vst.msk [vmem:[#allocation2 + $0x80] sm:$0xff] %vm1960_vm4, %v3865_v41  ;;  %v3868_v38 = vadd.f32 %v3804_v32, %v3740_v52  ;;  %v3738_v57 = vadd.f32 %v3533_v6, %v9462_v45  ;;  %7898 = vmatprep.mubr.msk.bf16.mxu0 %vm694_vm2, %v5278_v31  ;;  %v3807_v45 = vld [vmem:[#allocation2 + $0xb0] sm:$0xff]  ;;  %v10440_v31 = vld [vmem:[#allocation3_spill] sm:$0xff]  ;;  %v3806_v52 = vld [vmem:[#allocation2 + $0xa8] sm:$0xff] }
 0x245   : > { %v7666_v11 = vpop.f32.mrf.mxu1  ;;  %7829 = vmatmul.mubr.msk.bf16.gmra.mxu1 %vm694_vm2, %v9386_v26  ;;  %v9786_v13 = vpop.f32.mrf.mxu0  ;;  %v5283_v41 = vrot.slane %v10440_v31, 1  ;;  %v3815_v31 = vld [vmem:[#allocation2 + $0xf0] sm:$0xff] }
 0x246   : > { %3932 = vst.msk [vmem:[#allocation2 + $0x98] sm:$0xff] %vm1960_vm4, %v3868_v38  ;;  %v3866_v44 = vadd.f32 %v3802_v9, %v3738_v57  ;;  %v3743_v10 = vadd.f32 %v7666_v11, %v9469_v36  ;;  %7832 = vmatprep.mubr.msk.bf16.mxu1 %vm694_vm2, %v9407_v24  ;;  %v5282_v36 = vsel %vm1442_vm3, %v5279_v8, %v5281_v62  ;;  %v10441_v11 = vld [vmem:[#allocation4_spill] sm:$0xff] }
 0x247   : > { %v3546_v56 = vpop.f32.mrf.mxu1  ;;  %v9793_v16 = vpop.f32.mrf.mxu0 }
 0x248   : > { %3930 = vst.msk [vmem:[#allocation2 + $0x88] sm:$0xff] %vm1960_vm4, %v3866_v44  ;;  %v3871_v20 = vadd.f32 %v3807_v45, %v3743_v10  ;;  %v3741_v26 = vadd.f32 %v3546_v56, %v9474_v54  ;;  %v3809_v10 = vld [vmem:[#allocation2 + $0xc0] sm:$0xff] }
 0x249   : > { %v7667_v49 = vpop.f32.mrf.mxu1  ;;  %v9798_v61 = vpop.f32.mrf.mxu0 }
 0x24a   : > { %3935 = vst.msk [vmem:[#allocation2 + $0xb0] sm:$0xff] %vm1960_vm4, %v3871_v20  ;;  %v3869_v24 = vadd.f32 %v3805_v53, %v3741_v26  ;;  %v3744_v27 = vadd.f32 %v7667_v49, %v9480_v33  ;;  %v10442_v20 = vld [vmem:[#allocation5_spill] sm:$0xff]  ;;  %v3812_v26 = vld [vmem:[#allocation2 + $0xd8] sm:$0xff] }
 0x24b   : > { %v3549_v23 = vpop.f32.mrf.mxu1  ;;  %v9803_v60 = vpop.f32.mrf.mxu0  ;;  %7899 = vmatmul.mubr.msk.bf16.gmra.mxu0 %vm694_vm2, %v5280_v46 }
 0x24c   : > { %3933 = vst.msk [vmem:[#allocation2 + $0xa0] sm:$0xff] %vm1960_vm4, %v3869_v24  ;;  %v3872_v54 = vadd.f32 %v3808_v22, %v3744_v27  ;;  %v3742_v2 = vadd.f32 %v3549_v23, %v9485_v15  ;;  %7902 = vmatprep.mubr.msk.bf16.mxu0 %vm694_vm2, %v5282_v36  ;;  %v3811_v15 = vld [vmem:[#allocation2 + $0xd0] sm:$0xff]  ;;  %v10443_v36 = vld [vmem:[#allocation6_spill] sm:$0xff]  ;;  %v3810_v24 = vld [vmem:[#allocation2 + $0xc8] sm:$0xff] }
 0x24d   : > { %v7670_v32 = vpop.f32.mrf.mxu1  ;;  %7833 = vmatmul.mubr.msk.bf16.gmra.mxu1 %vm694_vm2, %v9414_v0  ;;  %v9812_v33 = vpop.f32.mrf.mxu0  ;;  %v5284_v0 = vsel %vm1442_vm3, %v5281_v62, %v5283_v41 }
 0x24e   : > { %3936 = vst.msk [vmem:[#allocation2 + $0xb8] sm:$0xff] %vm1960_vm4, %v3872_v54  ;;  %v3870_v6 = vadd.f32 %v3806_v52, %v3742_v2  ;;  %v3747_v38 = vadd.f32 %v7670_v32, %v9491_v17  ;;  %7836 = vmatprep.mubr.msk.bf16.mxu1 %vm694_vm2, %v9435_v25  ;;  %v10444_v54 = vld [vmem:[#allocation7_spill] sm:$0xff] }
 0x24f   : > { %v3562_v57 = vpop.f32.mrf.mxu1  ;;  %v9818_v8 = vpop.f32.mrf.mxu0 }
 0x250   : > { %3934 = vst.msk [vmem:[#allocation2 + $0xa8] sm:$0xff] %vm1960_vm4, %v3870_v6  ;;  %v3875_v9 = vadd.f32 %v3811_v15, %v3747_v38  ;;  %v3745_v44 = vadd.f32 %v3562_v57, %v10441_v11  ;;  %v10445_v6 = vld [vmem:[#allocation8_spill] sm:$0xff]  ;;  %v3813_v15 = vld [vmem:[#allocation2 + $0xe0] sm:$0xff]  ;;  %v10446_v11 = vld [vmem:[#allocation9_spill] sm:$0xff] }
 0x251   : > { %v7671_v45 = vpop.f32.mrf.mxu1  ;;  %v9823_v56 = vpop.f32.mrf.mxu0 }
 0x252   : > { %3939 = vst.msk [vmem:[#allocation2 + $0xd0] sm:$0xff] %vm1960_vm4, %v3875_v9  ;;  %v3873_v17 = vadd.f32 %v3809_v10, %v3745_v44  ;;  %v3748_v25 = vadd.f32 %v7671_v45, %v10442_v20  ;;  %v10447_v20 = vld [vmem:[#allocation10_spill] sm:$0xff] }
 0x253   : > { %v3565_v46 = vpop.f32.mrf.mxu1  ;;  %v9827_v53 = vpop.f32.mrf.mxu0  ;;  %7903 = vmatmul.mubr.msk.bf16.gmra.mxu0 %vm694_vm2, %v5284_v0  ;;  %v3816_v0 = vld [vmem:[#allocation2 + $0xf8] sm:$0xff] }
 0x254   : > { %3937 = vst.msk [vmem:[#allocation2 + $0xc0] sm:$0xff] %vm1960_vm4, %v3873_v17  ;;  %v3876_v49 = vadd.f32 %v3812_v26, %v3748_v25  ;;  %v3746_v62 = vadd.f32 %v3565_v46, %v10443_v36  ;;  %v3814_v26 = vld [vmem:[#allocation2 + $0xe8] sm:$0xff] }
 0x255   : > { %v7674_v27 = vpop.f32.mrf.mxu1  ;;  %7837 = vmatmul.mubr.msk.bf16.gmra.mxu1 %vm694_vm2, %v9442_v43  ;;  %v9834_v22 = vpop.f32.mrf.mxu0 }
 0x256   : > { %3940 = vst.msk [vmem:[#allocation2 + $0xd8] sm:$0xff] %vm1960_vm4, %v3876_v49  ;;  %v3874_v23 = vadd.f32 %v3810_v24, %v3746_v62  ;;  %v3751_v2 = vadd.f32 %v7674_v27, %v10444_v54  ;;  %v10448_v62 = vld [vmem:[#allocation11_spill] sm:$0xff]  ;;  %v3819_v27 = vld [vmem:[#allocation2 + $0x110] sm:$0xff] }
 0x257   : > { %v3578_v41 = vpop.f32.mrf.mxu1  ;;  %v9838_v52 = vpop.f32.mrf.mxu0 }
 0x258   : > { %3938 = vst.msk [vmem:[#allocation2 + $0xc8] sm:$0xff] %vm1960_vm4, %v3874_v23  ;;  %v3879_v32 = vadd.f32 %v3815_v31, %v3751_v2  ;;  %v3749_v38 = vadd.f32 %v3578_v41, %v10445_v6  ;;  %v10449_v31 = vld [vmem:[#allocation12_spill] sm:$0xff] }
 0x259   : > { %v7675_v57 = vpop.f32.mrf.mxu1  ;;  %v9842_v9 = vpop.f32.mrf.mxu0 }
 0x25a   : > { %3943 = vst.msk [vmem:[#allocation2 + $0xf0] sm:$0xff] %vm1960_vm4, %v3879_v32  ;;  %v3877_v43 = vadd.f32 %v3813_v15, %v3749_v38  ;;  %v3752_v44 = vadd.f32 %v7675_v57, %v10446_v11  ;;  %v3817_v32 = vld [vmem:[#allocation2 + $0x100] sm:$0xff]  ;;  %v10450_v57 = vld [vmem:[#allocation13_spill] sm:$0xff]  ;;  %v3820_v11 = vld [vmem:[#allocation2 + $0x118] sm:$0xff] }
 0x25b   : > { %v3581_v10 = vpop.f32.mrf.mxu1  ;;  %v9846_v45 = vpop.f32.mrf.mxu0 }
 0x25c   : > { %3941 = vst.msk [vmem:[#allocation2 + $0xe0] sm:$0xff] %vm1960_vm4, %v3877_v43  ;;  %v3880_v17 = vadd.f32 %v3816_v0, %v3752_v44  ;;  %v3750_v25 = vadd.f32 %v3581_v10, %v10447_v20 }
 0x25d   : > { %v7678_v46 = vpop.f32.mrf.mxu1  ;;  %v9850_v49 = vpop.f32.mrf.mxu0 }
 0x25e   : > { %3944 = vst.msk [vmem:[#allocation2 + $0xf8] sm:$0xff] %vm1960_vm4, %v3880_v17  ;;  %v3878_v36 = vadd.f32 %v3814_v26, %v3750_v25  ;;  %v3755_v24 = vadd.f32 %v7678_v46, %v10448_v62  ;;  %v10451_v17 = vld [vmem:[#allocation14_spill] sm:$0xff]  ;;  %v3818_v25 = vld [vmem:[#allocation2 + $0x108] sm:$0xff]  ;;  %v10452_v62 = vld [vmem:[#allocation15_spill] sm:$0xff] }
 0x25f   : > { %v3594_v23 = vpop.f32.mrf.mxu1  ;;  %v9854_v54 = vpop.f32.mrf.mxu0 }
 0x260   : > { %3942 = vst.msk [vmem:[#allocation2 + $0xe8] sm:$0xff] %vm1960_vm4, %v3878_v36  ;;  %v3883_v2 = vadd.f32 %v3819_v27, %v3755_v24  ;;  %v3753_v41 = vadd.f32 %v3594_v23, %v10449_v31  ;;  %v3823_v27 = vld [vmem:[#allocation2 + $0x130] sm:$0xff] }
 0x261   : > { %v7679_v6 = vpop.f32.mrf.mxu1  ;;  %v9858_v38 = vpop.f32.mrf.mxu0 }
 0x262   : > { %3947 = vst.msk [vmem:[#allocation2 + $0x110] sm:$0xff] %vm1960_vm4, %v3883_v2  ;;  %v3881_v15 = vadd.f32 %v3817_v32, %v3753_v41  ;;  %v3756_v43 = vadd.f32 %v7679_v6, %v10450_v57  ;;  %v10453_v41 = vld [vmem:[#allocation16_spill] sm:$0xff]  ;;  %v3821_v6 = vld [vmem:[#allocation2 + $0x120] sm:$0xff] }
 0x263   : > { %v3597_v44 = vpop.f32.mrf.mxu1  ;;  %v9862_v0 = vpop.f32.mrf.mxu0 }
 0x264   : > { %3945 = vst.msk [vmem:[#allocation2 + $0x100] sm:$0xff] %vm1960_vm4, %v3881_v15  ;;  %v3884_v10 = vadd.f32 %v3820_v11, %v3756_v43  ;;  %v3754_v20 = vadd.f32 %v3597_v44, %v10451_v17  ;;  %v10454_v11 = vld [vmem:[#allocation17_spill] sm:$0xff] }
 0x265   : > { %v7682_v26 = vpop.f32.mrf.mxu1  ;;  %v9866_v46 = vpop.f32.mrf.mxu0 }
 0x266   : > { %3948 = vst.msk [vmem:[#allocation2 + $0x118] sm:$0xff] %vm1960_vm4, %v3884_v10  ;;  %v3882_v36 = vadd.f32 %v3818_v25, %v3754_v20  ;;  %v3759_v24 = vadd.f32 %v7682_v26, %v10452_v62  ;;  %v3824_v10 = vld [vmem:[#allocation2 + $0x138] sm:$0xff]  ;;  %v3822_v62 = vld [vmem:[#allocation2 + $0x128] sm:$0xff] }
 0x267   : > { %v3610_v23 = vpop.f32.mrf.mxu1  ;;  %v9870_v2 = vpop.f32.mrf.mxu0  ;;  %v10455_v26 = vld [vmem:[#allocation18_spill] sm:$0xff] }
 0x268   : > { %3946 = vst.msk [vmem:[#allocation2 + $0x108] sm:$0xff] %vm1960_vm4, %v3882_v36  ;;  %v3887_v31 = vadd.f32 %v3823_v27, %v3759_v24  ;;  %v3757_v32 = vadd.f32 %v3610_v23, %v10453_v41 }
 0x269   : > { %v7683_v15 = vpop.f32.mrf.mxu1  ;;  %v9874_v57 = vpop.f32.mrf.mxu0 }
 0x26a   : > { %3951 = vst.msk [vmem:[#allocation2 + $0x130] sm:$0xff] %vm1960_vm4, %v3887_v31  ;;  %v3885_v43 = vadd.f32 %v3821_v6, %v3757_v32  ;;  %v3760_v44 = vadd.f32 %v7683_v15, %v10454_v11  ;;  %v10457_v31 = vld [vmem:[#allocation19_spill] sm:$0xff]  ;;  %v3827_v32 = vld [vmem:[#allocation2 + $0x150] sm:$0xff] }
 0x26b   : > { %v3613_v17 = vpop.f32.mrf.mxu1  ;;  %v9878_v20 = vpop.f32.mrf.mxu0 }
 0x26c   : > { %3949 = vst.msk [vmem:[#allocation2 + $0x120] sm:$0xff] %vm1960_vm4, %v3885_v43  ;;  %v3888_v25 = vadd.f32 %v3824_v10, %v3760_v44  ;;  %v3758_v36 = vadd.f32 %v3613_v17, %v10455_v26  ;;  %v10459_v43 = vld [vmem:[#allocation20_spill] sm:$0xff]  ;;  %v3825_v10 = vld [vmem:[#allocation2 + $0x140] sm:$0xff] }
 0x26d   : > { %v7686_v24 = vpop.f32.mrf.mxu1  ;;  %v9882_v27 = vpop.f32.mrf.mxu0 }
 0x26e   : > { %10456 = vst [vmem:[#allocation3_spill] sm:$0xff] %v9882_v27  ;;  %3952 = vst.msk [vmem:[#allocation2 + $0x138] sm:$0xff] %vm1960_vm4, %v3888_v25  ;;  %v3886_v23 = vadd.f32 %v3822_v62, %v3758_v36  ;;  %v3763_v41 = vadd.f32 %v7686_v24, %v10457_v31  ;;  %v10461_v25 = vld [vmem:[#allocation21_spill] sm:$0xff]  ;;  %v3828_v62 = vld [vmem:[#allocation2 + $0x158] sm:$0xff] }
 0x26f   : > { %v3626_v6 = vpop.f32.mrf.mxu1  ;;  %v9886_v15 = vpop.f32.mrf.mxu0 }
 0x270   : > { %10458 = vst [vmem:[#allocation4_spill] sm:$0xff] %v9886_v15  ;;  %3950 = vst.msk [vmem:[#allocation2 + $0x128] sm:$0xff] %vm1960_vm4, %v3886_v23  ;;  %v3891_v11 = vadd.f32 %v3827_v32, %v3763_v41  ;;  %v3761_v44 = vadd.f32 %v3626_v6, %v10459_v43  ;;  %v10463_v23 = vld [vmem:[#allocation22_spill] sm:$0xff]  ;;  %v3826_v32 = vld [vmem:[#allocation2 + $0x148] sm:$0xff] }
 0x271   : > { %v7687_v17 = vpop.f32.mrf.mxu1  ;;  %v9890_v26 = vpop.f32.mrf.mxu0 }
 0x272   : > { %10460 = vst [vmem:[#allocation5_spill] sm:$0xff] %v9890_v26  ;;  %3955 = vst.msk [vmem:[#allocation2 + $0x150] sm:$0xff] %vm1960_vm4, %v3891_v11  ;;  %v3889_v27 = vadd.f32 %v3825_v10, %v3761_v44  ;;  %v3764_v36 = vadd.f32 %v7687_v17, %v10461_v25  ;;  %v10465_v11 = vld [vmem:[#allocation23_spill] sm:$0xff]  ;;  %v3831_v10 = vld [vmem:[#allocation2 + $0x170] sm:$0xff] }
 0x273   : > { %v3629_v24 = vpop.f32.mrf.mxu1  ;;  %v9894_v31 = vpop.f32.mrf.mxu0 }
 0x274   : > { %10462 = vst [vmem:[#allocation6_spill] sm:$0xff] %v9894_v31  ;;  %3953 = vst.msk [vmem:[#allocation2 + $0x140] sm:$0xff] %vm1960_vm4, %v3889_v27  ;;  %v3892_v15 = vadd.f32 %v3828_v62, %v3764_v36  ;;  %v3762_v41 = vadd.f32 %v3629_v24, %v10463_v23  ;;  %v10467_v27 = vld [vmem:[#allocation24_spill] sm:$0xff]  ;;  %v3829_v62 = vld [vmem:[#allocation2 + $0x160] sm:$0xff] }
 0x275   : > { %v7690_v6 = vpop.f32.mrf.mxu1  ;;  %v9898_v43 = vpop.f32.mrf.mxu0 }
 0x276   : > { %10464 = vst [vmem:[#allocation7_spill] sm:$0xff] %v9898_v43  ;;  %3956 = vst.msk [vmem:[#allocation2 + $0x158] sm:$0xff] %vm1960_vm4, %v3892_v15  ;;  %v3890_v26 = vadd.f32 %v3826_v32, %v3762_v41  ;;  %v3767_v44 = vadd.f32 %v7690_v6, %v10465_v11  ;;  %v10469_v15 = vld [vmem:[#allocation25_spill] sm:$0xff]  ;;  %v3832_v32 = vld [vmem:[#allocation2 + $0x178] sm:$0xff] }
 0x277   : > { %v3642_v17 = vpop.f32.mrf.mxu1  ;;  %v9902_v25 = vpop.f32.mrf.mxu0 }
 0x278   : > { %10466 = vst [vmem:[#allocation8_spill] sm:$0xff] %v9902_v25  ;;  %3954 = vst.msk [vmem:[#allocation2 + $0x148] sm:$0xff] %vm1960_vm4, %v3890_v26  ;;  %v3895_v31 = vadd.f32 %v3831_v10, %v3767_v44  ;;  %v3765_v36 = vadd.f32 %v3642_v17, %v10467_v27  ;;  %v10470_v26 = vld [vmem:[#allocation26_spill] sm:$0xff]  ;;  %v3830_v10 = vld [vmem:[#allocation2 + $0x168] sm:$0xff] }
 0x279   : > { %v7691_v24 = vpop.f32.mrf.mxu1  ;;  %v9906_v23 = vpop.f32.mrf.mxu0 }
 0x27a   : > { %10468 = vst [vmem:[#allocation9_spill] sm:$0xff] %v9906_v23  ;;  %3959 = vst.msk [vmem:[#allocation2 + $0x170] sm:$0xff] %vm1960_vm4, %v3895_v31  ;;  %v3893_v43 = vadd.f32 %v3829_v62, %v3765_v36  ;;  %v3768_v41 = vadd.f32 %v7691_v24, %v10469_v15  ;;  %v3835_v36 = vld [vmem:[#allocation2 + $0x190] sm:$0xff] }
 0x27b   : > { %v3645_v6 = vpop.f32.mrf.mxu1  ;;  %v9910_v11 = vpop.f32.mrf.mxu0 }
 0x27c   : > { %3957 = vst.msk [vmem:[#allocation2 + $0x160] sm:$0xff] %vm1960_vm4, %v3893_v43  ;;  %v3896_v25 = vadd.f32 %v3832_v32, %v3768_v41  ;;  %v3766_v44 = vadd.f32 %v3645_v6, %v10470_v26  ;;  %v3833_v41 = vld [vmem:[#allocation2 + $0x180] sm:$0xff] }
 0x27d   : > { %v7694_v17 = vpop.f32.mrf.mxu1  ;;  %v9914_v27 = vpop.f32.mrf.mxu0 }
 0x27e   : > { %3960 = vst.msk [vmem:[#allocation2 + $0x178] sm:$0xff] %vm1960_vm4, %v3896_v25  ;;  %v3894_v23 = vadd.f32 %v3830_v10, %v3766_v44  ;;  %v3771_v31 = vadd.f32 %v7694_v17, %v9589_v40  ;;  %v3836_v44 = vld [vmem:[#allocation2 + $0x198] sm:$0xff] }
 0x27f   : > { %v3658_v62 = vpop.f32.mrf.mxu1  ;;  %v9918_v24 = vpop.f32.mrf.mxu0 }
 0x280   : > { %3958 = vst.msk [vmem:[#allocation2 + $0x168] sm:$0xff] %vm1960_vm4, %v3894_v23  ;;  %v3899_v15 = vadd.f32 %v3835_v36, %v3771_v31  ;;  %v3769_v43 = vadd.f32 %v3658_v62, %v9592_v63  ;;  %v10473_v23 = vld [vmem:[#allocation27_spill] sm:$0xff]  ;;  %v3834_v36 = vld [vmem:[#allocation2 + $0x188] sm:$0xff] }
 0x281   : > { %v7695_v32 = vpop.f32.mrf.mxu1  ;;  %v9922_v6 = vpop.f32.mrf.mxu0 }
 0x282   : > { %10471 = vst [vmem:[#allocation10_spill] sm:$0xff] %v9922_v6  ;;  %3963 = vst.msk [vmem:[#allocation2 + $0x190] sm:$0xff] %vm1960_vm4, %v3899_v15  ;;  %v3897_v26 = vadd.f32 %v3833_v41, %v3769_v43  ;;  %v3772_v25 = vadd.f32 %v7695_v32, %v9596_v3  ;;  %v3839_v43 = vld [vmem:[#allocation2 + $0x1b0] sm:$0xff] }
 0x283   : > { %v3661_v40 = vpop.f32.mrf.mxu1  ;;  %v9926_v10 = vpop.f32.mrf.mxu0 }
 0x284   : > { %10472 = vst [vmem:[#allocation11_spill] sm:$0xff] %v9926_v10  ;;  %3961 = vst.msk [vmem:[#allocation2 + $0x180] sm:$0xff] %vm1960_vm4, %v3897_v26  ;;  %v3900_v17 = vadd.f32 %v3836_v44, %v3772_v25  ;;  %v3770_v31 = vadd.f32 %v3661_v40, %v10473_v23  ;;  %v3837_v25 = vld [vmem:[#allocation2 + $0x1a0] sm:$0xff] }
 0x285   : > { %v7698_v63 = vpop.f32.mrf.mxu1  ;;  %v9930_v62 = vpop.f32.mrf.mxu0 }
 0x286   : > { %10474 = vst [vmem:[#allocation12_spill] sm:$0xff] %v9930_v62  ;;  %3964 = vst.msk [vmem:[#allocation2 + $0x198] sm:$0xff] %vm1960_vm4, %v3900_v17  ;;  %v3898_v6 = vadd.f32 %v3834_v36, %v3770_v31  ;;  %v3775_v15 = vadd.f32 %v7698_v63, %v9605_v59  ;;  %v10477_v17 = vld [vmem:[#allocation28_spill] sm:$0xff]  ;;  %v3840_v36 = vld [vmem:[#allocation2 + $0x1b8] sm:$0xff] }
 0x287   : > { %v3674_v3 = vpop.f32.mrf.mxu1  ;;  %v9934_v41 = vpop.f32.mrf.mxu0  ;;  %v5737_v62 = vld [vmem:[#allocation2] sm:$0xff] }
 0x288   : > { %10475 = vst [vmem:[#allocation13_spill] sm:$0xff] %v9934_v41  ;;  %3962 = vst.msk [vmem:[#allocation2 + $0x188] sm:$0xff] %vm1960_vm4, %v3898_v6  ;;  %v3903_v32 = vadd.f32 %v3839_v43, %v3775_v15  ;;  %v3773_v26 = vadd.f32 %v3674_v3, %v9608_v34  ;;  %v10479_v6 = vld [vmem:[#allocation29_spill] sm:$0xff]  ;;  %v3838_v43 = vld [vmem:[#allocation2 + $0x1a8] sm:$0xff] }
 0x289   : > { %v7699_v44 = vpop.f32.mrf.mxu1  ;;  %v9938_v40 = vpop.f32.mrf.mxu0 }
 0x28a   : > { %10476 = vst [vmem:[#allocation14_spill] sm:$0xff] %v9938_v40  ;;  %3967 = vst.msk [vmem:[#allocation2 + $0x1b0] sm:$0xff] %vm1960_vm4, %v3903_v32  ;;  %v3901_v23 = vadd.f32 %v3837_v25, %v3773_v26  ;;  %v3776_v31 = vadd.f32 %v7699_v44, %v10477_v17  ;;  %v3843_v26 = vld [vmem:[#allocation2 + $0x1d0] sm:$0xff] }
 0x28b   : > { %v3677_v59 = vpop.f32.mrf.mxu1  ;;  %v9942_v63 = vpop.f32.mrf.mxu0 }
 0x28c   : > { %10478 = vst [vmem:[#allocation15_spill] sm:$0xff] %v9942_v63  ;;  %3965 = vst.msk [vmem:[#allocation2 + $0x1a0] sm:$0xff] %vm1960_vm4, %v3901_v23  ;;  %v3904_v41 = vadd.f32 %v3840_v36, %v3776_v31  ;;  %v3774_v15 = vadd.f32 %v3677_v59, %v10479_v6  ;;  %v10482_v23 = vld [vmem:[#allocation30_spill] sm:$0xff]  ;;  %v3841_v36 = vld [vmem:[#allocation2 + $0x1c0] sm:$0xff] }
 0x28d   : > { %v7702_v34 = vpop.f32.mrf.mxu1  ;;  %v9946_v3 = vpop.f32.mrf.mxu0  ;;  %v5739_v63 = vld [vmem:[#allocation2 + $0x10] sm:$0xff] }
 0x28e   : > { %10480 = vst [vmem:[#allocation16_spill] sm:$0xff] %v9946_v3  ;;  %3968 = vst.msk [vmem:[#allocation2 + $0x1b8] sm:$0xff] %vm1960_vm4, %v3904_v41  ;;  %v3902_v40 = vadd.f32 %v3838_v43, %v3774_v15  ;;  %v3779_v32 = vadd.f32 %v7702_v34, %v9621_v1  ;;  %v10484_v41 = vld [vmem:[#allocation31_spill] sm:$0xff]  ;;  %v3844_v43 = vld [vmem:[#allocation2 + $0x1d8] sm:$0xff] }
 0x28f   : > { %v3690_v25 = vpop.f32.mrf.mxu1  ;;  %v9950_v44 = vpop.f32.mrf.mxu0 }
 0x290   : > { %10481 = vst [vmem:[#allocation17_spill] sm:$0xff] %v9950_v44  ;;  %3966 = vst.msk [vmem:[#allocation2 + $0x1a8] sm:$0xff] %vm1960_vm4, %v3902_v40  ;;  %v3907_v17 = vadd.f32 %v3843_v26, %v3779_v32  ;;  %v3777_v31 = vadd.f32 %v3690_v25, %v10482_v23  ;;  %v10486_v40 = vld [vmem:[#allocation32_spill] sm:$0xff] }
 0x291   : > { %v7703_v59 = vpop.f32.mrf.mxu1  ;;  %v9954_v6 = vpop.f32.mrf.mxu0  ;;  %v3842_v26 = vld [vmem:[#allocation2 + $0x1c8] sm:$0xff] }
 0x292   : > { %10483 = vst [vmem:[#allocation18_spill] sm:$0xff] %v9954_v6  ;;  %3971 = vst.msk [vmem:[#allocation2 + $0x1d0] sm:$0xff] %vm1960_vm4, %v3907_v17  ;;  %v3905_v3 = vadd.f32 %v3841_v36, %v3777_v31  ;;  %v3780_v15 = vadd.f32 %v7703_v59, %v10484_v41  ;;  %v3847_v31 = vld [vmem:[#allocation2 + $0x1f0] sm:$0xff] }
 0x293   : > { %v3693_v1 = vpop.f32.mrf.mxu1  ;;  %v9958_v34 = vpop.f32.mrf.mxu0 }
 0x294   : > { %10485 = vst [vmem:[#allocation19_spill] sm:$0xff] %v9958_v34  ;;  %3969 = vst.msk [vmem:[#allocation2 + $0x1c0] sm:$0xff] %vm1960_vm4, %v3905_v3  ;;  %v3908_v44 = vadd.f32 %v3844_v43, %v3780_v15  ;;  %v3778_v32 = vadd.f32 %v3693_v1, %v10486_v40  ;;  %v3845_v15 = vld [vmem:[#allocation2 + $0x1e0] sm:$0xff] }
 0x295   : > { %v7706_v25 = vpop.f32.mrf.mxu1  ;;  %v9962_v23 = vpop.f32.mrf.mxu0 }
 0x296   : > { %10487 = vst [vmem:[#allocation20_spill] sm:$0xff] %v9962_v23  ;;  %3972 = vst.msk [vmem:[#allocation2 + $0x1d8] sm:$0xff] %vm1960_vm4, %v3908_v44  ;;  %v3906_v6 = vadd.f32 %v3842_v26, %v3778_v32  ;;  %v3783_v17 = vadd.f32 %v7706_v25, %v9639_v39  ;;  %v10490_v44 = vld [vmem:[#allocation33_spill] sm:$0xff]  ;;  %v3848_v26 = vld [vmem:[#allocation2 + $0x1f8] sm:$0xff] }
 0x297   : > { %v3706_v36 = vpop.f32.mrf.mxu1  ;;  %v9966_v59 = vpop.f32.mrf.mxu0  ;;  %v10491_v23 = vld [vmem:[#allocation35_spill] sm:$0xff] }
 0x298   : > { %10488 = vst [vmem:[#allocation21_spill] sm:$0xff] %v9966_v59  ;;  %3970 = vst.msk [vmem:[#allocation2 + $0x1c8] sm:$0xff] %vm1960_vm4, %v3906_v6  ;;  %v3911_v41 = vadd.f32 %v3847_v31, %v3783_v17  ;;  %v3781_v3 = vadd.f32 %v3706_v36, %v9643_v35  ;;  %v3846_v17 = vld [vmem:[#allocation2 + $0x1e8] sm:$0xff] }
 0x299   : > { %v7707_v43 = vpop.f32.mrf.mxu1  ;;  %v9970_v1 = vpop.f32.mrf.mxu0 }
 0x29a   : > { %10489 = vst [vmem:[#allocation22_spill] sm:$0xff] %v9970_v1  ;;  %3975 = vst.msk [vmem:[#allocation2 + $0x1f0] sm:$0xff] %vm1960_vm4, %v3911_v41  ;;  %v3909_v40 = vadd.f32 %v3845_v15, %v3781_v3  ;;  %v3784_v32 = vadd.f32 %v7707_v43, %v10490_v44  ;;  %v10492_v1 = vld [vmem:[#allocation34_spill] sm:$0xff]  ;;  %v10493_v43 = vld [vmem:[#allocation36_spill] sm:$0xff] }
 0x29b   : > { %v3709_v39 = vpop.f32.mrf.mxu1  ;;  %v7844_v25 = vpop.f32.mrf.mxu0 }
 0x29c   : > { %3973 = vst.msk [vmem:[#allocation2 + $0x1e0] sm:$0xff] %vm1960_vm4, %v3909_v40  ;;  %v3912_v59 = vadd.f32 %v3848_v26, %v3784_v32  ;;  %v3782_v6 = vadd.f32 %v3709_v39, %v10491_v23 }
 0x29d   : > { %v7778_v31 = vpop.f32.mrf.mxu1  ;;  %v5418_v35 = vpop.f32.mrf.mxu0 }
 0x29e   : > { %3976 = vst.msk [vmem:[#allocation2 + $0x1f8] sm:$0xff] %vm1960_vm4, %v3912_v59  ;;  %v3910_v36 = vadd.f32 %v3846_v17, %v3782_v6  ;;  %v4972_v34 = vadd.f32 %v7778_v31, %v10492_v1  ;;  %v5740_v31 = vld [vmem:[#allocation2 + $0x18] sm:$0xff] }
 0x29f   : > { %v4963_v41 = vpop.f32.mrf.mxu1  ;;  %v7845_v3 = vpop.f32.mrf.mxu0 }
 0x2a0   : > { %3974 = vst.msk [vmem:[#allocation2 + $0x1e8] sm:$0xff] %vm1960_vm4, %v3910_v36  ;;  %v5675_v15 = vadd.f32 %v7844_v25, %v4972_v34  ;;  %v4964_v44 = vadd.f32 %v4963_v41, %v10493_v43 }
 0x2a1   : > { %v7779_v40 = vpop.f32.mrf.mxu1  ;;  %v5421_v32 = vpop.f32.mrf.mxu0 }
 0x2a2   : > { %v5803_v26 = vadd.f32 %v5739_v63, %v5675_v15  ;;  %v5673_v23 = vadd.f32 %v5418_v35, %v4964_v44  ;;  %v4975_v39 = vadd.f32 %v7779_v40, %v9664_v51  ;;  %v5738_v35 = vld [vmem:[#allocation2 + $0x8] sm:$0xff] }
 0x2a3   : > { %v4966_v10 = vpop.f32.mrf.mxu1  ;;  %v7848_v59 = vpop.f32.mrf.mxu0 }
 0x2a4   : > { %5867 = vst.msk [vmem:[#allocation2 + $0x10] sm:$0xff] %vm1960_vm4, %v5803_v26  ;;  %v5801_v1 = vadd.f32 %v5737_v62, %v5673_v23  ;;  %v5676_v6 = vadd.f32 %v7845_v3, %v4975_v39  ;;  %v4967_v17 = vadd.f32 %v4966_v10, %v9668_v12  ;;  %v5743_v3 = vld [vmem:[#allocation2 + $0x30] sm:$0xff]  ;;  %v5741_v23 = vld [vmem:[#allocation2 + $0x20] sm:$0xff] }
 0x2a5   : > { %v7782_v34 = vpop.f32.mrf.mxu1  ;;  %v5434_v25 = vpop.f32.mrf.mxu0 }
 0x2a6   : > { %5865 = vst.msk [vmem:[#allocation2] sm:$0xff] %vm1960_vm4, %v5801_v1  ;;  %v5804_v36 = vadd.f32 %v5740_v31, %v5676_v6  ;;  %v5674_v41 = vadd.f32 %v5421_v32, %v4967_v17  ;;  %v4988_v63 = vadd.f32 %v7782_v34, %v9673_v58  ;;  %v9992_v58 = vld [vmem:[%s10341_s2] ss:$0 sm:$0xff]  ;;  %v5744_v31 = vld [vmem:[#allocation2 + $0x38] sm:$0xff] }
 0x2a7   : > { %v4979_v51 = vpop.f32.mrf.mxu1  ;;  %v7849_v15 = vpop.f32.mrf.mxu0 }
 0x2a8   : > { %5868 = vst.msk [vmem:[#allocation2 + $0x18] sm:$0xff] %vm1960_vm4, %v5804_v36  ;;  %v5802_v43 = vadd.f32 %v5738_v35, %v5674_v41  ;;  %v5679_v44 = vadd.f32 %v7848_v59, %v4988_v63  ;;  %v4980_v62 = vadd.f32 %v4979_v51, %v9682_v7  ;;  %v5742_v35 = vld [vmem:[#allocation2 + $0x28] sm:$0xff] }
 0x2a9   : > { %v7783_v12 = vpop.f32.mrf.mxu1  ;;  %v5437_v10 = vpop.f32.mrf.mxu0 }
 0x2aa   : > { %5866 = vst.msk [vmem:[#allocation2 + $0x8] sm:$0xff] %vm1960_vm4, %v5802_v43  ;;  %v5807_v40 = vadd.f32 %v5743_v3, %v5679_v44  ;;  %v5677_v26 = vadd.f32 %v5434_v25, %v4980_v62  ;;  %v4991_v32 = vadd.f32 %v7783_v12, %v9689_v4  ;;  %v5747_v12 = vld [vmem:[#allocation2 + $0x50] sm:$0xff] }
 0x2ab   : > { %v4982_v39 = vpop.f32.mrf.mxu1  ;;  %v7852_v1 = vpop.f32.mrf.mxu0 }
 0x2ac   : > { %5871 = vst.msk [vmem:[#allocation2 + $0x30] sm:$0xff] %vm1960_vm4, %v5807_v40  ;;  %v5805_v7 = vadd.f32 %v5741_v23, %v5677_v26  ;;  %v5680_v59 = vadd.f32 %v7849_v15, %v4991_v32  ;;  %v4983_v6 = vadd.f32 %v4982_v39, %v9694_v28  ;;  %v5745_v23 = vld [vmem:[#allocation2 + $0x40] sm:$0xff] }
 0x2ad   : > { %v5929_v17 = vld [vmem:[#allocation2] sm:$0xff]  ;;  %v7786_v34 = vpop.f32.mrf.mxu1  ;;  %v5450_v25 = vpop.f32.mrf.mxu0 }
 0x2ae   : > { %v9997_v4 = vadd.f32 %v9992_v58, %v5929_v17  ;;  %5869 = vst.msk [vmem:[#allocation2 + $0x20] sm:$0xff] %vm1960_vm4, %v5805_v7  ;;  %v5808_v36 = vadd.f32 %v5744_v31, %v5680_v59  ;;  %v5678_v41 = vadd.f32 %v5437_v10, %v4983_v6  ;;  %v5004_v63 = vadd.f32 %v7786_v34, %v9699_v47 }
 0x2af   : > { %v4995_v51 = vpop.f32.mrf.mxu1  ;;  %v7853_v43 = vpop.f32.mrf.mxu0 }
 0x2b0   : > { %v6000_v15 = vmul.f32 0.5, %v9997_v4  ;;  %5872 = vst.msk [vmem:[#allocation2 + $0x38] sm:$0xff] %vm1960_vm4, %v5808_v36  ;;  %v5806_v28 = vadd.f32 %v5742_v35, %v5678_v41  ;;  %v5683_v44 = vadd.f32 %v7852_v1, %v5004_v63  ;;  %v4996_v62 = vadd.f32 %v4995_v51, %v9708_v37  ;;  %v5746_v51 = vld [vmem:[#allocation2 + $0x48] sm:$0xff] }
 0x2b1   : > { %v5930_v3 = vld [vmem:[#allocation2 + $0x8] sm:$0xff]  ;;  %v7787_v40 = vpop.f32.mrf.mxu1  ;;  %v5453_v26 = vpop.f32.mrf.mxu0 }
 0x2b2   : > { %8042 = vtanh.f32 %v6000_v15  ;;  %v10005_v10 = vadd.f32 %v9992_v58, %v5930_v3  ;;  %5870 = vst.msk [vmem:[#allocation2 + $0x28] sm:$0xff] %vm1960_vm4, %v5806_v28  ;;  %v5811_v47 = vadd.f32 %v5747_v12, %v5683_v44  ;;  %v5681_v32 = vadd.f32 %v5450_v25, %v4996_v62  ;;  %v5751_v12 = vld [vmem:[#allocation2 + $0x70] sm:$0xff] }
 0x2b3   : > { %v5007_v39 = vadd.f32 %v7787_v40, %v9715_v30  ;;  %v4998_v7 = vpop.f32.mrf.mxu1  ;;  %v7856_v59 = vpop.f32.mrf.mxu0  ;;  %v5748_v30 = vld [vmem:[#allocation2 + $0x58] sm:$0xff] }
 0x2b4   : > { %v6001_v1 = vmul.f32 0.5, %v10005_v10  ;;  %5875 = vst.msk [vmem:[#allocation2 + $0x50] sm:$0xff] %vm1960_vm4, %v5811_v47  ;;  %v5809_v37 = vadd.f32 %v5745_v23, %v5681_v32  ;;  %v4999_v6 = vadd.f32 %v4998_v7, %v9720_v14  ;;  %v5749_v23 = vld [vmem:[#allocation2 + $0x60] sm:$0xff] }
 0x2b5   : > { %v5931_v17 = vld [vmem:[#allocation2 + $0x20] sm:$0xff]  ;;  %v5684_v31 = vadd.f32 %v7853_v43, %v5007_v39  ;;  %v7790_v34 = vpop.f32.mrf.mxu1  ;;  %v5466_v36 = vpop.f32.mrf.mxu0 }
 0x2b6   : > { %8044 = vtanh.f32 %v6001_v1  ;;  %v10013_v41 = vadd.f32 %v9992_v58, %v5931_v17  ;;  %5873 = vst.msk [vmem:[#allocation2 + $0x40] sm:$0xff] %vm1960_vm4, %v5809_v37  ;;  %v5682_v25 = vadd.f32 %v5453_v26, %v4999_v6  ;;  %v5020_v63 = vadd.f32 %v7790_v34, %v9725_v21 }
 0x2b7   : > { %v5812_v35 = vadd.f32 %v5748_v30, %v5684_v31  ;;  %v5011_v15 = vpop.f32.mrf.mxu1  ;;  %v7857_v28 = vpop.f32.mrf.mxu0 }
 0x2b8   : > { %v6002_v14 = vmul.f32 0.5, %v10013_v41  ;;  %v5810_v44 = vadd.f32 %v5746_v51, %v5682_v25  ;;  %v5687_v43 = vadd.f32 %v7856_v59, %v5020_v63  ;;  %v5012_v62 = vadd.f32 %v5011_v15, %v9734_v55  ;;  %v5750_v51 = vld [vmem:[#allocation2 + $0x68] sm:$0xff] }
 0x2b9   : > { %v5932_v3 = vld [vmem:[#allocation2 + $0x28] sm:$0xff]  ;;  %5876 = vst.msk [vmem:[#allocation2 + $0x58] sm:$0xff] %vm1960_vm4, %v5812_v35  ;;  %v7791_v40 = vpop.f32.mrf.mxu1  ;;  %v5469_v47 = vpop.f32.mrf.mxu0 }
 0x2ba   : > { %8046 = vtanh.f32 %v6002_v14  ;;  %v10021_v26 = vadd.f32 %v9992_v58, %v5932_v3  ;;  %5874 = vst.msk [vmem:[#allocation2 + $0x48] sm:$0xff] %vm1960_vm4, %v5810_v44  ;;  %v5815_v21 = vadd.f32 %v5751_v12, %v5687_v43  ;;  %v5685_v32 = vadd.f32 %v5466_v36, %v5012_v62  ;;  %v5755_v3 = vld [vmem:[#allocation2 + $0x90] sm:$0xff] }
 0x2bb   : > { %v5023_v39 = vadd.f32 %v7791_v40, %v9741_v50  ;;  %v5014_v7 = vpop.f32.mrf.mxu1  ;;  %v7860_v59 = vpop.f32.mrf.mxu0  ;;  %v5752_v50 = vld [vmem:[#allocation2 + $0x78] sm:$0xff] }
 0x2bc   : > { %v6003_v55 = vmul.f32 0.5, %v10021_v26  ;;  %5879 = vst.msk [vmem:[#allocation2 + $0x70] sm:$0xff] %vm1960_vm4, %v5815_v21  ;;  %v5813_v1 = vadd.f32 %v5749_v23, %v5685_v32  ;;  %v5015_v37 = vadd.f32 %v5014_v7, %v9746_v48 }
 0x2bd   : > { %v5933_v6 = vld [vmem:[#allocation2 + $0x40] sm:$0xff]  ;;  %v5688_v17 = vadd.f32 %v7857_v28, %v5023_v39  ;;  %v7794_v31 = vpop.f32.mrf.mxu1  ;;  %v5482_v34 = vpop.f32.mrf.mxu0 }
 0x2be   : > { %8048 = vtanh.f32 %v6003_v55  ;;  %v10029_v30 = vadd.f32 %v9992_v58, %v5933_v6  ;;  %5877 = vst.msk [vmem:[#allocation2 + $0x60] sm:$0xff] %vm1960_vm4, %v5813_v1  ;;  %v5686_v36 = vadd.f32 %v5469_v47, %v5015_v37  ;;  %v5036_v25 = vadd.f32 %v7794_v31, %v9751_v19  ;;  %v5753_v6 = vld [vmem:[#allocation2 + $0x80] sm:$0xff] }
 0x2bf   : > { %v8043_v63 = vpop.eup %8042  ;;  %v5816_v35 = vadd.f32 %v5752_v50, %v5688_v17  ;;  %v5027_v15 = vpop.f32.mrf.mxu1 }
 0x2c0   : > { %v7861_v48 = vpop.f32.mrf.mxu0  ;;  %v6064_v14 = vadd.f32 1.0, %v8043_v63  ;;  %v6004_v28 = vmul.f32 0.5, %v10029_v30  ;;  %v5814_v44 = vadd.f32 %v5750_v51, %v5686_v36  ;;  %v5691_v43 = vadd.f32 %v7860_v59, %v5036_v25 }
 0x2c1   : > { %v5934_v62 = vld [vmem:[#allocation2 + $0x48] sm:$0xff]  ;;  %5880 = vst.msk [vmem:[#allocation2 + $0x78] sm:$0xff] %vm1960_vm4, %v5816_v35  ;;  %v5028_v12 = vadd.f32 %v5027_v15, %v9760_v5  ;;  %v7795_v40 = vpop.f32.mrf.mxu1  ;;  %v5756_v35 = vld [vmem:[#allocation2 + $0x98] sm:$0xff] }
 0x2c2   : > { %v5485_v47 = vpop.f32.mrf.mxu0  ;;  %v6096_v19 = vmul.f32 0.5, %v6064_v14  ;;  %8050 = vtanh.f32 %v6004_v28  ;;  %v10038_v21 = vadd.f32 %v9992_v58, %v5934_v62  ;;  %5878 = vst.msk [vmem:[#allocation2 + $0x68] sm:$0xff] %vm1960_vm4, %v5814_v44  ;;  %v5819_v32 = vadd.f32 %v5755_v3, %v5691_v43  ;;  %v5754_v3 = vld [vmem:[#allocation2 + $0x88] sm:$0xff] }
 0x2c3   : > { %v8045_v23 = vpop.eup %8044  ;;  %v5689_v39 = vadd.f32 %v5482_v34, %v5028_v12  ;;  %v5039_v7 = vadd.f32 %v7795_v40, %v9767_v29  ;;  %v5030_v59 = vpop.f32.mrf.mxu1 }
 0x2c4   : > { %v7864_v55 = vpop.f32.mrf.mxu0  ;;  %v6128_v1 = vmul.f32 %v6096_v19, %v9997_v4  ;;  %v6065_v5 = vadd.f32 1.0, %v8045_v23  ;;  %v6005_v37 = vmul.f32 0.5, %v10038_v21  ;;  %5883 = vst.msk [vmem:[#allocation2 + $0x90] sm:$0xff] %vm1960_vm4, %v5819_v32  ;;  %v5031_v17 = vadd.f32 %v5030_v59, %v9772_v42 }
 0x2c5   : > { %v5935_v31 = vld [vmem:[#allocation2 + $0x60] sm:$0xff]  ;;  %v5817_v29 = vadd.f32 %v5753_v6, %v5689_v39  ;;  %v5692_v34 = vadd.f32 %v7861_v48, %v5039_v7  ;;  %v7798_v50 = vpop.f32.mrf.mxu1 }
 0x2c6   : > { %v5498_v4 = vpop.f32.mrf.mxu0  ;;  %v6983_v36 = vpack.c.bf16 %v6128_v1, %v6128_v1  ;;  %v6097_v25 = vmul.f32 0.5, %v6065_v5  ;;  %8052 = vtanh.f32 %v6005_v37  ;;  %v10052_v63 = vadd.f32 %v9992_v58, %v5935_v31 }
 0x2c7   : > { %v8047_v42 = vpop.eup %8046  ;;  %5881 = vst.msk [vmem:[#allocation2 + $0x80] sm:$0xff] %vm1960_vm4, %v5817_v29  ;;  %v5820_v51 = vadd.f32 %v5756_v35, %v5692_v34  ;;  %v5690_v15 = vadd.f32 %v5485_v47, %v5031_v17  ;;  %v5052_v14 = vadd.f32 %v7798_v50, %v9777_v18  ;;  %v5043_v28 = vpop.f32.mrf.mxu1  ;;  %v5757_v29 = vld [vmem:[#allocation2 + $0xa0] sm:$0xff] }
 0x2c8   : > { %v7865_v44 = vpop.f32.mrf.mxu0  ;;  %6289 = vst.msk [vmem:[%s10049_s19] sm:$0xf] %vm6288_vm5, %v6983_v36  ;;  %v6129_v48 = vmul.f32 %v6097_v25, %v10005_v10  ;;  %v6066_v43 = vadd.f32 1.0, %v8047_v42  ;;  %v6006_v62 = vmul.f32 0.5, %v10052_v63  ;;  %v5044_v12 = vadd.f32 %v5043_v28, %v9786_v13  ;;  %v5759_v10 = vld [vmem:[#allocation2 + $0xb0] sm:$0xff]  ;;  %v5758_v28 = vld [vmem:[#allocation2 + $0xa8] sm:$0xff] }
 0x2c9   : > { %v5936_v40 = vld [vmem:[#allocation2 + $0x68] sm:$0xff]  ;;  %5884 = vst.msk [vmem:[#allocation2 + $0x98] sm:$0xff] %vm1960_vm4, %v5820_v51  ;;  %v5818_v19 = vadd.f32 %v5754_v3, %v5690_v15  ;;  %v5695_v47 = vadd.f32 %v7864_v55, %v5052_v14  ;;  %v7799_v32 = vpop.f32.mrf.mxu1  ;;  %v5760_v51 = vld [vmem:[#allocation2 + $0xb8] sm:$0xff] }
 0x2ca   : > { %v5501_v18 = vpop.f32.mrf.mxu0  ;;  %v6984_v23 = vpack.c.bf16 %v6129_v48, %v6129_v48  ;;  %v6098_v39 = vmul.f32 0.5, %v6066_v43  ;;  %8054 = vtanh.f32 %v6006_v62  ;;  %v10063_v7 = vadd.f32 %v9992_v58, %v5936_v40 }
 0x2cb   : > { %v8049_v59 = vpop.eup %8048  ;;  %5882 = vst.msk [vmem:[#allocation2 + $0x88] sm:$0xff] %vm1960_vm4, %v5818_v19  ;;  %v5823_v1 = vadd.f32 %v5759_v10, %v5695_v47  ;;  %v5693_v13 = vadd.f32 %v5498_v4, %v5044_v12  ;;  %v5055_v5 = vadd.f32 %v7799_v32, %v9793_v16  ;;  %v5046_v37 = vpop.f32.mrf.mxu1  ;;  %v5763_v10 = vld [vmem:[#allocation2 + $0xd0] sm:$0xff] }
 0x2cc   : > { %v7868_v6 = vpop.f32.mrf.mxu0  ;;  %6290 = vst.msk [vmem:[%s10049_s19 + $0x4] sm:$0xf] %vm6288_vm5, %v6984_v23  ;;  %v6130_v55 = vmul.f32 %v6098_v39, %v10013_v41  ;;  %v6067_v17 = vadd.f32 1.0, %v8049_v59  ;;  %v6007_v31 = vmul.f32 0.5, %v10063_v7  ;;  %v5047_v34 = vadd.f32 %v5046_v37, %v9798_v61 }
 0x2cd   : > { %5887 = vst.msk [vmem:[#allocation2 + $0xb0] sm:$0xff] %vm1960_vm4, %v5823_v1  ;;  %v5821_v50 = vadd.f32 %v5757_v29, %v5693_v13  ;;  %v5696_v36 = vadd.f32 %v7865_v44, %v5055_v5  ;;  %v7802_v25 = vpop.f32.mrf.mxu1  ;;  %v5761_v5 = vld [vmem:[#allocation2 + $0xc0] sm:$0xff] }
 0x2ce   : > { %v5514_v4 = vpop.f32.mrf.mxu0  ;;  %v6985_v16 = vpack.c.bf16 %v6130_v55, %v6130_v55  ;;  %v6099_v35 = vmul.f32 0.5, %v6067_v17  ;;  %8056 = vtanh.f32 %v6007_v31  ;;  %v5937_v42 = vld [vmem:[#allocation2 + $0x80] sm:$0xff]  ;;  %v5694_v15 = vadd.f32 %v5501_v18, %v5047_v34 }
 0x2cf   : > { %v8051_v41 = vpop.eup %8050  ;;  %v10074_v14 = vadd.f32 %v9992_v58, %v5937_v42  ;;  %5885 = vst.msk [vmem:[#allocation2 + $0xa0] sm:$0xff] %vm1960_vm4, %v5821_v50  ;;  %v5824_v61 = vadd.f32 %v5760_v51, %v5696_v36  ;;  %v5068_v48 = vadd.f32 %v7802_v25, %v9803_v60  ;;  %v5059_v44 = vpop.f32.mrf.mxu1 }
 0x2d0   : > { %v7869_v43 = vpop.f32.mrf.mxu0  ;;  %6291 = vst.msk [vmem:[%s10049_s19 + $0x8] sm:$0xf] %vm6288_vm5, %v6985_v16  ;;  %v6131_v62 = vmul.f32 %v6099_v35, %v10021_v26  ;;  %v6068_v3 = vadd.f32 1.0, %v8051_v41  ;;  %v5822_v12 = vadd.f32 %v5758_v28, %v5694_v15  ;;  %v5060_v40 = vadd.f32 %v5059_v44, %v9812_v33  ;;  %v5762_v44 = vld [vmem:[#allocation2 + $0xc8] sm:$0xff] }
 0x2d1   : > { %v6008_v19 = vmul.f32 0.5, %v10074_v14  ;;  %5888 = vst.msk [vmem:[#allocation2 + $0xb8] sm:$0xff] %vm1960_vm4, %v5824_v61  ;;  %v5699_v47 = vadd.f32 %v7868_v6, %v5068_v48  ;;  %v7803_v32 = vpop.f32.mrf.mxu1 }
 0x2d2   : > { %v5517_v18 = vpop.f32.mrf.mxu0  ;;  %v6986_v23 = vpack.c.bf16 %v6131_v62, %v6131_v62  ;;  %v6100_v60 = vmul.f32 0.5, %v6068_v3  ;;  %v5938_v39 = vld [vmem:[#allocation2 + $0x88] sm:$0xff]  ;;  %5886 = vst.msk [vmem:[#allocation2 + $0xa8] sm:$0xff] %vm1960_vm4, %v5822_v12  ;;  %v5697_v59 = vadd.f32 %v5514_v4, %v5060_v40  ;;  %v5071_v26 = vadd.f32 %v7803_v32, %v9818_v8  ;;  %v5764_v8 = vld [vmem:[#allocation2 + $0xd8] sm:$0xff]  ;;  %v5767_v40 = vld [vmem:[#allocation2 + $0xf0] sm:$0xff] }
 0x2d3   : > { %v8053_v1 = vpop.eup %8052  ;;  %8058 = vtanh.f32 %v6008_v19  ;;  %v10087_v33 = vadd.f32 %v9992_v58, %v5938_v39  ;;  %v5827_v13 = vadd.f32 %v5763_v10, %v5699_v47  ;;  %v5062_v37 = vpop.f32.mrf.mxu1 }
 0x2d4   : > { %v7872_v6 = vpop.f32.mrf.mxu0  ;;  %6292 = vst.msk [vmem:[%s10049_s19 + $0xc] sm:$0xf] %vm6288_vm5, %v6986_v23  ;;  %v6132_v55 = vmul.f32 %v6100_v60, %v10029_v30  ;;  %v6069_v17 = vadd.f32 1.0, %v8053_v1  ;;  %v5825_v31 = vadd.f32 %v5761_v5, %v5697_v59  ;;  %v5700_v29 = vadd.f32 %v7869_v43, %v5071_v26  ;;  %v5765_v5 = vld [vmem:[#allocation2 + $0xe0] sm:$0xff] }
 0x2d5   : > { %v6009_v34 = vmul.f32 0.5, %v10087_v33  ;;  %5891 = vst.msk [vmem:[#allocation2 + $0xd0] sm:$0xff] %vm1960_vm4, %v5827_v13  ;;  %v5063_v50 = vadd.f32 %v5062_v37, %v9823_v56  ;;  %v7806_v36 = vpop.f32.mrf.mxu1 }
 0x2d6   : > { %v5530_v25 = vpop.f32.mrf.mxu0  ;;  %v6987_v4 = vpack.c.bf16 %v6132_v55, %v6132_v55  ;;  %v6101_v16 = vmul.f32 0.5, %v6069_v17  ;;  %v5939_v35 = vld [vmem:[#allocation2 + $0xa0] sm:$0xff]  ;;  %5889 = vst.msk [vmem:[#allocation2 + $0xc0] sm:$0xff] %vm1960_vm4, %v5825_v31  ;;  %v5828_v42 = vadd.f32 %v5764_v8, %v5700_v29  ;;  %v5084_v30 = vadd.f32 %v7806_v36, %v9827_v53 }
 0x2d7   : > { %v8055_v51 = vpop.eup %8054  ;;  %8060 = vtanh.f32 %v6009_v34  ;;  %v10098_v15 = vadd.f32 %v9992_v58, %v5939_v35  ;;  %v5698_v41 = vadd.f32 %v5517_v18, %v5063_v50  ;;  %v5075_v61 = vpop.f32.mrf.mxu1 }
 0x2d8   : > { %v7873_v28 = vpop.f32.mrf.mxu0  ;;  %6293 = vst.msk [vmem:[%s10049_s19 + $0x10] sm:$0xf] %vm6288_vm5, %v6987_v4  ;;  %v6133_v56 = vmul.f32 %v6101_v16, %v10038_v21  ;;  %v6070_v48 = vadd.f32 1.0, %v8055_v51  ;;  %v5703_v43 = vadd.f32 %v7872_v6, %v5084_v30  ;;  %v5076_v62 = vadd.f32 %v5075_v61, %v9834_v22  ;;  %v5766_v30 = vld [vmem:[#allocation2 + $0xe8] sm:$0xff] }
 0x2d9   : > { %5892 = vst.msk [vmem:[#allocation2 + $0xd8] sm:$0xff] %vm1960_vm4, %v5828_v42  ;;  %v6010_v53 = vmul.f32 0.5, %v10098_v15  ;;  %v5940_v3 = vld [vmem:[#allocation2 + $0xa8] sm:$0xff]  ;;  %v5826_v12 = vadd.f32 %v5762_v44, %v5698_v41  ;;  %v7807_v19 = vpop.f32.mrf.mxu1 }
 0x2da   : > { %v5533_v47 = vpop.f32.mrf.mxu0  ;;  %v6988_v32 = vpack.c.bf16 %v6133_v56, %v6133_v56  ;;  %v6102_v18 = vmul.f32 0.5, %v6070_v48  ;;  %v10107_v23 = vadd.f32 %v9992_v58, %v5940_v3  ;;  %v5831_v21 = vadd.f32 %v5767_v40, %v5703_v43  ;;  %v5771_v43 = vld [vmem:[#allocation2 + $0x110] sm:$0xff] }
 0x2db   : > { %v8057_v60 = vpop.eup %8056  ;;  %8062 = vtanh.f32 %v6010_v53  ;;  %5890 = vst.msk [vmem:[#allocation2 + $0xc8] sm:$0xff] %vm1960_vm4, %v5826_v12  ;;  %v5701_v39 = vadd.f32 %v5530_v25, %v5076_v62  ;;  %v5087_v22 = vadd.f32 %v7807_v19, %v9838_v52  ;;  %v5078_v10 = vpop.f32.mrf.mxu1  ;;  %v5769_v12 = vld [vmem:[#allocation2 + $0x100] sm:$0xff] }
 0x2dc   : > { %v7876_v59 = vpop.f32.mrf.mxu0  ;;  %6294 = vst.msk [vmem:[%s10049_s19 + $0x14] sm:$0xf] %vm6288_vm5, %v6988_v32  ;;  %v6134_v26 = vmul.f32 %v6102_v18, %v10052_v63  ;;  %v6071_v1 = vadd.f32 1.0, %v8057_v60  ;;  %v6011_v13 = vmul.f32 0.5, %v10107_v23  ;;  %v5079_v37 = vadd.f32 %v5078_v10, %v9842_v9  ;;  %v5768_v63 = vld [vmem:[#allocation2 + $0xf8] sm:$0xff] }
 0x2dd   : > { %5895 = vst.msk [vmem:[#allocation2 + $0xf0] sm:$0xff] %vm1960_vm4, %v5831_v21  ;;  %v5941_v6 = vld [vmem:[#allocation2 + $0xc0] sm:$0xff]  ;;  %v5829_v55 = vadd.f32 %v5765_v5, %v5701_v39  ;;  %v5704_v17 = vadd.f32 %v7873_v28, %v5087_v22  ;;  %v7810_v31 = vpop.f32.mrf.mxu1  ;;  %v5772_v22 = vld [vmem:[#allocation2 + $0x118] sm:$0xff] }
 0x2de   : > { %v5546_v52 = vpop.f32.mrf.mxu0  ;;  %v6989_v29 = vpack.c.bf16 %v6134_v26, %v6134_v26  ;;  %v6103_v34 = vmul.f32 0.5, %v6071_v1  ;;  %8064 = vtanh.f32 %v6011_v13  ;;  %v10118_v8 = vadd.f32 %v9992_v58, %v5941_v6  ;;  %v5770_v6 = vld [vmem:[#allocation2 + $0x108] sm:$0xff] }
 0x2df   : > { %5893 = vst.msk [vmem:[#allocation2 + $0xe0] sm:$0xff] %vm1960_vm4, %v5829_v55  ;;  %v5832_v50 = vadd.f32 %v5768_v63, %v5704_v17  ;;  %v5702_v36 = vadd.f32 %v5533_v47, %v5079_v37  ;;  %v5100_v25 = vadd.f32 %v7810_v31, %v9846_v45  ;;  %v5091_v9 = vpop.f32.mrf.mxu1 }
 0x2e0   : > { %v7877_v4 = vpop.f32.mrf.mxu0  ;;  %v8059_v16 = vpop.eup %8058  ;;  %6295 = vst.msk [vmem:[%s10049_s19 + $0x18] sm:$0xf] %vm6288_vm5, %v6989_v29  ;;  %v6135_v35 = vmul.f32 %v6103_v34, %v10063_v7  ;;  %v6012_v42 = vmul.f32 0.5, %v10118_v8  ;;  %v5092_v51 = vadd.f32 %v5091_v9, %v9850_v49 }
 0x2e1   : > { %v6072_v41 = vadd.f32 1.0, %v8059_v16  ;;  %5896 = vst.msk [vmem:[#allocation2 + $0xf8] sm:$0xff] %vm1960_vm4, %v5832_v50  ;;  %v5830_v61 = vadd.f32 %v5766_v30, %v5702_v36  ;;  %v5707_v28 = vadd.f32 %v7876_v59, %v5100_v25  ;;  %v7811_v56 = vpop.f32.mrf.mxu1  ;;  %v5775_v36 = vld [vmem:[#allocation2 + $0x130] sm:$0xff] }
 0x2e2   : > { %v5549_v45 = vpop.f32.mrf.mxu0  ;;  %v6990_v48 = vpack.c.bf16 %v6135_v35, %v6135_v35  ;;  %8066 = vtanh.f32 %v6012_v42  ;;  %v5942_v44 = vld [vmem:[#allocation2 + $0xc8] sm:$0xff]  ;;  %v5705_v62 = vadd.f32 %v5546_v52, %v5092_v51  ;;  %v5103_v7 = vadd.f32 %v7811_v56, %v9854_v54 }
 0x2e3   : > { %v6104_v53 = vmul.f32 0.5, %v6072_v41  ;;  %v10130_v3 = vadd.f32 %v9992_v58, %v5942_v44  ;;  %5894 = vst.msk [vmem:[#allocation2 + $0xe8] sm:$0xff] %vm1960_vm4, %v5830_v61  ;;  %v5835_v49 = vadd.f32 %v5771_v43, %v5707_v28  ;;  %v5094_v40 = vpop.f32.mrf.mxu1  ;;  %v5773_v41 = vld [vmem:[#allocation2 + $0x120] sm:$0xff] }
 0x2e4   : > { %v7880_v19 = vpop.f32.mrf.mxu0  ;;  %v8061_v47 = vpop.eup %8060  ;;  %6296 = vst.msk [vmem:[%s10049_s19 + $0x1c] sm:$0xf] %vm6288_vm5, %v6990_v48  ;;  %v5833_v32 = vadd.f32 %v5769_v12, %v5705_v62  ;;  %v5708_v18 = vadd.f32 %v7877_v4, %v5103_v7  ;;  %v5095_v21 = vadd.f32 %v5094_v40, %v9858_v38  ;;  %v5776_v7 = vld [vmem:[#allocation2 + $0x138] sm:$0xff] }
 0x2e5   : > { %v6136_v60 = vmul.f32 %v6104_v53, %v10074_v14  ;;  %v6073_v54 = vadd.f32 1.0, %v8061_v47  ;;  %v6013_v39 = vmul.f32 0.5, %v10130_v3  ;;  %5899 = vst.msk [vmem:[#allocation2 + $0x110] sm:$0xff] %vm1960_vm4, %v5835_v49  ;;  %v7814_v10 = vpop.f32.mrf.mxu1 }
 0x2e6   : > { %v5562_v59 = vpop.f32.mrf.mxu0  ;;  %v5943_v26 = vld [vmem:[#allocation2 + $0xe0] sm:$0xff]  ;;  %5897 = vst.msk [vmem:[#allocation2 + $0x100] sm:$0xff] %vm1960_vm4, %v5833_v32  ;;  %v5836_v1 = vadd.f32 %v5772_v22, %v5708_v18  ;;  %v5706_v13 = vadd.f32 %v5549_v45, %v5095_v21  ;;  %v5116_v5 = vadd.f32 %v7814_v10, %v9862_v0  ;;  %v5774_v18 = vld [vmem:[#allocation2 + $0x128] sm:$0xff] }
 0x2e7   : > { %v6991_v37 = vpack.c.bf16 %v6136_v60, %v6136_v60  ;;  %v6105_v38 = vmul.f32 0.5, %v6073_v54  ;;  %8068 = vtanh.f32 %v6013_v39  ;;  %v10142_v14 = vadd.f32 %v9992_v58, %v5943_v26  ;;  %v5107_v55 = vpop.f32.mrf.mxu1 }
 0x2e8   : > { %v7881_v17 = vpop.f32.mrf.mxu0  ;;  %v8063_v31 = vpop.eup %8062  ;;  %5900 = vst.msk [vmem:[#allocation2 + $0x118] sm:$0xff] %vm1960_vm4, %v5836_v1  ;;  %v5834_v52 = vadd.f32 %v5770_v6, %v5706_v13  ;;  %v5711_v29 = vadd.f32 %v7880_v19, %v5116_v5  ;;  %v5108_v34 = vadd.f32 %v5107_v55, %v9866_v46  ;;  %v10494_v1 = vld [vmem:[#allocation3_spill] sm:$0xff]  ;;  %v5779_v6 = vld [vmem:[#allocation2 + $0x150] sm:$0xff] }
 0x2e9   : > { %6297 = vst.msk [vmem:[%s10049_s19 + $0x20] sm:$0xf] %vm6288_vm5, %v6991_v37  ;;  %v6137_v0 = vmul.f32 %v6105_v38, %v10087_v33  ;;  %v6074_v63 = vadd.f32 1.0, %v8063_v31  ;;  %v6014_v50 = vmul.f32 0.5, %v10142_v14  ;;  %v7815_v25 = vpop.f32.mrf.mxu1  ;;  %v10495_v31 = vld [vmem:[#allocation4_spill] sm:$0xff] }
 0x2ea   : > { %v5565_v9 = vpop.f32.mrf.mxu0  ;;  %v5944_v4 = vld [vmem:[#allocation2 + $0xe8] sm:$0xff]  ;;  %5898 = vst.msk [vmem:[#allocation2 + $0x108] sm:$0xff] %vm1960_vm4, %v5834_v52  ;;  %v5839_v16 = vadd.f32 %v5775_v36, %v5711_v29  ;;  %v5709_v35 = vadd.f32 %v5562_v59, %v5108_v34  ;;  %v5119_v42 = vadd.f32 %v7815_v25, %v9870_v2  ;;  %v5777_v36 = vld [vmem:[#allocation2 + $0x140] sm:$0xff]  ;;  %v10496_v25 = vld [vmem:[#allocation5_spill] sm:$0xff] }
 0x2eb   : > { %v8065_v30 = vpop.eup %8064  ;;  %v6992_v46 = vpack.c.bf16 %v6137_v0, %v6137_v0  ;;  %v6106_v51 = vmul.f32 0.5, %v6074_v63  ;;  %8070 = vtanh.f32 %v6014_v50  ;;  %v10153_v33 = vadd.f32 %v9992_v58, %v5944_v4  ;;  %v5110_v61 = vpop.f32.mrf.mxu1 }
 0x2ec   : > { %v7884_v28 = vpop.f32.mrf.mxu0  ;;  %v6075_v56 = vadd.f32 1.0, %v8065_v30  ;;  %5903 = vst.msk [vmem:[#allocation2 + $0x130] sm:$0xff] %vm1960_vm4, %v5839_v16  ;;  %v5837_v45 = vadd.f32 %v5773_v41, %v5709_v35  ;;  %v5712_v48 = vadd.f32 %v7881_v17, %v5119_v42  ;;  %v5111_v44 = vadd.f32 %v5110_v61, %v9874_v57 }
 0x2ed   : > { %6298 = vst.msk [vmem:[%s10049_s19 + $0x24] sm:$0xf] %vm6288_vm5, %v6992_v46  ;;  %v6138_v2 = vmul.f32 %v6106_v51, %v10098_v15  ;;  %v6015_v43 = vmul.f32 0.5, %v10153_v33  ;;  %v5945_v62 = vld [vmem:[#allocation2 + $0x100] sm:$0xff]  ;;  %v7818_v53 = vpop.f32.mrf.mxu1 }
 0x2ee   : > { %v5578_v49 = vpop.f32.mrf.mxu0  ;;  %v6107_v12 = vmul.f32 0.5, %v6075_v56  ;;  %v10162_v40 = vadd.f32 %v9992_v58, %v5945_v62  ;;  %5901 = vst.msk [vmem:[#allocation2 + $0x120] sm:$0xff] %vm1960_vm4, %v5837_v45  ;;  %v5840_v19 = vadd.f32 %v5776_v7, %v5712_v48  ;;  %v5710_v47 = vadd.f32 %v5565_v9, %v5111_v44  ;;  %v5778_v45 = vld [vmem:[#allocation2 + $0x148] sm:$0xff]  ;;  %v10497_v48 = vld [vmem:[#allocation6_spill] sm:$0xff] }
 0x2ef   : > { %v8067_v57 = vpop.eup %8066  ;;  %v6993_v32 = vpack.c.bf16 %v6138_v2, %v6138_v2  ;;  %8072 = vtanh.f32 %v6015_v43  ;;  %v5132_v15 = vadd.f32 %v7818_v53, %v9878_v20  ;;  %v5123_v21 = vpop.f32.mrf.mxu1 }
 0x2f0   : > { %v7885_v60 = vpop.f32.mrf.mxu0  ;;  %v6139_v54 = vmul.f32 %v6107_v12, %v10107_v23  ;;  %v6076_v39 = vadd.f32 1.0, %v8067_v57  ;;  %v6016_v22 = vmul.f32 0.5, %v10162_v40  ;;  %5904 = vst.msk [vmem:[#allocation2 + $0x138] sm:$0xff] %vm1960_vm4, %v5840_v19  ;;  %v5838_v10 = vadd.f32 %v5774_v18, %v5710_v47 }
 0x2f1   : > { %6299 = vst.msk [vmem:[%s10049_s19 + $0x28] sm:$0xf] %vm6288_vm5, %v6993_v32  ;;  %v5946_v59 = vld [vmem:[#allocation2 + $0x108] sm:$0xff]  ;;  %v5715_v26 = vadd.f32 %v7884_v28, %v5132_v15  ;;  %v5124_v13 = vadd.f32 %v5123_v21, %v10494_v1  ;;  %v7819_v5 = vpop.f32.mrf.mxu1 }
 0x2f2   : > { %v5581_v37 = vpop.f32.mrf.mxu0  ;;  %v6994_v20 = vpack.c.bf16 %v6139_v54, %v6139_v54  ;;  %v6108_v38 = vmul.f32 0.5, %v6076_v39  ;;  %8074 = vtanh.f32 %v6016_v22  ;;  %v10173_v23 = vadd.f32 %v9992_v58, %v5946_v59  ;;  %5902 = vst.msk [vmem:[#allocation2 + $0x128] sm:$0xff] %vm1960_vm4, %v5838_v10  ;;  %v10499_v39 = vld [vmem:[#allocation8_spill] sm:$0xff] }
 0x2f3   : > { %v5843_v55 = vadd.f32 %v5779_v6, %v5715_v26  ;;  %v5713_v17 = vadd.f32 %v5578_v49, %v5124_v13  ;;  %v5135_v52 = vadd.f32 %v7819_v5, %v10495_v31  ;;  %v5126_v29 = vpop.f32.mrf.mxu1  ;;  %v10498_v49 = vld [vmem:[#allocation7_spill] sm:$0xff]  ;;  %v10500_v6 = vld [vmem:[#allocation9_spill] sm:$0xff] }
 0x2f4   : > { %v7888_v34 = vpop.f32.mrf.mxu0  ;;  %v8069_v0 = vpop.eup %8068  ;;  %6300 = vst.msk [vmem:[%s10049_s19 + $0x2c] sm:$0xf] %vm6288_vm5, %v6994_v20  ;;  %v6140_v63 = vmul.f32 %v6108_v38, %v10118_v8  ;;  %v6017_v50 = vmul.f32 0.5, %v10173_v23  ;;  %v5127_v9 = vadd.f32 %v5126_v29, %v10496_v25  ;;  %v5780_v8 = vld [vmem:[#allocation2 + $0x158] sm:$0xff]  ;;  %v5781_v26 = vld [vmem:[#allocation2 + $0x160] sm:$0xff] }
 0x2f5   : > { %v6077_v4 = vadd.f32 1.0, %v8069_v0  ;;  %v5947_v16 = vld [vmem:[#allocation2 + $0x120] sm:$0xff]  ;;  %5907 = vst.msk [vmem:[#allocation2 + $0x150] sm:$0xff] %vm1960_vm4, %v5843_v55  ;;  %v5841_v35 = vadd.f32 %v5777_v36, %v5713_v17  ;;  %v5716_v42 = vadd.f32 %v7885_v60, %v5135_v52  ;;  %v7822_v30 = vpop.f32.mrf.mxu1  ;;  %v5783_v60 = vld [vmem:[#allocation2 + $0x170] sm:$0xff]  ;;  %v5784_v52 = vld [vmem:[#allocation2 + $0x178] sm:$0xff] }
 0x2f6   : > { %v5594_v46 = vpop.f32.mrf.mxu0  ;;  %v6995_v51 = vpack.c.bf16 %v6140_v63, %v6140_v63  ;;  %8076 = vtanh.f32 %v6017_v50  ;;  %v10184_v41 = vadd.f32 %v9992_v58, %v5947_v16  ;;  %v5714_v61 = vadd.f32 %v5581_v37, %v5127_v9  ;;  %v5782_v16 = vld [vmem:[#allocation2 + $0x168] sm:$0xff] }
 0x2f7   : > { %v6109_v28 = vmul.f32 0.5, %v6077_v4  ;;  %5905 = vst.msk [vmem:[#allocation2 + $0x140] sm:$0xff] %vm1960_vm4, %v5841_v35  ;;  %v5844_v56 = vadd.f32 %v5780_v8, %v5716_v42  ;;  %v5148_v44 = vadd.f32 %v7822_v30, %v10497_v48  ;;  %v5139_v2 = vpop.f32.mrf.mxu1 }
 0x2f8   : > { %v7889_v43 = vpop.f32.mrf.mxu0  ;;  %v8071_v62 = vpop.eup %8070  ;;  %6301 = vst.msk [vmem:[%s10049_s19 + $0x30] sm:$0xf] %vm6288_vm5, %v6995_v51  ;;  %v6018_v7 = vmul.f32 0.5, %v10184_v41  ;;  %v5842_v53 = vadd.f32 %v5778_v45, %v5714_v61  ;;  %v5140_v12 = vadd.f32 %v5139_v2, %v10498_v49 }
 0x2f9   : > { %v6141_v19 = vmul.f32 %v6109_v28, %v10130_v3  ;;  %v6078_v47 = vadd.f32 1.0, %v8071_v62  ;;  %v5948_v57 = vld [vmem:[#allocation2 + $0x128] sm:$0xff]  ;;  %5908 = vst.msk [vmem:[#allocation2 + $0x158] sm:$0xff] %vm1960_vm4, %v5844_v56  ;;  %v5719_v32 = vadd.f32 %v7888_v34, %v5148_v44  ;;  %v7823_v18 = vpop.f32.mrf.mxu1  ;;  %v5787_v56 = vld [vmem:[#allocation2 + $0x190] sm:$0xff] }
 0x2fa   : > { %v5597_v15 = vpop.f32.mrf.mxu0  ;;  %8078 = vtanh.f32 %v6018_v7  ;;  %v10195_v21 = vadd.f32 %v9992_v58, %v5948_v57  ;;  %5906 = vst.msk [vmem:[#allocation2 + $0x148] sm:$0xff] %vm1960_vm4, %v5842_v53  ;;  %v5717_v54 = vadd.f32 %v5594_v46, %v5140_v12  ;;  %v5151_v22 = vadd.f32 %v7823_v18, %v10499_v39  ;;  %v5785_v53 = vld [vmem:[#allocation2 + $0x180] sm:$0xff] }
 0x2fb   : > { %v6996_v10 = vpack.c.bf16 %v6141_v19, %v6141_v19  ;;  %v6110_v3 = vmul.f32 0.5, %v6078_v47  ;;  %v5847_v59 = vadd.f32 %v5783_v60, %v5719_v32  ;;  %v5142_v1 = vpop.f32.mrf.mxu1 }
 0x2fc   : > { %v7892_v13 = vpop.f32.mrf.mxu0  ;;  %v8073_v5 = vpop.eup %8072  ;;  %v6019_v37 = vmul.f32 0.5, %v10195_v21  ;;  %v5845_v20 = vadd.f32 %v5781_v26, %v5717_v54  ;;  %v5720_v38 = vadd.f32 %v7889_v43, %v5151_v22  ;;  %v5143_v55 = vadd.f32 %v5142_v1, %v10500_v6 }
 0x2fd   : > { %6302 = vst.msk [vmem:[%s10049_s19 + $0x34] sm:$0xf] %vm6288_vm5, %v6996_v10  ;;  %v6142_v17 = vmul.f32 %v6110_v3, %v10142_v14  ;;  %v6079_v31 = vadd.f32 1.0, %v8073_v5  ;;  %v7826_v29 = vpop.f32.mrf.mxu1  ;;  %v5788_v3 = vld [vmem:[#allocation2 + $0x198] sm:$0xff] }
 0x2fe   : > { %5911 = vst.msk [vmem:[#allocation2 + $0x170] sm:$0xff] %vm1960_vm4, %v5847_v59  ;;  %v5610_v34 = vpop.f32.mrf.mxu0  ;;  %8080 = vtanh.f32 %v6019_v37  ;;  %v5949_v0 = vld [vmem:[#allocation2 + $0x140] sm:$0xff]  ;;  %5909 = vst.msk [vmem:[#allocation2 + $0x160] sm:$0xff] %vm1960_vm4, %v5845_v20  ;;  %v5848_v63 = vadd.f32 %v5784_v52, %v5720_v38  ;;  %v5718_v50 = vadd.f32 %v5597_v15, %v5143_v55  ;;  %v5164_v36 = vadd.f32 %v7826_v29, %v9910_v11  ;;  %v10501_v15 = vld [vmem:[#allocation10_spill] sm:$0xff] }
 0x2ff   : > { %v8075_v25 = vpop.eup %8074  ;;  %v6997_v9 = vpack.c.bf16 %v6142_v17, %v6142_v17  ;;  %v6111_v4 = vmul.f32 0.5, %v6079_v31  ;;  %v10208_v14 = vadd.f32 %v9992_v58, %v5949_v0  ;;  %v5155_v35 = vpop.f32.mrf.mxu1  ;;  %v5786_v17 = vld [vmem:[#allocation2 + $0x188] sm:$0xff] }
 0x300   : > { %v7893_v42 = vpop.f32.mrf.mxu0  ;;  %v6080_v30 = vadd.f32 1.0, %v8075_v25  ;;  %5912 = vst.msk [vmem:[#allocation2 + $0x178] sm:$0xff] %vm1960_vm4, %v5848_v63  ;;  %v5846_v46 = vadd.f32 %v5782_v16, %v5718_v50  ;;  %v5723_v51 = vadd.f32 %v7892_v13, %v5164_v36  ;;  %v5156_v8 = vadd.f32 %v5155_v35, %v9914_v27  ;;  %v10502_v13 = vld [vmem:[#allocation11_spill] sm:$0xff]  ;;  %v10503_v31 = vld [vmem:[#allocation12_spill] sm:$0xff] }
 0x301   : > { %6303 = vst.msk [vmem:[%s10049_s19 + $0x38] sm:$0xf] %vm6288_vm5, %v6997_v9  ;;  %v6143_v11 = vmul.f32 %v6111_v4, %v10153_v33  ;;  %v6020_v61 = vmul.f32 0.5, %v10208_v14  ;;  %v5950_v28 = vld [vmem:[#allocation2 + $0x148] sm:$0xff]  ;;  %v7827_v45 = vpop.f32.mrf.mxu1 }
 0x302   : > { %v5613_v48 = vpop.f32.mrf.mxu0  ;;  %v6112_v44 = vmul.f32 0.5, %v6080_v30  ;;  %v10217_v2 = vadd.f32 %v9992_v58, %v5950_v28  ;;  %5910 = vst.msk [vmem:[#allocation2 + $0x168] sm:$0xff] %vm1960_vm4, %v5846_v46  ;;  %v5851_v43 = vadd.f32 %v5787_v56, %v5723_v51  ;;  %v5721_v62 = vadd.f32 %v5610_v34, %v5156_v8  ;;  %v5789_v28 = vld [vmem:[#allocation2 + $0x1a0] sm:$0xff]  ;;  %v10505_v56 = vld [vmem:[#allocation14_spill] sm:$0xff] }
 0x303   : > { %v8077_v27 = vpop.eup %8076  ;;  %v6998_v7 = vpack.c.bf16 %v6143_v11, %v6143_v11  ;;  %8082 = vtanh.f32 %v6020_v61  ;;  %v5167_v33 = vadd.f32 %v7827_v45, %v9918_v24  ;;  %v5158_v49 = vpop.f32.mrf.mxu1 }
 0x304   : > { %v7896_v12 = vpop.f32.mrf.mxu0  ;;  %v6144_v19 = vmul.f32 %v6112_v44, %v10162_v40  ;;  %v6081_v47 = vadd.f32 1.0, %v8077_v27  ;;  %v6021_v57 = vmul.f32 0.5, %v10217_v2  ;;  %5915 = vst.msk [vmem:[#allocation2 + $0x190] sm:$0xff] %vm1960_vm4, %v5851_v43  ;;  %v5849_v58 = vadd.f32 %v5785_v53, %v5721_v62  ;;  %v10230_v40 = vld [vmem:[%s10341_s2] ss:$0 sm:$0xff] }
 0x305   : > { %6304 = vst.msk [vmem:[%s10049_s19 + $0x3c] sm:$0xf] %vm6288_vm5, %v6998_v7  ;;  %v5951_v32 = vld [vmem:[#allocation2 + $0x160] sm:$0xff]  ;;  %v5724_v18 = vadd.f32 %v7893_v42, %v5167_v33  ;;  %v5159_v60 = vadd.f32 %v5158_v49, %v10501_v15  ;;  %v7830_v54 = vpop.f32.mrf.mxu1  ;;  %v10504_v42 = vld [vmem:[#allocation13_spill] sm:$0xff] }
 0x306   : > { %v5626_v39 = vpop.f32.mrf.mxu0  ;;  %v6999_v24 = vpack.c.bf16 %v6144_v19, %v6144_v19  ;;  %v6113_v22 = vmul.f32 0.5, %v6081_v47  ;;  %8084 = vtanh.f32 %v6021_v57  ;;  %v10233_v10 = vadd.f32 %v10230_v40, %v5951_v32  ;;  %5913 = vst.msk [vmem:[#allocation2 + $0x180] sm:$0xff] %vm1960_vm4, %v5849_v58  ;;  %v10506_v19 = vld [vmem:[#allocation15_spill] sm:$0xff] }
 0x307   : > { %v8079_v59 = vpop.eup %8078  ;;  %v5852_v26 = vadd.f32 %v5788_v3, %v5724_v18  ;;  %v5722_v1 = vadd.f32 %v5613_v48, %v5159_v60  ;;  %v5180_v5 = vadd.f32 %v7830_v54, %v10502_v13  ;;  %v5171_v37 = vpop.f32.mrf.mxu1  ;;  %v5790_v60 = vld [vmem:[#allocation2 + $0x1a8] sm:$0xff] }
 0x308   : > { %v7897_v20 = vpop.f32.mrf.mxu0  ;;  %6305 = vst.msk [vmem:[%s10049_s19 + $0x40] sm:$0xf] %vm6288_vm5, %v6999_v24  ;;  %v6145_v38 = vmul.f32 %v6113_v22, %v10173_v23  ;;  %v6082_v6 = vadd.f32 1.0, %v8079_v59  ;;  %v6022_v55 = vmul.f32 0.5, %v10233_v10  ;;  %v5172_v52 = vadd.f32 %v5171_v37, %v10503_v31  ;;  %v5791_v23 = vld [vmem:[#allocation2 + $0x1b0] sm:$0xff]  ;;  %v10507_v54 = vld [vmem:[#allocation16_spill] sm:$0xff] }
 0x309   : > { %v5952_v29 = vld [vmem:[#allocation2 + $0x168] sm:$0xff]  ;;  %5916 = vst.msk [vmem:[#allocation2 + $0x198] sm:$0xff] %vm1960_vm4, %v5852_v26  ;;  %v5850_v34 = vadd.f32 %v5786_v17, %v5722_v1  ;;  %v5727_v0 = vadd.f32 %v7896_v12, %v5180_v5  ;;  %v7831_v63 = vpop.f32.mrf.mxu1  ;;  %v5795_v5 = vld [vmem:[#allocation2 + $0x1d0] sm:$0xff]  ;;  %v5793_v31 = vld [vmem:[#allocation2 + $0x1c0] sm:$0xff] }
 0x30a   : > { %v5629_v50 = vpop.f32.mrf.mxu0  ;;  %v7000_v36 = vpack.c.bf16 %v6145_v38, %v6145_v38  ;;  %v6114_v25 = vmul.f32 0.5, %v6082_v6  ;;  %8086 = vtanh.f32 %v6022_v55  ;;  %v10244_v9 = vadd.f32 %v10230_v40, %v5952_v29 }
 0x30b   : > { %v8081_v4 = vpop.eup %8080  ;;  %5914 = vst.msk [vmem:[#allocation2 + $0x188] sm:$0xff] %vm1960_vm4, %v5850_v34  ;;  %v5855_v16 = vadd.f32 %v5791_v23, %v5727_v0  ;;  %v5725_v35 = vadd.f32 %v5626_v39, %v5172_v52  ;;  %v5183_v30 = vadd.f32 %v7831_v63, %v10504_v42  ;;  %v5174_v46 = vpop.f32.mrf.mxu1 }
 0x30c   : > { %v7900_v51 = vpop.f32.mrf.mxu0  ;;  %6306 = vst.msk [vmem:[%s10049_s19 + $0x44] sm:$0xf] %vm6288_vm5, %v7000_v36  ;;  %v6146_v8 = vmul.f32 %v6114_v25, %v10184_v41  ;;  %v6083_v11 = vadd.f32 1.0, %v8081_v4  ;;  %v6023_v61 = vmul.f32 0.5, %v10244_v9  ;;  %v5175_v45 = vadd.f32 %v5174_v46, %v10505_v56  ;;  %v5792_v41 = vld [vmem:[#allocation2 + $0x1b8] sm:$0xff]  ;;  %v5794_v56 = vld [vmem:[#allocation2 + $0x1c8] sm:$0xff] }
 0x30d   : > { %v5953_v48 = vld [vmem:[#allocation2 + $0x180] sm:$0xff]  ;;  %5919 = vst.msk [vmem:[#allocation2 + $0x1b0] sm:$0xff] %vm1960_vm4, %v5855_v16  ;;  %v5853_v44 = vadd.f32 %v5789_v28, %v5725_v35  ;;  %v5728_v43 = vadd.f32 %v7897_v20, %v5183_v30  ;;  %v7834_v62 = vpop.f32.mrf.mxu1  ;;  %v10508_v20 = vld [vmem:[#allocation17_spill] sm:$0xff]  ;;  %v5796_v4 = vld [vmem:[#allocation2 + $0x1d8] sm:$0xff] }
 0x30e   : > { %v5642_v27 = vpop.f32.mrf.mxu0  ;;  %v7001_v7 = vpack.c.bf16 %v6146_v8, %v6146_v8  ;;  %v6115_v53 = vmul.f32 0.5, %v6083_v11  ;;  %8088 = vtanh.f32 %v6023_v61  ;;  %v10255_v33 = vadd.f32 %v10230_v40, %v5953_v48 }
 0x30f   : > { %5917 = vst.msk [vmem:[#allocation2 + $0x1a0] sm:$0xff] %vm1960_vm4, %v5853_v44  ;;  %v5856_v49 = vadd.f32 %v5792_v41, %v5728_v43  ;;  %v5726_v12 = vadd.f32 %v5629_v50, %v5175_v45  ;;  %v5196_v47 = vadd.f32 %v7834_v62, %v10506_v19  ;;  %v5187_v57 = vpop.f32.mrf.mxu1  ;;  %v10509_v50 = vld [vmem:[#allocation18_spill] sm:$0xff] }
 0x310   : > { %v7901_v58 = vpop.f32.mrf.mxu0  ;;  %v8083_v32 = vpop.eup %8082  ;;  %6307 = vst.msk [vmem:[%s10049_s19 + $0x48] sm:$0xf] %vm6288_vm5, %v7001_v7  ;;  %v6147_v18 = vmul.f32 %v6115_v53, %v10195_v21  ;;  %v6024_v15 = vmul.f32 0.5, %v10255_v33  ;;  %v5188_v39 = vadd.f32 %v5187_v57, %v10507_v54  ;;  %v5799_v7 = vld [vmem:[#allocation2 + $0x1f0] sm:$0xff]  ;;  %v10511_v53 = vld [vmem:[#allocation20_spill] sm:$0xff] }
 0x311   : > { %v6084_v24 = vadd.f32 1.0, %v8083_v32  ;;  %5920 = vst.msk [vmem:[#allocation2 + $0x1b8] sm:$0xff] %vm1960_vm4, %v5856_v49  ;;  %v5854_v22 = vadd.f32 %v5790_v60, %v5726_v12  ;;  %v5731_v3 = vadd.f32 %v7900_v51, %v5196_v47  ;;  %v7835_v59 = vpop.f32.mrf.mxu1  ;;  %v10510_v51 = vld [vmem:[#allocation19_spill] sm:$0xff]  ;;  %v10512_v57 = vld [vmem:[#allocation21_spill] sm:$0xff] }
 0x312   : > { %v5645_v26 = vpop.f32.mrf.mxu0  ;;  %v7002_v1 = vpack.c.bf16 %v6147_v18, %v6147_v18  ;;  %8090 = vtanh.f32 %v6024_v15  ;;  %v5954_v13 = vld [vmem:[#allocation2 + $0x188] sm:$0xff]  ;;  %v5729_v37 = vadd.f32 %v5642_v27, %v5188_v39  ;;  %v5199_v21 = vadd.f32 %v7835_v59, %v10508_v20  ;;  %v10513_v59 = vld [vmem:[#allocation22_spill] sm:$0xff] }
 0x313   : > { %v8085_v38 = vpop.eup %8084  ;;  %v6116_v6 = vmul.f32 0.5, %v6084_v24  ;;  %v10267_v55 = vadd.f32 %v10230_v40, %v5954_v13  ;;  %5918 = vst.msk [vmem:[#allocation2 + $0x1a8] sm:$0xff] %vm1960_vm4, %v5854_v22  ;;  %v5859_v17 = vadd.f32 %v5795_v5, %v5731_v3  ;;  %v5190_v52 = vpop.f32.mrf.mxu1  ;;  %v5797_v22 = vld [vmem:[#allocation2 + $0x1e0] sm:$0xff] }
 0x314   : > { %v7904_v29 = vpop.f32.mrf.mxu0  ;;  %6308 = vst.msk [vmem:[%s10049_s19 + $0x4c] sm:$0xf] %vm6288_vm5, %v7002_v1  ;;  %v6085_v34 = vadd.f32 1.0, %v8085_v38  ;;  %v5857_v0 = vadd.f32 %v5793_v31, %v5729_v37  ;;  %v5732_v63 = vadd.f32 %v7901_v58, %v5199_v21  ;;  %v5191_v36 = vadd.f32 %v5190_v52, %v10509_v50  ;;  %v5800_v37 = vld [vmem:[#allocation2 + $0x1f8] sm:$0xff] }
 0x315   : > { %v6148_v25 = vmul.f32 %v6116_v6, %v10208_v14  ;;  %v6025_v23 = vmul.f32 0.5, %v10267_v55  ;;  %5923 = vst.msk [vmem:[#allocation2 + $0x1d0] sm:$0xff] %vm1960_vm4, %v5859_v17  ;;  %v7838_v16 = vpop.f32.mrf.mxu1 }
 0x316   : > { %v6117_v35 = vmul.f32 0.5, %v6085_v34  ;;  %v5955_v42 = vld [vmem:[#allocation2 + $0x1a0] sm:$0xff]  ;;  %5921 = vst.msk [vmem:[#allocation2 + $0x1c0] sm:$0xff] %vm1960_vm4, %v5857_v0  ;;  %v5860_v30 = vadd.f32 %v5796_v4, %v5732_v63  ;;  %v5730_v46 = vadd.f32 %v5645_v26, %v5191_v36  ;;  %v5212_v8 = vadd.f32 %v7838_v16, %v10510_v51  ;;  %v5658_v11 = vpop.f32.mrf.mxu0  ;;  %v5798_v0 = vld [vmem:[#allocation2 + $0x1e8] sm:$0xff] }
 0x317   : > { %v8087_v61 = vpop.eup %8086  ;;  %v7003_v28 = vpack.c.bf16 %v6148_v25, %v6148_v25  ;;  %8092 = vtanh.f32 %v6025_v23  ;;  %v10279_v14 = vadd.f32 %v10230_v40, %v5955_v42  ;;  %v5203_v45 = vpop.f32.mrf.mxu1 }
 0x318   : > { %v6149_v48 = vmul.f32 %v6117_v35, %v10217_v2  ;;  %v6086_v44 = vadd.f32 1.0, %v8087_v61  ;;  %5924 = vst.msk [vmem:[#allocation2 + $0x1d8] sm:$0xff] %vm1960_vm4, %v5860_v30  ;;  %v5858_v43 = vadd.f32 %v5794_v56, %v5730_v46  ;;  %v5735_v62 = vadd.f32 %v7904_v29, %v5212_v8  ;;  %v7905_v32 = vpop.f32.mrf.mxu0 }
 0x319   : > { %6309 = vst.msk [vmem:[%s10049_s19 + $0x50] sm:$0xf] %vm6288_vm5, %v7003_v28  ;;  %v6026_v27 = vmul.f32 0.5, %v10279_v14  ;;  %v5204_v41 = vadd.f32 %v5203_v45, %v10511_v53  ;;  %v7839_v49 = vpop.f32.mrf.mxu1 }
 0x31a   : > { %v7004_v12 = vpack.c.bf16 %v6149_v48, %v6149_v48  ;;  %v6118_v19 = vmul.f32 0.5, %v6086_v44  ;;  %v5956_v47 = vld [vmem:[#allocation2 + $0x1a8] sm:$0xff]  ;;  %5922 = vst.msk [vmem:[#allocation2 + $0x1c8] sm:$0xff] %vm1960_vm4, %v5858_v43  ;;  %v5863_v2 = vadd.f32 %v5799_v7, %v5735_v62  ;;  %v5215_v58 = vadd.f32 %v7839_v49, %v10512_v57  ;;  %v5661_v17 = vpop.f32.mrf.mxu0 }
 0x31b   : > { %v8089_v18 = vpop.eup %8088  ;;  %8094 = vtanh.f32 %v6026_v27  ;;  %v10290_v15 = vadd.f32 %v10230_v40, %v5956_v47  ;;  %v5733_v60 = vadd.f32 %v5658_v11, %v5204_v41  ;;  %v5206_v54 = vpop.f32.mrf.mxu1 }
 0x31c   : > { %6310 = vst.msk [vmem:[%s10049_s19 + $0x54] sm:$0xf] %vm6288_vm5, %v7004_v12  ;;  %v6150_v39 = vmul.f32 %v6118_v19, %v10233_v10  ;;  %v6087_v24 = vadd.f32 1.0, %v8089_v18  ;;  %v5736_v3 = vadd.f32 %v7905_v32, %v5215_v58  ;;  %v5207_v26 = vadd.f32 %v5206_v54, %v10513_v59 }
 0x31d   : > { %5927 = vst.msk [vmem:[#allocation2 + $0x1f0] sm:$0xff] %vm1960_vm4, %v5863_v2  ;;  %v6027_v1 = vmul.f32 0.5, %v10290_v15  ;;  %v5957_v13 = vld [vmem:[#allocation2 + $0x1c0] sm:$0xff]  ;;  %v5861_v5 = vadd.f32 %v5797_v22, %v5733_v60 }
 0x31e   : > { %v7005_v20 = vpack.c.bf16 %v6150_v39, %v6150_v39  ;;  %v6119_v21 = vmul.f32 0.5, %v6087_v24  ;;  %v5996_v38 = vadd.f32 %v10230_v40, %v5957_v13  ;;  %v5864_v6 = vadd.f32 %v5800_v37, %v5736_v3 }
 0x31f   : > { %v8091_v10 = vpop.eup %8090  ;;  %8096 = vtanh.f32 %v6027_v1  ;;  %5925 = vst.msk [vmem:[#allocation2 + $0x1e0] sm:$0xff] %vm1960_vm4, %v5861_v5  ;;  %v5734_v31 = vadd.f32 %v5661_v17, %v5207_v26 }
 0x320   : > { %6311 = vst.msk [vmem:[%s10049_s19 + $0x58] sm:$0xf] %vm6288_vm5, %v7005_v20  ;;  %v6151_v52 = vmul.f32 %v6119_v21, %v10244_v9  ;;  %v6088_v29 = vadd.f32 1.0, %v8091_v10  ;;  %v6028_v34 = vmul.f32 0.5, %v5996_v38 }
 0x321   : > { %5928 = vst.msk [vmem:[#allocation2 + $0x1f8] sm:$0xff] %vm1960_vm4, %v5864_v6  ;;  %v5958_v63 = vld [vmem:[#allocation2 + $0x1c8] sm:$0xff]  ;;  %v5862_v50 = vadd.f32 %v5798_v0, %v5734_v31 }
 0x322   : > { %v7006_v36 = vpack.c.bf16 %v6151_v52, %v6151_v52  ;;  %v6120_v25 = vmul.f32 0.5, %v6088_v29  ;;  %8098 = vtanh.f32 %v6028_v34  ;;  %v5997_v23 = vadd.f32 %v10230_v40, %v5958_v63 }
 0x323   : > { %5926 = vst.msk [vmem:[#allocation2 + $0x1e8] sm:$0xff] %vm1960_vm4, %v5862_v50 }
 0x324   : > { %v8093_v4 = vpop.eup %8092  ;;  %6312 = vst.msk [vmem:[%s10049_s19 + $0x5c] sm:$0xf] %vm6288_vm5, %v7006_v36  ;;  %v6152_v9 = vmul.f32 %v6120_v25, %v10255_v33  ;;  %v6029_v16 = vmul.f32 0.5, %v5997_v23 }
 0x325   : > { %v6089_v35 = vadd.f32 1.0, %v8093_v4 }
 0x326   : > { %v7007_v42 = vpack.c.bf16 %v6152_v9, %v6152_v9  ;;  %8100 = vtanh.f32 %v6029_v16  ;;  %v5959_v30 = vld [vmem:[#allocation2 + $0x1e0] sm:$0xff] }
 0x327   : > { %v6121_v46 = vmul.f32 0.5, %v6089_v35  ;;  %v5998_v51 = vadd.f32 %v10230_v40, %v5959_v30 }
 0x328   : > { %v8095_v8 = vpop.eup %8094  ;;  %6313 = vst.msk [vmem:[%s10049_s19 + $0x60] sm:$0xf] %vm6288_vm5, %v7007_v42 }
 0x329   : > { %v6153_v11 = vmul.f32 %v6121_v46, %v10267_v55  ;;  %v6090_v61 = vadd.f32 1.0, %v8095_v8  ;;  %v6030_v28 = vmul.f32 0.5, %v5998_v51 }
 0x32a   : > { %v5960_v56 = vld [vmem:[#allocation2 + $0x1e8] sm:$0xff] }
 0x32b   : > { %v7008_v45 = vpack.c.bf16 %v6153_v11, %v6153_v11  ;;  %v6122_v33 = vmul.f32 0.5, %v6090_v61  ;;  %8102 = vtanh.f32 %v6030_v28  ;;  %v5999_v48 = vadd.f32 %v10230_v40, %v5960_v56 }
 0x32c   : > { %v8097_v44 = vpop.eup %8096 }
 0x32d   : > { %6314 = vst.msk [vmem:[%s10049_s19 + $0x64] sm:$0xf] %vm6288_vm5, %v7008_v45  ;;  %v6154_v43 = vmul.f32 %v6122_v33, %v10279_v14  ;;  %v6091_v62 = vadd.f32 1.0, %v8097_v44  ;;  %v6031_v27 = vmul.f32 0.5, %v5999_v48 }
 0x32f   : > { %v8099_v7 = vpop.eup %8098  ;;  %v7009_v55 = vpack.c.bf16 %v6154_v43, %v6154_v43  ;;  %v6123_v53 = vmul.f32 0.5, %v6091_v62  ;;  %8104 = vtanh.f32 %v6031_v27 }
 0x330   : > { %v6092_v41 = vadd.f32 1.0, %v8099_v7 }
 0x331   : > { %6315 = vst.msk [vmem:[%s10049_s19 + $0x68] sm:$0xf] %vm6288_vm5, %v7009_v55  ;;  %v6155_v49 = vmul.f32 %v6123_v53, %v10290_v15 }
 0x332   : > { %v6124_v40 = vmul.f32 0.5, %v6092_v41 }
 0x333   : > { %v8101_v12 = vpop.eup %8100  ;;  %v7010_v19 = vpack.c.bf16 %v6155_v49, %v6155_v49 }
 0x334   : > { %v6156_v47 = vmul.f32 %v6124_v40, %v5996_v38  ;;  %v6093_v2 = vadd.f32 1.0, %v8101_v12 }
 0x335   : > { %6316 = vst.msk [vmem:[%s10049_s19 + $0x6c] sm:$0xf] %vm6288_vm5, %v7010_v19 }
 0x336   : > { %v7011_v14 = vpack.c.bf16 %v6156_v47, %v6156_v47  ;;  %v6125_v57 = vmul.f32 0.5, %v6093_v2 }
 0x338   : > { %v8103_v58 = vpop.eup %8102  ;;  %6317 = vst.msk [vmem:[%s10049_s19 + $0x70] sm:$0xf] %vm6288_vm5, %v7011_v14  ;;  %v6157_v32 = vmul.f32 %v6125_v57, %v5997_v23 }
 0x339   : > { %v6094_v18 = vadd.f32 1.0, %v8103_v58 }
 0x33a   : > { %v7012_v60 = vpack.c.bf16 %v6157_v32, %v6157_v32 }
 0x33b   : > { %v6126_v54 = vmul.f32 0.5, %v6094_v18 }
 0x33c   : > { %v8105_v15 = vpop.eup %8104  ;;  %6318 = vst.msk [vmem:[%s10049_s19 + $0x74] sm:$0xf] %vm6288_vm5, %v7012_v60 }
 0x33d   : > { %v6158_v39 = vmul.f32 %v6126_v54, %v5998_v51  ;;  %v6095_v24 = vadd.f32 1.0, %v8105_v15 }
 0x33f   : > { %v7013_v22 = vpack.c.bf16 %v6158_v39, %v6158_v39  ;;  %v6127_v3 = vmul.f32 0.5, %v6095_v24 }
 0x341   : > { %6319 = vst.msk [vmem:[%s10049_s19 + $0x78] sm:$0xf] %vm6288_vm5, %v7013_v22  ;;  %v6159_v59 = vmul.f32 %v6127_v3, %v5999_v48 }
 0x343   : > { %v7014_v26 = vpack.c.bf16 %v6159_v59, %v6159_v59 }
 0x345   : > { %6320 = vst.msk [vmem:[%s10049_s19 + $0x7c] sm:$0xf] %vm6288_vm5, %v7014_v26 }
 0x346 PF: > { %s13_s14 = sadd.s32 1, %s8174_s14   ;;  %s10514_s12 = smov %s8170_s13 }
 0x347   : > { %p10_p5 = scmp.ge.s32.totalorder %s13_s14, 4   ;;  %s10515_s13 = smov %s10517_s15 }
 0x349   :  { %12 = sbr.rel (!%p10_p5) target bundleno = 2 (0x2), region = 73 }

</bundles_post_ra>
